<compile_context>
chip_gen: v6e
topology: v6e:2x2x1
jax: 0.10.0
libtpu: 0.0.40
codegen_flags: <defaults>
</compile_context>

<pallas_src>
import functools
import math

import jax
import jax.numpy as jnp
from jax import lax
from jax.experimental import pallas as pl
from jax.experimental.pallas import tpu as pltpu

K = 2  # TAGConv default number of hops


def _round_up(x, m):
    return ((x + m - 1) // m) * m


def _vmem_capacity_bytes():
    try:
        return int(pltpu.get_tpu_info().vmem_capacity_bytes)
    except Exception:
        return 64 << 20  # conservative: v7x per-TensorCore VMEM


def _tagconv_kernel(adj_ref, feat_ref, norm_ref, w_ref, b_ref, out_ref,
                    xs_ref, acc_ref, *, tm, tk, a_resident):
    hop = pl.program_id(0)       # hop h computes X_{h+1} and its y-contribution
    di = pl.program_id(1)        # dst row tile
    si = pl.program_id(2)        # src col tile (reduction axis, innermost)
    n_si = pl.num_programs(2)

    slot = lax.rem(hop, 2)       # xs ping-pong slot holding norm * X_hop

    # One-time init: xs[0] = norm * X_0 (single cold branch across the grid).
    @pl.when((hop == 0) & (di == 0) & (si == 0))
    def _init_xs():
        xs_ref[0] = (feat_ref[...].astype(jnp.float32)
                     * norm_ref[...]).astype(xs_ref.dtype)

    @pl.when(si == 0)
    def _zero_acc():
        acc_ref[...] = jnp.zeros_like(acc_ref)

    dst = pl.multiple_of(di * tm, tm)
    src = pl.multiple_of(si * tk, tk)

    # ---- tiled (A @ xs) reduction over source tiles --------------------------
    if a_resident:
        a_tile = adj_ref[pl.ds(dst, tm), pl.ds(src, tk)]   # A resident in VMEM
    else:
        a_tile = adj_ref[...]                              # streamed (tm, tk) tile
    a_tile = a_tile.astype(jnp.bfloat16)                   # int8 stream -> bf16 MXU
    acc_ref[...] += jnp.dot(a_tile, xs_ref[slot, pl.ds(src, tk), :],
                            preferred_element_type=jnp.float32)

    # ---- finalize this dst tile for this hop ---------------------------------
    @pl.when(si == n_si - 1)
    def _finish():
        nrm = norm_ref[pl.ds(dst, tm), :]                    # (tm, 1) f32
        x_next = (acc_ref[...] * nrm).astype(jnp.bfloat16)   # X_{hop+1} rows
        # Fold next hop's "xs = norm * X" rescale into this finish (ping-pong
        # write): no serialized O(N*F) rebuild at the hop boundary.
        xs_ref[1 - slot, pl.ds(dst, tm), :] = (
            x_next.astype(jnp.float32) * nrm).astype(xs_ref.dtype)

        @pl.when(hop == 0)   # hop-0 term of the fused concat @ W, plus bias
        def _hop0():
            out_ref[pl.ds(dst, tm), :] = (
                jnp.dot(feat_ref[pl.ds(dst, tm), :], w_ref[0],
                        preferred_element_type=jnp.float32) + b_ref[...])

        out_ref[pl.ds(dst, tm), :] += jnp.dot(
            x_next, w_ref[hop + 1], preferred_element_type=jnp.float32)


def tagconv_pallas(adj, feat, weight, bias, *, k=K):
    """adj: (N,N) dense, adj[dst,src]=1 per edge; feat: (N,F_in);
    weight: (F_out, F_in*(k+1)) PyTorch Linear layout; bias: (F_out,)."""
    assert k >= 1
    n, f_in = feat.shape
    f_out = weight.shape[0]
    assert weight.shape == (f_out, f_in * (k + 1))

    # norm = in_degrees().clamp(min=1) ** -0.5 ; in-degree(dst) = row-sum of A.
    deg = jnp.sum(adj.astype(jnp.float32), axis=1)
    norm = lax.rsqrt(jnp.maximum(deg, 1.0)).reshape(n, 1)

    # ---- pad to TPU-friendly shapes ------------------------------------------
    np_ = _round_up(n, 256)        # node dim multiple of 256 -> tm=256 always
    fp = _round_up(f_in, 128)      # feature lanes
    fop = _round_up(f_out, 128)    # output lanes -> unmasked vst
    tm = 256

    # ---- VMEM plan: resident-A vs streamed-A, reduction tile width -----------
    capacity = _vmem_capacity_bytes()
    ceiling = max(capacity - (16 << 20), 32 << 20)   # leave compiler headroom
    # Conservative: assume 2x buffering of every pipelined operand (the
    # single-buffer hint below may be unavailable in the installed Pallas).
    resid2 = 2 * (np_ * fp * 2                 # feat (bf16)
                  + np_ * 128 * 4              # norm (lane-padded, f32)
                  + (k + 1) * fp * fop * 2     # weights (bf16)
                  + 8 * fop * 4                # bias
                  + np_ * fop * 4)             # resident f32 output block
    scratch = 2 * np_ * fp * 2 + tm * fp * 4   # xs ping-pong + acc
    a_resident = (resid2 + scratch + 2 * np_ * np_) <= ceiling
    if a_resident:
        tk = np_
        total_vmem = resid2 + scratch + 2 * np_ * np_
    else:
        tk = 256
        for cand in (1024, 512):
            if np_ % cand == 0 and resid2 + scratch + 2 * tm * cand <= ceiling:
                tk = cand
                break
        total_vmem = resid2 + scratch + 2 * tm * tk
    vmem_limit = int(min(max(total_vmem + (8 << 20), 32 << 20), ceiling))

    # ---- padded / repacked operands -------------------------------------------
    adj_p = jnp.zeros((np_, np_), jnp.int8).at[:n, :n].set(adj.astype(jnp.int8))
    feat_p = jnp.zeros((np_, fp), jnp.bfloat16).at[:n, :f_in].set(
        feat.astype(jnp.bfloat16))
    norm_p = jnp.ones((np_, 1), jnp.float32).at[:n, :].set(norm)
    # W.T split per hop: (k+1, F_in, F_out), indexed on its leading axis in-kernel.
    w3 = weight.reshape(f_out, k + 1, f_in).transpose(1, 2, 0)
    w_p = jnp.zeros((k + 1, fp, fop), jnp.bfloat16).at[:, :f_in, :f_out].set(
        w3.astype(jnp.bfloat16))
    b_p = jnp.zeros((1, fop), jnp.float32).at[0, :f_out].set(
        bias.astype(jnp.float32))

    grid = (k, np_ // tm, np_ // tk)

    flops = 2 * k * np_ * np_ * fp + 2 * (k + 1) * np_ * fp * fop
    a_bytes = np_ * np_ * (1 if a_resident else k)          # int8 stream
    bytes_accessed = (a_bytes + np_ * fp * 2 + np_ * 4
                      + (k + 1) * fp * fop * 2 + fop * 4 + np_ * fop * 4)

    kernel = functools.partial(_tagconv_kernel, tm=tm, tk=tk,
                               a_resident=a_resident)

    def _call(single_buffer_residents):
        res_kw = ({"pipeline_mode": pl.Buffered(1)}
                  if single_buffer_residents else {})
        if a_resident:
            a_spec = pl.BlockSpec((np_, np_), lambda h, i, s: (0, 0), **res_kw)
        else:
            # The only large HBM stream: (tm, tk) int8 tiles, auto-pipelined.
            a_spec = pl.BlockSpec((tm, tk), lambda h, i, s: (i, s))
        in_specs = [
            a_spec,
            pl.BlockSpec((np_, fp), lambda h, i, s: (0, 0), **res_kw),
            pl.BlockSpec((np_, 1), lambda h, i, s: (0, 0), **res_kw),
            pl.BlockSpec((k + 1, fp, fop), lambda h, i, s: (0, 0, 0), **res_kw),
            pl.BlockSpec((1, fop), lambda h, i, s: (0, 0), **res_kw),
        ]
        return pl.pallas_call(
            kernel,
            out_shape=jax.ShapeDtypeStruct((np_, fop), jnp.float32),
            grid=grid,
            in_specs=in_specs,
            out_specs=pl.BlockSpec((np_, fop), lambda h, i, s: (0, 0)),
            scratch_shapes=[
                pltpu.VMEM((2, np_, fp), jnp.bfloat16),  # xs ping-pong: norm*X_hop
                pltpu.VMEM((tm, fp), jnp.float32),       # per-dst-tile f32 acc
            ],
            compiler_params=pltpu.CompilerParams(
                # All axes "arbitrary": hop-carried VMEM state (xs/out) is shared
                # across dst tiles, so no axis is safely megacore-parallel.
                dimension_semantics=("arbitrary", "arbitrary", "arbitrary"),
                vmem_limit_bytes=vmem_limit,
            ),
            cost_estimate=pl.CostEstimate(
                flops=flops, transcendentals=0, bytes_accessed=bytes_accessed),
        )(adj_p, feat_p, norm_p, w_p, b_p)

    try:
        out_p = _call(True)        # single-buffer the constant residents
    except Exception:
        out_p = _call(False)       # fallback: default buffering (same semantics)

    return out_p[:n, :f_out]


# ---------------------------- references -------------------------------------
def tagconv_ref_f32(adj, feat, weight, bias, *, k=K):
    """Pure-f32 reference mirroring the PyTorch/DGL forward."""
    n = feat.shape[0]
    deg = jnp.sum(adj, axis=1)
    norm = lax.rsqrt(jnp.maximum(deg, 1.0)).reshape(n, 1)
    fstack = [feat]
    for _ in range(k):
        rst = fstack[-1] * norm
        rst = adj @ rst
        rst = rst * norm
        fstack.append(rst)
    return jnp.concatenate(fstack, axis=-1) @ weight.T + bias


def tagconv_ref_bf16(adj, feat, weight, bias, *, k=K):
    """Reference mirroring the kernel's bf16 storage of A / feat / W / hop feats."""
    n, f_in = feat.shape
    f_out = weight.shape[0]
    deg = jnp.sum(adj, axis=1)
    norm = lax.rsqrt(jnp.maximum(deg, 1.0)).reshape(n, 1)
    a = adj.astype(jnp.bfloat16).astype(jnp.float32)
    x0 = feat.astype(jnp.bfloat16).astype(jnp.float32)
    w3 = (weight.reshape(f_out, k + 1, f_in).transpose(1, 2, 0)
          .astype(jnp.bfloat16).astype(jnp.float32))
    y = x0 @ w3[0] + bias
    xs = (x0 * norm).astype(jnp.bfloat16).astype(jnp.float32)
    for h in range(1, k + 1):
        xh = (a @ xs) * norm
        xh_b = xh.astype(jnp.bfloat16).astype(jnp.float32)
        y = y + xh_b @ w3[h]
        xs = (xh_b * norm).astype(jnp.bfloat16).astype(jnp.float32)
    return y


if __name__ == "__main__":
    key = jax.random.PRNGKey(0)
    k_graph, k_feat, k_w, k_b = jax.random.split(key, 4)

    N, in_feats, out_feats = 16, 8, 32

    # Deterministic random graph: dense adjacency, A[dst, src] = 1.0, no self loops.
    adj = jax.random.bernoulli(k_graph, p=0.3, shape=(N, N)).astype(jnp.float32)
    adj = adj * (1.0 - jnp.eye(N, dtype=jnp.float32))

    feat = jax.random.normal(k_feat, (N, in_feats), dtype=jnp.float32)

    # Linear(in_feats*(k+1), out_feats): xavier_normal_(gain=calculate_gain('relu')).
    fan_in = in_feats * (K + 1)
    fan_out = out_feats
    gain = math.sqrt(2.0)
    std = gain * math.sqrt(2.0 / (fan_in + fan_out))
    weight = std * jax.random.normal(k_w, (out_feats, fan_in), dtype=jnp.float32)
    # PyTorch Linear default bias init: U(-1/sqrt(fan_in), 1/sqrt(fan_in)).
    bound = 1.0 / math.sqrt(fan_in)
    bias = jax.random.uniform(k_b, (out_feats,), minval=-bound, maxval=bound,
                              dtype=jnp.float32)

    out = jax.block_until_ready(tagconv_pallas(adj, feat, weight, bias, k=K))
    assert out.shape == (N, out_feats)

    # Strict check vs a reference that mirrors the kernel's bf16 storage.
    ref_b = tagconv_ref_bf16(adj, feat, weight, bias, k=K)
    assert jnp.allclose(out, ref_b, atol=1e-2, rtol=1e-2), "mismatch vs bf16 reference"

    # Semantic sanity check vs the pure-f32 module forward (bf16 storage noise only).
    ref_f = tagconv_ref_f32(adj, feat, weight, bias, k=K)
    assert jnp.allclose(out, ref_f, atol=1e-1, rtol=1e-1), "mismatch vs f32 reference"

    # self._activation is None by default -> no activation applied.
    print("KERNEL_OK")
</pallas_src>

<mosaic_0001>
module attributes {stable_mosaic.version = 11 : i64} {
  func.func @_tagconv_kernel(%arg0: i32, %arg1: i32, %arg2: i32, %arg3: memref<256x256xi8, #tpu.memory_space<vmem>>, %arg4: memref<256x128xbf16, #tpu.memory_space<vmem>>, %arg5: memref<256x1xf32, #tpu.memory_space<vmem>>, %arg6: memref<3x128x128xbf16, #tpu.memory_space<vmem>>, %arg7: memref<1x128xf32, #tpu.memory_space<vmem>>, %arg8: memref<256x128xf32, #tpu.memory_space<vmem>>, %arg9: memref<2x256x128xbf16, #tpu.memory_space<vmem>>, %arg10: memref<256x128xf32, #tpu.memory_space<vmem>>) attributes {dimension_semantics = [#tpu.dimension_semantics<arbitrary>, #tpu.dimension_semantics<arbitrary>, #tpu.dimension_semantics<arbitrary>], iteration_bounds = array<i64: 2, 1, 1>, scalar_prefetch = 0 : i64, scratch_operands = 2 : i64, tpu.core_type = #tpu.core_type<tc>, window_params = [{pipeline_mode = #tpu.pipeline_mode<synchronous>, transform_indices = @transform_0, window_bounds = array<i64: 256, 256>}, {pipeline_mode = #tpu.pipeline_mode<synchronous>, transform_indices = @transform_1, window_bounds = array<i64: 256, 128>}, {pipeline_mode = #tpu.pipeline_mode<synchronous>, transform_indices = @transform_2, window_bounds = array<i64: 256, 1>}, {pipeline_mode = #tpu.pipeline_mode<synchronous>, transform_indices = @transform_3, window_bounds = array<i64: 3, 128, 128>}, {pipeline_mode = #tpu.pipeline_mode<synchronous>, transform_indices = @transform_4, window_bounds = array<i64: 1, 128>}, {pipeline_mode = #tpu.pipeline_mode<synchronous>, transform_indices = @transform_5, window_bounds = array<i64: 256, 128>}]} {
    %c2_i32 = arith.constant 2 : i32
    %0 = arith.remsi %arg0, %c2_i32 : i32
    %c0_i32 = arith.constant 0 : i32
    %1 = arith.cmpi eq, %arg0, %c0_i32 : i32
    %c0_i32_0 = arith.constant 0 : i32
    %2 = arith.cmpi eq, %arg1, %c0_i32_0 : i32
    %3 = arith.andi %1, %2 : i1
    %c0_i32_1 = arith.constant 0 : i32
    %4 = arith.cmpi eq, %arg2, %c0_i32_1 : i32
    %5 = arith.andi %3, %4 : i1
    %6 = arith.extui %5 : i1 to i32
    %c0_i32_2 = arith.constant 0 : i32
    %7 = arith.cmpi ne, %6, %c0_i32_2 : i32
    scf.if %7 {
      %c0_12 = arith.constant 0 : index
      %c0_13 = arith.constant 0 : index
      %30 = vector.load %arg4[%c0_12, %c0_13] : memref<256x128xbf16, #tpu.memory_space<vmem>>, vector<256x128xbf16>
      %31 = arith.extf %30 : vector<256x128xbf16> to vector<256x128xf32>
      %c0_14 = arith.constant 0 : index
      %c0_15 = arith.constant 0 : index
      %32 = vector.load %arg5[%c0_14, %c0_15] : memref<256x1xf32, #tpu.memory_space<vmem>>, vector<256x1xf32>
      %33 = vector.broadcast %32 : vector<256x1xf32> to vector<256x128xf32>
      %34 = arith.mulf %31, %33 : vector<256x128xf32>
      %35 = arith.truncf %34 : vector<256x128xf32> to vector<256x128xbf16>
      %c0_16 = arith.constant 0 : index
      %c0_17 = arith.constant 0 : index
      %c0_18 = arith.constant 0 : index
      %36 = vector.load %arg9[%c0_16, %c0_17, %c0_18] : memref<2x256x128xbf16, #tpu.memory_space<vmem>>, vector<1x256x128xbf16>
      %37 = vector.shape_cast %36 : vector<1x256x128xbf16> to vector<256x128xbf16>
      %38 = vector.shape_cast %35 : vector<256x128xbf16> to vector<1x256x128xbf16>
      tpu.vector_store %arg9[%c0_16, %c0_17, %c0_18], %38 {strides = array<i32>} : memref<2x256x128xbf16, #tpu.memory_space<vmem>>, vector<1x256x128xbf16>,
    } else {
    }
    %c0_i32_3 = arith.constant 0 : i32
    %8 = arith.cmpi eq, %arg2, %c0_i32_3 : i32
    %9 = arith.extui %8 : i1 to i32
    %c0_i32_4 = arith.constant 0 : i32
    %10 = arith.cmpi ne, %9, %c0_i32_4 : i32
    scf.if %10 {
      %cst_12 = arith.constant 0.000000e+00 : f32
      %30 = vector.broadcast %cst_12 : f32 to vector<256x128xf32>
      %c0_13 = arith.constant 0 : index
      %c0_14 = arith.constant 0 : index
      %31 = vector.load %arg10[%c0_13, %c0_14] : memref<256x128xf32, #tpu.memory_space<vmem>>, vector<256x128xf32>
      tpu.vector_store %arg10[%c0_13, %c0_14], %30 {strides = array<i32>} : memref<256x128xf32, #tpu.memory_space<vmem>>, vector<256x128xf32>,
    } else {
    }
    %c256_i32 = arith.constant 256 : i32
    %11 = arith.muli %arg1, %c256_i32 : i32
    %12 = tpu.assume_multiple %11, 256 : i32
    %c256_i32_5 = arith.constant 256 : i32
    %13 = arith.muli %arg2, %c256_i32_5 : i32
    %14 = tpu.assume_multiple %13, 256 : i32
    %15 = arith.index_cast %12 : i32 to index
    %16 = arith.index_cast %14 : i32 to index
    %17 = vector.load %arg3[%15, %16] : memref<256x256xi8, #tpu.memory_space<vmem>>, vector<256x256xi8>
    %18 = arith.sitofp %17 : vector<256x256xi8> to vector<256x256xbf16>
    %c0 = arith.constant 0 : index
    %c0_6 = arith.constant 0 : index
    %19 = vector.load %arg10[%c0, %c0_6] : memref<256x128xf32, #tpu.memory_space<vmem>>, vector<256x128xf32>
    %20 = arith.index_cast %0 : i32 to index
    %21 = arith.index_cast %14 : i32 to index
    %c0_7 = arith.constant 0 : index
    %22 = vector.load %arg9[%20, %21, %c0_7] : memref<2x256x128xbf16, #tpu.memory_space<vmem>>, vector<1x256x128xbf16>
    %23 = vector.shape_cast %22 : vector<1x256x128xbf16> to vector<256x128xbf16>
    %cst = arith.constant dense<0.000000e+00> : vector<256x128xf32>
    %24 = tpu.matmul %18, %23, %cst {dimension_numbers = #tpu.dot_dimension_numbers<[1], [0], [0], [1], [0, 0, 1, 1], [], []>} : vector<256x256xbf16>, vector<256x128xbf16>, vector<256x128xf32> -> vector<256x128xf32>
    %25 = arith.addf %19, %24 : vector<256x128xf32>
    %c0_8 = arith.constant 0 : index
    %c0_9 = arith.constant 0 : index
    %26 = vector.load %arg10[%c0_8, %c0_9] : memref<256x128xf32, #tpu.memory_space<vmem>>, vector<256x128xf32>
    tpu.vector_store %arg10[%c0_8, %c0_9], %25 {strides = array<i32>} : memref<256x128xf32, #tpu.memory_space<vmem>>, vector<256x128xf32>,
    %c0_i32_10 = arith.constant 0 : i32
    %27 = arith.cmpi eq, %arg2, %c0_i32_10 : i32
    %28 = arith.extui %27 : i1 to i32
    %c0_i32_11 = arith.constant 0 : i32
    %29 = arith.cmpi ne, %28, %c0_i32_11 : i32
    scf.if %29 {
      %30 = arith.index_cast %12 : i32 to index
      %c0_12 = arith.constant 0 : index
      %31 = vector.load %arg5[%30, %c0_12] : memref<256x1xf32, #tpu.memory_space<vmem>>, vector<256x1xf32>
      %c0_13 = arith.constant 0 : index
      %c0_14 = arith.constant 0 : index
      %32 = vector.load %arg10[%c0_13, %c0_14] : memref<256x128xf32, #tpu.memory_space<vmem>>, vector<256x128xf32>
      %33 = vector.broadcast %31 : vector<256x1xf32> to vector<256x128xf32>
      %34 = arith.mulf %32, %33 : vector<256x128xf32>
      %35 = arith.truncf %34 : vector<256x128xf32> to vector<256x128xbf16>
      %36 = arith.extf %35 : vector<256x128xbf16> to vector<256x128xf32>
      %37 = vector.broadcast %31 : vector<256x1xf32> to vector<256x128xf32>
      %38 = arith.mulf %36, %37 : vector<256x128xf32>
      %39 = arith.truncf %38 : vector<256x128xf32> to vector<256x128xbf16>
      %c1_i32 = arith.constant 1 : i32
      %40 = arith.subi %c1_i32, %0 : i32
      %41 = arith.index_cast %40 : i32 to index
      %42 = arith.index_cast %12 : i32 to index
      %c0_15 = arith.constant 0 : index
      %43 = vector.load %arg9[%41, %42, %c0_15] : memref<2x256x128xbf16, #tpu.memory_space<vmem>>, vector<1x256x128xbf16>
      %44 = vector.shape_cast %43 : vector<1x256x128xbf16> to vector<256x128xbf16>
      %45 = vector.shape_cast %39 : vector<256x128xbf16> to vector<1x256x128xbf16>
      tpu.vector_store %arg9[%41, %42, %c0_15], %45 {strides = array<i32>} : memref<2x256x128xbf16, #tpu.memory_space<vmem>>, vector<1x256x128xbf16>,
      %c0_i32_16 = arith.constant 0 : i32
      %46 = arith.cmpi eq, %arg0, %c0_i32_16 : i32
      %47 = arith.extui %46 : i1 to i32
      %c0_i32_17 = arith.constant 0 : i32
      %48 = arith.cmpi ne, %47, %c0_i32_17 : i32
      scf.if %48 {
        %59 = arith.index_cast %12 : i32 to index
        %c0_24 = arith.constant 0 : index
        %60 = vector.load %arg4[%59, %c0_24] : memref<256x128xbf16, #tpu.memory_space<vmem>>, vector<256x128xbf16>
        %c0_25 = arith.constant 0 : index
        %c0_26 = arith.constant 0 : index
        %c0_27 = arith.constant 0 : index
        %61 = vector.load %arg6[%c0_25, %c0_26, %c0_27] : memref<3x128x128xbf16, #tpu.memory_space<vmem>>, vector<1x128x128xbf16>
        %62 = vector.shape_cast %61 : vector<1x128x128xbf16> to vector<128x128xbf16>
        %cst_28 = arith.constant dense<0.000000e+00> : vector<256x128xf32>
        %63 = tpu.matmul %60, %62, %cst_28 {dimension_numbers = #tpu.dot_dimension_numbers<[1], [0], [0], [1], [0, 0, 1, 1], [], []>} : vector<256x128xbf16>, vector<128x128xbf16>, vector<256x128xf32> -> vector<256x128xf32>
        %c0_29 = arith.constant 0 : index
        %c0_30 = arith.constant 0 : index
        %64 = vector.load %arg7[%c0_29, %c0_30] : memref<1x128xf32, #tpu.memory_space<vmem>>, vector<1x128xf32>
        %65 = vector.broadcast %64 : vector<1x128xf32> to vector<256x128xf32>
        %66 = arith.addf %63, %65 : vector<256x128xf32>
        %67 = arith.index_cast %12 : i32 to index
        %c0_31 = arith.constant 0 : index
        %68 = vector.load %arg8[%67, %c0_31] : memref<256x128xf32, #tpu.memory_space<vmem>>, vector<256x128xf32>
        tpu.vector_store %arg8[%67, %c0_31], %66 {strides = array<i32>} : memref<256x128xf32, #tpu.memory_space<vmem>>, vector<256x128xf32>,
      } else {
      }
      %49 = arith.index_cast %12 : i32 to index
      %c0_18 = arith.constant 0 : index
      %50 = vector.load %arg8[%49, %c0_18] : memref<256x128xf32, #tpu.memory_space<vmem>>, vector<256x128xf32>
      %c1_i32_19 = arith.constant 1 : i32
      %51 = arith.addi %arg0, %c1_i32_19 : i32
      %52 = arith.index_cast %51 : i32 to index
      %c0_20 = arith.constant 0 : index
      %c0_21 = arith.constant 0 : index
      %53 = vector.load %arg6[%52, %c0_20, %c0_21] : memref<3x128x128xbf16, #tpu.memory_space<vmem>>, vector<1x128x128xbf16>
      %54 = vector.shape_cast %53 : vector<1x128x128xbf16> to vector<128x128xbf16>
      %cst_22 = arith.constant dense<0.000000e+00> : vector<256x128xf32>
      %55 = tpu.matmul %35, %54, %cst_22 {dimension_numbers = #tpu.dot_dimension_numbers<[1], [0], [0], [1], [0, 0, 1, 1], [], []>} : vector<256x128xbf16>, vector<128x128xbf16>, vector<256x128xf32> -> vector<256x128xf32>
      %56 = arith.addf %50, %55 : vector<256x128xf32>
      %57 = arith.index_cast %12 : i32 to index
      %c0_23 = arith.constant 0 : index
      %58 = vector.load %arg8[%57, %c0_23] : memref<256x128xf32, #tpu.memory_space<vmem>>, vector<256x128xf32>
      tpu.vector_store %arg8[%57, %c0_23], %56 {strides = array<i32>} : memref<256x128xf32, #tpu.memory_space<vmem>>, vector<256x128xf32>,
    } else {
    }
    return
  }
  func.func @transform_0(%arg0: i32, %arg1: i32, %arg2: i32) -> (i32, i32) {
    %c0_i32 = arith.constant 0 : i32
    %c0_i32_0 = arith.constant 0 : i32
    %c0_i32_1 = arith.constant 0 : i32
    return %c0_i32, %c0_i32_0 : i32, i32
  }
  func.func @transform_1(%arg0: i32, %arg1: i32, %arg2: i32) -> (i32, i32) {
    %c0_i32 = arith.constant 0 : i32
    %c0_i32_0 = arith.constant 0 : i32
    %c0_i32_1 = arith.constant 0 : i32
    return %c0_i32, %c0_i32_0 : i32, i32
  }
  func.func @transform_2(%arg0: i32, %arg1: i32, %arg2: i32) -> (i32, i32) {
    %c0_i32 = arith.constant 0 : i32
    %c0_i32_0 = arith.constant 0 : i32
    %c0_i32_1 = arith.constant 0 : i32
    return %c0_i32, %c0_i32_0 : i32, i32
  }
  func.func @transform_3(%arg0: i32, %arg1: i32, %arg2: i32) -> (i32, i32, i32) {
    %c0_i32 = arith.constant 0 : i32
    %c0_i32_0 = arith.constant 0 : i32
    %c0_i32_1 = arith.constant 0 : i32
    %c0_i32_2 = arith.constant 0 : i32
    return %c0_i32, %c0_i32_0, %c0_i32_1 : i32, i32, i32
  }
  func.func @transform_4(%arg0: i32, %arg1: i32, %arg2: i32) -> (i32, i32) {
    %c0_i32 = arith.constant 0 : i32
    %c0_i32_0 = arith.constant 0 : i32
    %c0_i32_1 = arith.constant 0 : i32
    return %c0_i32, %c0_i32_0 : i32, i32
  }
  func.func @transform_5(%arg0: i32, %arg1: i32, %arg2: i32) -> (i32, i32) {
    %c0_i32 = arith.constant 0 : i32
    %c0_i32_0 = arith.constant 0 : i32
    %c0_i32_1 = arith.constant 0 : i32
    return %c0_i32, %c0_i32_0 : i32, i32
  }
}

module attributes {stable_mosaic.version = 11 : i64} {
  func.func @_tagconv_kernel(%arg0: i32, %arg1: i32, %arg2: i32, %arg3: memref<256x256xi8, #tpu.memory_space<vmem>>, %arg4: memref<256x128xbf16, #tpu.memory_space<vmem>>, %arg5: memref<256x1xf32, #tpu.memory_space<vmem>>, %arg6: memref<3x128x128xbf16, #tpu.memory_space<vmem>>, %arg7: memref<1x128xf32, #tpu.memory_space<vmem>>, %arg8: memref<256x128xf32, #tpu.memory_space<vmem>>, %arg9: memref<2x256x128xbf16, #tpu.memory_space<vmem>>, %arg10: memref<256x128xf32, #tpu.memory_space<vmem>>) attributes {dimension_semantics = [#tpu.dimension_semantics<arbitrary>, #tpu.dimension_semantics<arbitrary>, #tpu.dimension_semantics<arbitrary>], iteration_bounds = array<i64: 2, 1, 1>, scalar_prefetch = 0 : i64, scratch_operands = 2 : i64, tpu.core_type = #tpu.core_type<tc>, window_params = [{pipeline_mode = #tpu.pipeline_mode<synchronous>, transform_indices = @transform_0, window_bounds = array<i64: 256, 256>}, {pipeline_mode = #tpu.pipeline_mode<synchronous>, transform_indices = @transform_1, window_bounds = array<i64: 256, 128>}, {pipeline_mode = #tpu.pipeline_mode<synchronous>, transform_indices = @transform_2, window_bounds = array<i64: 256, 1>}, {pipeline_mode = #tpu.pipeline_mode<synchronous>, transform_indices = @transform_3, window_bounds = array<i64: 3, 128, 128>}, {pipeline_mode = #tpu.pipeline_mode<synchronous>, transform_indices = @transform_4, window_bounds = array<i64: 1, 128>}, {pipeline_mode = #tpu.pipeline_mode<synchronous>, transform_indices = @transform_5, window_bounds = array<i64: 256, 128>}]} {
    %c2_i32 = arith.constant 2 : i32
    %0 = arith.remsi %arg0, %c2_i32 : i32
    %c0_i32 = arith.constant 0 : i32
    %1 = arith.cmpi eq, %arg0, %c0_i32 : i32
    %c0_i32_0 = arith.constant 0 : i32
    %2 = arith.cmpi eq, %arg1, %c0_i32_0 : i32
    %3 = arith.andi %1, %2 : i1
    %c0_i32_1 = arith.constant 0 : i32
    %4 = arith.cmpi eq, %arg2, %c0_i32_1 : i32
    %5 = arith.andi %3, %4 : i1
    %6 = arith.extui %5 : i1 to i32
    %c0_i32_2 = arith.constant 0 : i32
    %7 = arith.cmpi ne, %6, %c0_i32_2 : i32
    scf.if %7 {
      %c0_12 = arith.constant 0 : index
      %c0_13 = arith.constant 0 : index
      %30 = vector.load %arg4[%c0_12, %c0_13] : memref<256x128xbf16, #tpu.memory_space<vmem>>, vector<256x128xbf16>
      %31 = arith.extf %30 : vector<256x128xbf16> to vector<256x128xf32>
      %c0_14 = arith.constant 0 : index
      %c0_15 = arith.constant 0 : index
      %32 = vector.load %arg5[%c0_14, %c0_15] : memref<256x1xf32, #tpu.memory_space<vmem>>, vector<256x1xf32>
      %33 = vector.broadcast %32 : vector<256x1xf32> to vector<256x128xf32>
      %34 = arith.mulf %31, %33 : vector<256x128xf32>
      %35 = arith.truncf %34 : vector<256x128xf32> to vector<256x128xbf16>
      %c0_16 = arith.constant 0 : index
      %c0_17 = arith.constant 0 : index
      %c0_18 = arith.constant 0 : index
      %36 = vector.load %arg9[%c0_16, %c0_17, %c0_18] : memref<2x256x128xbf16, #tpu.memory_space<vmem>>, vector<1x256x128xbf16>
      %37 = vector.shape_cast %36 : vector<1x256x128xbf16> to vector<256x128xbf16>
      %38 = vector.shape_cast %35 : vector<256x128xbf16> to vector<1x256x128xbf16>
      tpu.vector_store %arg9[%c0_16, %c0_17, %c0_18], %38 {strides = array<i32>} : memref<2x256x128xbf16, #tpu.memory_space<vmem>>, vector<1x256x128xbf16>,
    } else {
    }
    %c0_i32_3 = arith.constant 0 : i32
    %8 = arith.cmpi eq, %arg2, %c0_i32_3 : i32
    %9 = arith.extui %8 : i1 to i32
    %c0_i32_4 = arith.constant 0 : i32
    %10 = arith.cmpi ne, %9, %c0_i32_4 : i32
    scf.if %10 {
      %cst_12 = arith.constant 0.000000e+00 : f32
      %30 = vector.broadcast %cst_12 : f32 to vector<256x128xf32>
      %c0_13 = arith.constant 0 : index
      %c0_14 = arith.constant 0 : index
      %31 = vector.load %arg10[%c0_13, %c0_14] : memref<256x128xf32, #tpu.memory_space<vmem>>, vector<256x128xf32>
      tpu.vector_store %arg10[%c0_13, %c0_14], %30 {strides = array<i32>} : memref<256x128xf32, #tpu.memory_space<vmem>>, vector<256x128xf32>,
    } else {
    }
    %c256_i32 = arith.constant 256 : i32
    %11 = arith.muli %arg1, %c256_i32 : i32
    %12 = tpu.assume_multiple %11, 256 : i32
    %c256_i32_5 = arith.constant 256 : i32
    %13 = arith.muli %arg2, %c256_i32_5 : i32
    %14 = tpu.assume_multiple %13, 256 : i32
    %15 = arith.index_cast %12 : i32 to index
    %16 = arith.index_cast %14 : i32 to index
    %17 = vector.load %arg3[%15, %16] : memref<256x256xi8, #tpu.memory_space<vmem>>, vector<256x256xi8>
    %18 = arith.sitofp %17 : vector<256x256xi8> to vector<256x256xbf16>
    %c0 = arith.constant 0 : index
    %c0_6 = arith.constant 0 : index
    %19 = vector.load %arg10[%c0, %c0_6] : memref<256x128xf32, #tpu.memory_space<vmem>>, vector<256x128xf32>
    %20 = arith.index_cast %0 : i32 to index
    %21 = arith.index_cast %14 : i32 to index
    %c0_7 = arith.constant 0 : index
    %22 = vector.load %arg9[%20, %21, %c0_7] : memref<2x256x128xbf16, #tpu.memory_space<vmem>>, vector<1x256x128xbf16>
    %23 = vector.shape_cast %22 : vector<1x256x128xbf16> to vector<256x128xbf16>
    %cst = arith.constant dense<0.000000e+00> : vector<256x128xf32>
    %24 = tpu.matmul %18, %23, %cst {dimension_numbers = #tpu.dot_dimension_numbers<[1], [0], [0], [1], [0, 0, 1, 1], [], []>} : vector<256x256xbf16>, vector<256x128xbf16>, vector<256x128xf32> -> vector<256x128xf32>
    %25 = arith.addf %19, %24 : vector<256x128xf32>
    %c0_8 = arith.constant 0 : index
    %c0_9 = arith.constant 0 : index
    %26 = vector.load %arg10[%c0_8, %c0_9] : memref<256x128xf32, #tpu.memory_space<vmem>>, vector<256x128xf32>
    tpu.vector_store %arg10[%c0_8, %c0_9], %25 {strides = array<i32>} : memref<256x128xf32, #tpu.memory_space<vmem>>, vector<256x128xf32>,
    %c0_i32_10 = arith.constant 0 : i32
    %27 = arith.cmpi eq, %arg2, %c0_i32_10 : i32
    %28 = arith.extui %27 : i1 to i32
    %c0_i32_11 = arith.constant 0 : i32
    %29 = arith.cmpi ne, %28, %c0_i32_11 : i32
    scf.if %29 {
      %30 = arith.index_cast %12 : i32 to index
      %c0_12 = arith.constant 0 : index
      %31 = vector.load %arg5[%30, %c0_12] : memref<256x1xf32, #tpu.memory_space<vmem>>, vector<256x1xf32>
      %c0_13 = arith.constant 0 : index
      %c0_14 = arith.constant 0 : index
      %32 = vector.load %arg10[%c0_13, %c0_14] : memref<256x128xf32, #tpu.memory_space<vmem>>, vector<256x128xf32>
      %33 = vector.broadcast %31 : vector<256x1xf32> to vector<256x128xf32>
      %34 = arith.mulf %32, %33 : vector<256x128xf32>
      %35 = arith.truncf %34 : vector<256x128xf32> to vector<256x128xbf16>
      %36 = arith.extf %35 : vector<256x128xbf16> to vector<256x128xf32>
      %37 = vector.broadcast %31 : vector<256x1xf32> to vector<256x128xf32>
      %38 = arith.mulf %36, %37 : vector<256x128xf32>
      %39 = arith.truncf %38 : vector<256x128xf32> to vector<256x128xbf16>
      %c1_i32 = arith.constant 1 : i32
      %40 = arith.subi %c1_i32, %0 : i32
      %41 = arith.index_cast %40 : i32 to index
      %42 = arith.index_cast %12 : i32 to index
      %c0_15 = arith.constant 0 : index
      %43 = vector.load %arg9[%41, %42, %c0_15] : memref<2x256x128xbf16, #tpu.memory_space<vmem>>, vector<1x256x128xbf16>
      %44 = vector.shape_cast %43 : vector<1x256x128xbf16> to vector<256x128xbf16>
      %45 = vector.shape_cast %39 : vector<256x128xbf16> to vector<1x256x128xbf16>
      tpu.vector_store %arg9[%41, %42, %c0_15], %45 {strides = array<i32>} : memref<2x256x128xbf16, #tpu.memory_space<vmem>>, vector<1x256x128xbf16>,
      %c0_i32_16 = arith.constant 0 : i32
      %46 = arith.cmpi eq, %arg0, %c0_i32_16 : i32
      %47 = arith.extui %46 : i1 to i32
      %c0_i32_17 = arith.constant 0 : i32
      %48 = arith.cmpi ne, %47, %c0_i32_17 : i32
      scf.if %48 {
        %59 = arith.index_cast %12 : i32 to index
        %c0_24 = arith.constant 0 : index
        %60 = vector.load %arg4[%59, %c0_24] : memref<256x128xbf16, #tpu.memory_space<vmem>>, vector<256x128xbf16>
        %c0_25 = arith.constant 0 : index
        %c0_26 = arith.constant 0 : index
        %c0_27 = arith.constant 0 : index
        %61 = vector.load %arg6[%c0_25, %c0_26, %c0_27] : memref<3x128x128xbf16, #tpu.memory_space<vmem>>, vector<1x128x128xbf16>
        %62 = vector.shape_cast %61 : vector<1x128x128xbf16> to vector<128x128xbf16>
        %cst_28 = arith.constant dense<0.000000e+00> : vector<256x128xf32>
        %63 = tpu.matmul %60, %62, %cst_28 {dimension_numbers = #tpu.dot_dimension_numbers<[1], [0], [0], [1], [0, 0, 1, 1], [], []>} : vector<256x128xbf16>, vector<128x128xbf16>, vector<256x128xf32> -> vector<256x128xf32>
        %c0_29 = arith.constant 0 : index
        %c0_30 = arith.constant 0 : index
        %64 = vector.load %arg7[%c0_29, %c0_30] : memref<1x128xf32, #tpu.memory_space<vmem>>, vector<1x128xf32>
        %65 = vector.broadcast %64 : vector<1x128xf32> to vector<256x128xf32>
        %66 = arith.addf %63, %65 : vector<256x128xf32>
        %67 = arith.index_cast %12 : i32 to index
        %c0_31 = arith.constant 0 : index
        %68 = vector.load %arg8[%67, %c0_31] : memref<256x128xf32, #tpu.memory_space<vmem>>, vector<256x128xf32>
        tpu.vector_store %arg8[%67, %c0_31], %66 {strides = array<i32>} : memref<256x128xf32, #tpu.memory_space<vmem>>, vector<256x128xf32>,
      } else {
      }
      %49 = arith.index_cast %12 : i32 to index
      %c0_18 = arith.constant 0 : index
      %50 = vector.load %arg8[%49, %c0_18] : memref<256x128xf32, #tpu.memory_space<vmem>>, vector<256x128xf32>
      %c1_i32_19 = arith.constant 1 : i32
      %51 = arith.addi %arg0, %c1_i32_19 : i32
      %52 = arith.index_cast %51 : i32 to index
      %c0_20 = arith.constant 0 : index
      %c0_21 = arith.constant 0 : index
      %53 = vector.load %arg6[%52, %c0_20, %c0_21] : memref<3x128x128xbf16, #tpu.memory_space<vmem>>, vector<1x128x128xbf16>
      %54 = vector.shape_cast %53 : vector<1x128x128xbf16> to vector<128x128xbf16>
      %cst_22 = arith.constant dense<0.000000e+00> : vector<256x128xf32>
      %55 = tpu.matmul %35, %54, %cst_22 {dimension_numbers = #tpu.dot_dimension_numbers<[1], [0], [0], [1], [0, 0, 1, 1], [], []>} : vector<256x128xbf16>, vector<128x128xbf16>, vector<256x128xf32> -> vector<256x128xf32>
      %56 = arith.addf %50, %55 : vector<256x128xf32>
      %57 = arith.index_cast %12 : i32 to index
      %c0_23 = arith.constant 0 : index
      %58 = vector.load %arg8[%57, %c0_23] : memref<256x128xf32, #tpu.memory_space<vmem>>, vector<256x128xf32>
      tpu.vector_store %arg8[%57, %c0_23], %56 {strides = array<i32>} : memref<256x128xf32, #tpu.memory_space<vmem>>, vector<256x128xf32>,
    } else {
    }
    return
  }
  func.func @transform_0(%arg0: i32, %arg1: i32, %arg2: i32) -> (i32, i32) {
    %c0_i32 = arith.constant 0 : i32
    %c0_i32_0 = arith.constant 0 : i32
    %c0_i32_1 = arith.constant 0 : i32
    return %c0_i32, %c0_i32_0 : i32, i32
  }
  func.func @transform_1(%arg0: i32, %arg1: i32, %arg2: i32) -> (i32, i32) {
    %c0_i32 = arith.constant 0 : i32
    %c0_i32_0 = arith.constant 0 : i32
    %c0_i32_1 = arith.constant 0 : i32
    return %c0_i32, %c0_i32_0 : i32, i32
  }
  func.func @transform_2(%arg0: i32, %arg1: i32, %arg2: i32) -> (i32, i32) {
    %c0_i32 = arith.constant 0 : i32
    %c0_i32_0 = arith.constant 0 : i32
    %c0_i32_1 = arith.constant 0 : i32
    return %c0_i32, %c0_i32_0 : i32, i32
  }
  func.func @transform_3(%arg0: i32, %arg1: i32, %arg2: i32) -> (i32, i32, i32) {
    %c0_i32 = arith.constant 0 : i32
    %c0_i32_0 = arith.constant 0 : i32
    %c0_i32_1 = arith.constant 0 : i32
    %c0_i32_2 = arith.constant 0 : i32
    return %c0_i32, %c0_i32_0, %c0_i32_1 : i32, i32, i32
  }
  func.func @transform_4(%arg0: i32, %arg1: i32, %arg2: i32) -> (i32, i32) {
    %c0_i32 = arith.constant 0 : i32
    %c0_i32_0 = arith.constant 0 : i32
    %c0_i32_1 = arith.constant 0 : i32
    return %c0_i32, %c0_i32_0 : i32, i32
  }
  func.func @transform_5(%arg0: i32, %arg1: i32, %arg2: i32) -> (i32, i32) {
    %c0_i32 = arith.constant 0 : i32
    %c0_i32_0 = arith.constant 0 : i32
    %c0_i32_1 = arith.constant 0 : i32
    return %c0_i32, %c0_i32_0 : i32, i32
  }
}

</mosaic_0001>

<bundles_post_ra>
// kernel: tpu_custom_call.1
= control target key start
LH: loop header
LB: loop body
LE: loop exit
PB: predicated region body
PF: predicated region fallthrough
CT: control target
= control target key end

     0   :  { %10 = vsyncpa [#allocation5], 0  ;;  %s4116_s0 = inlined_call_operand.hbm [shape: s8[256,256], index: 0, kind: input, shape index: {}]   ;;  %s4117_s1 = inlined_call_operand.hbm [shape: bf16[256,128], index: 1, kind: input, shape index: {}]   ;;  %s4118_s2 = inlined_call_operand.vmem [shape: f32[256,1], index: 2, kind: input, shape index: {}]   ;;  %s4119_s3 = inlined_call_operand.vmem [shape: bf16[3,128,128], index: 3, kind: input, shape index: {}]   ;;  %s4120_s4 = inlined_call_operand.vmem [shape: f32[1,128], index: 4, kind: input, shape index: {}]   ;;  %s4121_s5 = inlined_call_operand.hbm [shape: f32[256,128], index: 5, kind: output, shape index: {}]  }
   0x1   :  { %11 = vsyncpa [#allocation8], 0 }
   0x2   :  { %12 = vsyncpa [#allocation6], 0  ;;  %s3567_s18 = smov 0   ;;  %s3569_s19 = smov 0  }
   0x3   :  { %s3571_s20 = smov 0  }
   0x4 LB: > { %s2512_s21 = sadd.s32 4294967295, %s3524_s20   ;;  %s37_s22 = sadd.s32 1, %s3520_s19  ;;  %s3524_s20 = sphi %s3571_s20, %s18_s20   ;;  %s3520_s19 = sphi %s3569_s19, %s4127_s19   ;;  %s3516_s18 = sphi %s3567_s18, %s4126_s18  }
   0x5   : > { %p39_p0 = scmp.ge.s32.totalorder %s37_s22, 2  ;;  %p2513_p1 = scmp.ge.s32.totalorder %s3524_s20, 1 }
   0x6   : > { %p168_p2 = scmp.lt.s32.totalorder %s3524_s20, 3  ;;  %p3594_p4 = scmp.eq.s32.totalorder %s2512_s21, 0 }
   0x7   : > { %s4129_s22 = smov (%p39_p0, %s37_s22), 0  ;;  %s3526_s25 = smov [#allocation4]  }
   0x8   : > { %p3588_p3 = pnand %p2513_p1, %p168_p2  ;;  %s180_s26 = sshll.u32 %s3526_s25, 4  ;;  %s181_s26 = int_to_ptr.vmem [resolvable:$true] %s180_s26 }
   0x9   : > { %s3527_s28 = smov [#allocation7]   ;;  %s3425_s30 = scalar_lea.vmem %s181_s26, 2048 }
   0xa   : > { %p3314_p5 = pneg %p3588_p3  ;;  %s193_s29 = sshll.u32 %s3527_s28, 4  ;;  %s194_s29 = int_to_ptr.vmem [resolvable:$true] %s193_s29 }
   0xb   : > { %p3426_p8 = scmp.ne.s32.totalorder %s181_s26, %s3425_s30  ;;  %p3433_p11 = scmp.lt.s32.totalorder %s181_s26, %s181_s26 }
   0xc   : > { %p3602_p6 = pnand %p3594_p4, %p3314_p5  ;;  %p3434_p12 = scmp.lt.s32.totalorder %s3425_s30, %s3425_s30 }
   0xe   : > { %p3416_p7 = pneg %p3602_p6  ;;  %p3435_p13 = por %p3434_p12, %p3433_p11 }
  0x10   : > { %p3428_p9 = pnand %p3426_p8, %p3416_p7 }
  0x12   : > { %p3429_p10 = pneg %p3428_p9 }
  0x14   : > { %p3436_p0 = pnand %p3435_p13, %p3429_p10 }
  0x16   : > { %3439 = shalt.err (!%p3436_p0)
}
  0x17   : > { %s3528_s6 = smov 256   ;;  %s3529_s7 = smov 16  }
  0x18   : > { %3317 = dma.hbm_to_vmem [thread:$0]  (!%p3602_p6), %s4116_s0, 2048, %s181_s26, [#allocation5], %s3528_s6, %s3528_s6, %s3529_s7  }
  0x19   : > { %s3451_s10 = scalar_lea.vmem %s194_s29, 2048  ;;  %p3459_p8 = scmp.lt.s32.totalorder %s194_s29, %s194_s29 }
  0x1a   : > { %p3452_p1 = scmp.ne.s32.totalorder %s194_s29, %s3451_s10  ;;  %p3460_p9 = scmp.lt.s32.totalorder %s3451_s10, %s3451_s10 }
  0x1c   : > { %p3454_p2 = pnand %p3452_p1, %p3416_p7  ;;  %p3461_p11 = por %p3460_p9, %p3459_p8 }
  0x1e   : > { %p3455_p5 = pneg %p3454_p2 }
  0x20   : > { %p3462_p10 = pnand %p3461_p11, %p3455_p5 }
  0x22   : > { %3465 = shalt.err (!%p3462_p10)
}
  0x23   : > { %s3530_s11 = smov 64   ;;  %s3531_s12 = smov 4  }
  0x24   : > { %3320 = dma.hbm_to_vmem [thread:$0]  (!%p3602_p6), %s4117_s1, 2048, %s194_s29, [#allocation8], %s3530_s11, %s3530_s11, %s3531_s12  }
  0x25   : > { %218 = sbr.rel (%p3588_p3) target bundleno = 1071 (0x42f), region = 40 }
  0x2a   : > { %3503 = dma.done.wait (%p3594_p4), [#allocation5], 2048  }
  0x2b   : > { %3505 = vsyncadd (%p3594_p4), [#allocation5], 4294965248 }
  0x2c   : > { %3507 = dma.done.wait (%p3594_p4), [#allocation8], 2048  }
  0x2d   : > { %3509 = vsyncadd (%p3594_p4), [#allocation8], 4294965248  ;;  %p241_p6 = scmp.lt.s32.totalorder %s3516_s18, 0  ;;  %s242_s15 = ssub.s32 0, %s3516_s18 }
  0x2e   : > { %s2519_s16 = smin.u32 %s3516_s18, %s242_s15  ;;  %p247_p3 = scmp.eq.s32.totalorder %s3516_s18, 0 }
  0x2f   : > { %s244_s17 = sand.u32 1, %s2519_s16   ;;  %v322_v0 = vld [vmem:[%s4118_s2 + $0x10] sm:$0xff] (%p247_p3)  ;;  %v320_v1 = vld [vmem:[%s4118_s2] sm:$0xff] (%p247_p3)  ;;  %v3532_v2 = vmov (%p247_p3), 0   ;;  %v323_v3 = vld [vmem:[%s4118_s2 + $0x18] sm:$0xff] (%p247_p3) }
  0x30   : > { %s245_s23 = ssub.s32 0, %s244_s17  ;;  %255 = sbr.rel (!%p247_p3) target bundleno = 238 (0xee), region = 52  ;;  %3363 = vset.pattern.permute.xlu1 (%p247_p3), %v3532_v2  ;;  %3362 = vset.pattern.permute.xlu0 (%p247_p3), %v3532_v2  ;;  %v321_v4 = vld [vmem:[%s4118_s2 + $0x8] sm:$0xff] (%p247_p3)  ;;  %v324_v6 = vld [vmem:[%s4118_s2 + $0x20] sm:$0xff] (%p247_p3)  ;;  %v327_v7 = vld [vmem:[%s4118_s2 + $0x38] sm:$0xff] (%p247_p3) }
  0x31   : > { %s4131_s23 = smov (!%p241_p6, %s245_s23), %s244_s17  ;;  %364 = vperm.xlu1 (%p247_p3), %3363, %v322_v0   ;;  %354 = vperm.xlu0 (%p247_p3), %3362, %v320_v1   ;;  %v325_v5 = vld [vmem:[%s4118_s2 + $0x28] sm:$0xff] (%p247_p3)  ;;  %v326_v8 = vld [vmem:[%s4118_s2 + $0x30] sm:$0xff] (%p247_p3)  ;;  %v328_v10 = vld [vmem:[%s4118_s2 + $0x40] sm:$0xff] (%p247_p3) }
  0x32   : > { %v329_v9 = vld [vmem:[%s4118_s2 + $0x48] sm:$0xff] (%p247_p3)  ;;  %v331_v11 = vld [vmem:[%s4118_s2 + $0x58] sm:$0xff] (%p247_p3)  ;;  %v330_v12 = vld [vmem:[%s4118_s2 + $0x50] sm:$0xff] (%p247_p3) }
  0x33   : > { %v333_v13 = vld [vmem:[%s4118_s2 + $0x68] sm:$0xff] (%p247_p3)  ;;  %v332_v14 = vld [vmem:[%s4118_s2 + $0x60] sm:$0xff] (%p247_p3)  ;;  %v335_v15 = vld [vmem:[%s4118_s2 + $0x78] sm:$0xff] (%p247_p3) }
  0x34   : > { %v334_v16 = vld [vmem:[%s4118_s2 + $0x70] sm:$0xff] (%p247_p3)  ;;  %v337_v17 = vld [vmem:[%s4118_s2 + $0x88] sm:$0xff] (%p247_p3)  ;;  %v336_v18 = vld [vmem:[%s4118_s2 + $0x80] sm:$0xff] (%p247_p3) }
  0x35   : > { %369 = vperm.xlu1 %3363, %v323_v3   ;;  %359 = vperm.xlu0 %3362, %v321_v4   ;;  %v339_v19 = vld [vmem:[%s4118_s2 + $0x98] sm:$0xff]  ;;  %v338_v20 = vld [vmem:[%s4118_s2 + $0x90] sm:$0xff]  ;;  %v341_v21 = vld [vmem:[%s4118_s2 + $0xa8] sm:$0xff] }
  0x36   : > { %v340_v22 = vld [vmem:[%s4118_s2 + $0xa0] sm:$0xff]  ;;  %v343_v23 = vld [vmem:[%s4118_s2 + $0xb8] sm:$0xff]  ;;  %v342_v24 = vld [vmem:[%s4118_s2 + $0xb0] sm:$0xff] }
  0x37   : > { %v345_v25 = vld [vmem:[%s4118_s2 + $0xc8] sm:$0xff]  ;;  %v344_v26 = vld [vmem:[%s4118_s2 + $0xc0] sm:$0xff]  ;;  %v347_v27 = vld [vmem:[%s4118_s2 + $0xd8] sm:$0xff] }
  0x38   : > { %v346_v28 = vld [vmem:[%s4118_s2 + $0xd0] sm:$0xff]  ;;  %v349_v29 = vld [vmem:[%s4118_s2 + $0xe8] sm:$0xff]  ;;  %v348_v30 = vld [vmem:[%s4118_s2 + $0xe0] sm:$0xff] }
  0x39   : > { %379 = vperm.xlu1 %3363, %v325_v5   ;;  %374 = vperm.xlu0 %3362, %v324_v6   ;;  %v351_v31 = vld [vmem:[%s4118_s2 + $0xf8] sm:$0xff]  ;;  %v350_v32 = vld [vmem:[%s4118_s2 + $0xf0] sm:$0xff]  ;;  %v2953_v33 = vld [vmem:[#allocation7 + $0x8] sm:$0xff]  }
  0x3a   : > { %v2730_v34 = vld [vmem:[#allocation7] sm:$0xff]   ;;  %v2735_v37 = vunpack.c.l.bf16 %v2953_v33  ;;  %v2736_v39 = vunpack.c.h.bf16 %v2953_v33  ;;  %v2954_v41 = vld [vmem:[#allocation7 + $0x10] sm:$0xff]   ;;  %v2955_v50 = vld [vmem:[#allocation7 + $0x18] sm:$0xff]  }
  0x3b   : > { %v2731_v38 = vunpack.c.l.bf16 %v2730_v34  ;;  %v2732_v40 = vunpack.c.h.bf16 %v2730_v34  ;;  %v2740_v44 = vunpack.c.h.bf16 %v2954_v41  ;;  %v2739_v45 = vunpack.c.l.bf16 %v2954_v41  ;;  %v2956_v59 = vld [vmem:[#allocation7 + $0x20] sm:$0xff]   ;;  %v2957_v3 = vld [vmem:[#allocation7 + $0x28] sm:$0xff]  }
  0x3c   : > { %v2744_v57 = vunpack.c.h.bf16 %v2955_v50  ;;  %v2743_v58 = vunpack.c.l.bf16 %v2955_v50  ;;  %v2748_v1 = vunpack.c.h.bf16 %v2956_v59  ;;  %v2747_v2 = vunpack.c.l.bf16 %v2956_v59  ;;  %v2964_v59 = vld [vmem:[#allocation7 + $0x60] sm:$0xff]  }
  0x3d   : > { %389 = vperm.xlu1 %3363, %v327_v7   ;;  %384 = vperm.xlu0 %3362, %v326_v8  }
  0x41   : > { %399 = vperm.xlu1 %3363, %v329_v9   ;;  %394 = vperm.xlu0 %3362, %v328_v10   ;;  %v2752_v9 = vunpack.c.h.bf16 %v2957_v3  ;;  %v2751_v10 = vunpack.c.l.bf16 %v2957_v3  ;;  %v2965_v3 = vld [vmem:[#allocation7 + $0x68] sm:$0xff]  }
  0x45   : > { %409 = vperm.xlu1 %3363, %v331_v11   ;;  %404 = vperm.xlu0 %3362, %v330_v12   ;;  %v2958_v11 = vld [vmem:[#allocation7 + $0x30] sm:$0xff]  }
  0x49   : > { %419 = vperm.xlu1 %3363, %v333_v13   ;;  %414 = vperm.xlu0 %3362, %v332_v14  }
  0x4d   : > { %429 = vperm.xlu1 %3363, %v335_v15   ;;  %424 = vperm.xlu0 %3362, %v334_v16  }
  0x51   : > { %439 = vperm.xlu1 %3363, %v337_v17   ;;  %434 = vperm.xlu0 %3362, %v336_v18   ;;  %v2756_v17 = vunpack.c.h.bf16 %v2958_v11  ;;  %v2755_v18 = vunpack.c.l.bf16 %v2958_v11  ;;  %v2966_v11 = vld [vmem:[#allocation7 + $0x70] sm:$0xff]  }
  0x55   : > { %449 = vperm.xlu1 %3363, %v339_v19   ;;  %444 = vperm.xlu0 %3362, %v338_v20   ;;  %v2959_v19 = vld [vmem:[#allocation7 + $0x38] sm:$0xff]  }
  0x59   : > { %459 = vperm.xlu1 %3363, %v341_v21   ;;  %454 = vperm.xlu0 %3362, %v340_v22  }
  0x5d   : > { %469 = vperm.xlu1 %3363, %v343_v23   ;;  %464 = vperm.xlu0 %3362, %v342_v24  }
  0x61   : > { %479 = vperm.xlu1 %3363, %v345_v25   ;;  %474 = vperm.xlu0 %3362, %v344_v26   ;;  %v2760_v25 = vunpack.c.h.bf16 %v2959_v19  ;;  %v2759_v26 = vunpack.c.l.bf16 %v2959_v19  ;;  %v2967_v19 = vld [vmem:[#allocation7 + $0x78] sm:$0xff]  }
  0x65   : > { %489 = vperm.xlu1 %3363, %v347_v27   ;;  %484 = vperm.xlu0 %3362, %v346_v28   ;;  %v2960_v27 = vld [vmem:[#allocation7 + $0x40] sm:$0xff]  }
  0x66   : > { %v2764_v33 = vunpack.c.h.bf16 %v2960_v27  ;;  %v2763_v34 = vunpack.c.l.bf16 %v2960_v27 }
  0x69   : > { %499 = vperm.xlu1 %3363, %v349_v29   ;;  %494 = vperm.xlu0 %3362, %v348_v30  }
  0x6d   : > { %509 = vperm.xlu1 %3363, %v351_v31   ;;  %504 = vperm.xlu0 %3362, %v350_v32  }
  0xac   : > { %v365_v35 = vpop.permute.xlu1 %364  ;;  %v355_v36 = vpop.permute.xlu0 %354 }
  0xad   : > { %v514_v46 = vmul.f32 %v2735_v37, %v365_v35  ;;  %v512_v47 = vmul.f32 %v2731_v38, %v355_v36  ;;  %v2961_v35 = vld [vmem:[#allocation7 + $0x48] sm:$0xff]  }
  0xae   : > { %v2768_v41 = vunpack.c.h.bf16 %v2961_v35 }
  0xb0   : > { %v370_v42 = vpop.permute.xlu1 %369  ;;  %v360_v43 = vpop.permute.xlu0 %359 }
  0xb1   : > { %v515_v48 = vmul.f32 %v2736_v39, %v370_v42  ;;  %v513_v49 = vmul.f32 %v2732_v40, %v360_v43  ;;  %v2767_v42 = vunpack.c.l.bf16 %v2961_v35  ;;  %v2962_v43 = vld [vmem:[#allocation7 + $0x50] sm:$0xff]  }
  0xb2   : > { %v2771_v50 = vunpack.c.l.bf16 %v2962_v43 }
  0xb3   : > { %v2801_v51 = vpack.c.bf16 %v515_v48, %v514_v46  ;;  %v2796_v52 = vpack.c.bf16 %v513_v49, %v512_v47  ;;  %v2772_v49 = vunpack.c.h.bf16 %v2962_v43 }
  0xb4   : > { %v380_v53 = vpop.permute.xlu1 %379  ;;  %v375_v54 = vpop.permute.xlu0 %374 }
  0xb5   : > { %2968 = vst [vmem:[#allocation2 + $0x8] sm:$0xff] %v2801_v51   ;;  %2797 = vst [vmem:[#allocation2] sm:$0xff] %v2796_v52   ;;  %v517_v55 = vmul.f32 %v2740_v44, %v380_v53  ;;  %v516_v56 = vmul.f32 %v2739_v45, %v375_v54  ;;  %v2963_v51 = vld [vmem:[#allocation7 + $0x58] sm:$0xff]  }
  0xb7   : > { %v2806_v60 = vpack.c.bf16 %v517_v55, %v516_v56 }
  0xb8   : > { %v390_v61 = vpop.permute.xlu1 %389  ;;  %v385_v62 = vpop.permute.xlu0 %384 }
  0xb9   : > { %2969 = vst [vmem:[#allocation2 + $0x10] sm:$0xff] %v2806_v60   ;;  %v519_v63 = vmul.f32 %v2744_v57, %v390_v61  ;;  %v518_v0 = vmul.f32 %v2743_v58, %v385_v62  ;;  %v2776_v57 = vunpack.c.h.bf16 %v2963_v51  ;;  %v2775_v58 = vunpack.c.l.bf16 %v2963_v51 }
  0xbb   : > { %v2811_v4 = vpack.c.bf16 %v519_v63, %v518_v0 }
  0xbc   : > { %v400_v5 = vpop.permute.xlu1 %399  ;;  %v395_v6 = vpop.permute.xlu0 %394 }
  0xbd   : > { %2970 = vst [vmem:[#allocation2 + $0x18] sm:$0xff] %v2811_v4   ;;  %v521_v7 = vmul.f32 %v2748_v1, %v400_v5  ;;  %v520_v8 = vmul.f32 %v2747_v2, %v395_v6  ;;  %v2780_v1 = vunpack.c.h.bf16 %v2964_v59  ;;  %v2779_v2 = vunpack.c.l.bf16 %v2964_v59 }
  0xbf   : > { %v2816_v12 = vpack.c.bf16 %v521_v7, %v520_v8 }
  0xc0   : > { %v410_v13 = vpop.permute.xlu1 %409  ;;  %v405_v14 = vpop.permute.xlu0 %404 }
  0xc1   : > { %2971 = vst [vmem:[#allocation2 + $0x20] sm:$0xff] %v2816_v12   ;;  %v523_v15 = vmul.f32 %v2752_v9, %v410_v13  ;;  %v522_v16 = vmul.f32 %v2751_v10, %v405_v14  ;;  %v2784_v9 = vunpack.c.h.bf16 %v2965_v3  ;;  %v2783_v10 = vunpack.c.l.bf16 %v2965_v3 }
  0xc3   : > { %v2821_v20 = vpack.c.bf16 %v523_v15, %v522_v16 }
  0xc4   : > { %v420_v21 = vpop.permute.xlu1 %419  ;;  %v415_v22 = vpop.permute.xlu0 %414 }
  0xc5   : > { %2972 = vst [vmem:[#allocation2 + $0x28] sm:$0xff] %v2821_v20   ;;  %v525_v23 = vmul.f32 %v2756_v17, %v420_v21  ;;  %v524_v24 = vmul.f32 %v2755_v18, %v415_v22  ;;  %v2788_v17 = vunpack.c.h.bf16 %v2966_v11  ;;  %v2787_v18 = vunpack.c.l.bf16 %v2966_v11 }
  0xc7   : > { %v2826_v28 = vpack.c.bf16 %v525_v23, %v524_v24 }
  0xc8   : > { %v430_v29 = vpop.permute.xlu1 %429  ;;  %v425_v30 = vpop.permute.xlu0 %424 }
  0xc9   : > { %2973 = vst [vmem:[#allocation2 + $0x30] sm:$0xff] %v2826_v28   ;;  %v527_v31 = vmul.f32 %v2760_v25, %v430_v29  ;;  %v526_v32 = vmul.f32 %v2759_v26, %v425_v30  ;;  %v2792_v25 = vunpack.c.h.bf16 %v2967_v19  ;;  %v2791_v26 = vunpack.c.l.bf16 %v2967_v19 }
  0xcb   : > { %v2831_v36 = vpack.c.bf16 %v527_v31, %v526_v32 }
  0xcc   : > { %v440_v37 = vpop.permute.xlu1 %439  ;;  %v435_v38 = vpop.permute.xlu0 %434 }
  0xcd   : > { %2974 = vst [vmem:[#allocation2 + $0x38] sm:$0xff] %v2831_v36   ;;  %v529_v39 = vmul.f32 %v2764_v33, %v440_v37  ;;  %v528_v40 = vmul.f32 %v2763_v34, %v435_v38 }
  0xcf   : > { %v2836_v44 = vpack.c.bf16 %v529_v39, %v528_v40 }
  0xd0   : > { %v450_v45 = vpop.permute.xlu1 %449  ;;  %v445_v46 = vpop.permute.xlu0 %444 }
  0xd1   : > { %2975 = vst [vmem:[#allocation2 + $0x40] sm:$0xff] %v2836_v44   ;;  %v531_v47 = vmul.f32 %v2768_v41, %v450_v45  ;;  %v530_v48 = vmul.f32 %v2767_v42, %v445_v46 }
  0xd3   : > { %v2841_v52 = vpack.c.bf16 %v531_v47, %v530_v48 }
  0xd4   : > { %v460_v53 = vpop.permute.xlu1 %459  ;;  %v455_v54 = vpop.permute.xlu0 %454 }
  0xd5   : > { %2976 = vst [vmem:[#allocation2 + $0x48] sm:$0xff] %v2841_v52   ;;  %v533_v55 = vmul.f32 %v2772_v49, %v460_v53  ;;  %v532_v56 = vmul.f32 %v2771_v50, %v455_v54 }
  0xd7   : > { %v2846_v60 = vpack.c.bf16 %v533_v55, %v532_v56 }
  0xd8   : > { %v470_v61 = vpop.permute.xlu1 %469  ;;  %v465_v62 = vpop.permute.xlu0 %464 }
  0xd9   : > { %2977 = vst [vmem:[#allocation2 + $0x50] sm:$0xff] %v2846_v60   ;;  %v535_v63 = vmul.f32 %v2776_v57, %v470_v61  ;;  %v534_v0 = vmul.f32 %v2775_v58, %v465_v62 }
  0xdb   : > { %v2851_v4 = vpack.c.bf16 %v535_v63, %v534_v0 }
  0xdc   : > { %v480_v5 = vpop.permute.xlu1 %479  ;;  %v475_v6 = vpop.permute.xlu0 %474 }
  0xdd   : > { %2978 = vst [vmem:[#allocation2 + $0x58] sm:$0xff] %v2851_v4   ;;  %v537_v7 = vmul.f32 %v2780_v1, %v480_v5  ;;  %v536_v8 = vmul.f32 %v2779_v2, %v475_v6 }
  0xdf   : > { %v2856_v12 = vpack.c.bf16 %v537_v7, %v536_v8 }
  0xe0   : > { %v490_v13 = vpop.permute.xlu1 %489  ;;  %v485_v14 = vpop.permute.xlu0 %484 }
  0xe1   : > { %2979 = vst [vmem:[#allocation2 + $0x60] sm:$0xff] %v2856_v12   ;;  %v539_v15 = vmul.f32 %v2784_v9, %v490_v13  ;;  %v538_v16 = vmul.f32 %v2783_v10, %v485_v14 }
  0xe3   : > { %v2861_v20 = vpack.c.bf16 %v539_v15, %v538_v16 }
  0xe4   : > { %v500_v21 = vpop.permute.xlu1 %499  ;;  %v495_v22 = vpop.permute.xlu0 %494 }
  0xe5   : > { %2980 = vst [vmem:[#allocation2 + $0x68] sm:$0xff] %v2861_v20   ;;  %v541_v23 = vmul.f32 %v2788_v17, %v500_v21  ;;  %v540_v24 = vmul.f32 %v2787_v18, %v495_v22 }
  0xe7   : > { %v2866_v27 = vpack.c.bf16 %v541_v23, %v540_v24 }
  0xe8   : > { %v510_v28 = vpop.permute.xlu1 %509  ;;  %v505_v29 = vpop.permute.xlu0 %504 }
  0xe9   : > { %2981 = vst [vmem:[#allocation2 + $0x70] sm:$0xff] %v2866_v27   ;;  %v543_v30 = vmul.f32 %v2792_v25, %v510_v28  ;;  %v542_v31 = vmul.f32 %v2791_v26, %v505_v29 }
  0xeb   : > { %v2871_v32 = vpack.c.bf16 %v543_v30, %v542_v31 }
  0xed   : > { %2982 = vst [vmem:[#allocation2 + $0x78] sm:$0xff] %v2871_v32  }
  0xee PF: > { %s2695_s6 = sshll.u32 %s4131_s23, 7  ;;  %v3737_v33 = vld [vmem:[#allocation4 + $0x8] sm:$0xff]  ;;  %v3533_v37 = vmov 0   ;;  %v1194_v38 = vld [vmem:[%s4118_s2 + $0x10] sm:$0xff]  ;;  %v1192_v39 = vld [vmem:[%s4118_s2] sm:$0xff]  ;;  %s1544_s15 = ssub.s32 1, %s4131_s23 }
  0xef   : > { %v3739_v34 = vld [vmem:[#allocation4 + $0x48] sm:$0xff]  ;;  %v766_v35 = vunpack.c.l.s8.bf16 %v3737_v33  ;;  %3365 = vset.pattern.permute.xlu1 %v3533_v37  ;;  %3364 = vset.pattern.permute.xlu0 %v3533_v37  ;;  %s3749_s11 = scalar_lea.vmem [#allocation2], %s2695_s6  ;;  %v1195_v51 = vld [vmem:[%s4118_s2 + $0x18] sm:$0xff]  ;;  %v1196_v55 = vld [vmem:[%s4118_s2 + $0x20] sm:$0xff]  ;;  %v768_v4 = vunpack.c.h.s8.bf16 %v3737_v33  ;;  %s2728_s16 = sshll.u32 %s1544_s15, 7 }
  0xf0   : > { %v782_v36 = vunpack.c.l.s8.bf16 %v3739_v34  ;;  %1268 = vperm.xlu1 %3365, %v1194_v38   ;;  %1258 = vperm.xlu0 %3364, %v1192_v39   ;;  %v1193_v52 = vld [vmem:[%s4118_s2 + $0x8] sm:$0xff]  ;;  %v1199_v58 = vld [vmem:[%s4118_s2 + $0x38] sm:$0xff]  ;;  %v1198_v59 = vld [vmem:[%s4118_s2 + $0x30] sm:$0xff]  ;;  %v784_v5 = vunpack.c.h.s8.bf16 %v3739_v34  ;;  %s3898_s23 = scalar_lea.vmem [#allocation2], %s2728_s16  ;;  %p2606_p4 = scmp.ne.s32.totalorder %s3516_s18, 0 }
  0xf1   : > { %995 = vmatprep.mubr.bf16.mxu0 %v766_v35  ;;  %v1197_v54 = vld [vmem:[%s4118_s2 + $0x28] sm:$0xff]  ;;  %v749_v61 = vld [vmem:[#allocation4] sm:$0xff]  ;;  %v1203_v6 = vld [vmem:[%s4118_s2 + $0x58] sm:$0xff] }
  0xf2   : > { %1059 = vmatprep.mubr.bf16.mxu1 %v782_v36  ;;  %v757_v62 = vld [vmem:[#allocation4 + $0x40] sm:$0xff]  ;;  %v1201_v0 = vld [vmem:[%s4118_s2 + $0x48] sm:$0xff]  ;;  %v765_v2 = vunpack.c.l.s8.bf16 %v749_v61  ;;  %v1202_v7 = vld [vmem:[%s4118_s2 + $0x50] sm:$0xff]  ;;  %v767_v12 = vunpack.c.h.s8.bf16 %v749_v61 }
  0xf3   : > { %v1200_v1 = vld [vmem:[%s4118_s2 + $0x40] sm:$0xff]  ;;  %v781_v3 = vunpack.c.l.s8.bf16 %v757_v62  ;;  %v752_v8 = vld [vmem:[#allocation4 + $0x18] sm:$0xff]  ;;  %v1205_v10 = vld [vmem:[%s4118_s2 + $0x68] sm:$0xff]  ;;  %v783_v13 = vunpack.c.h.s8.bf16 %v757_v62 }
  0xf4   : > { %v3366_v40 = vld [vmem:[%s3749_s11 + $0x78] sm:$0xff]   ;;  %v3368_v42 = vld [vmem:[%s3749_s11 + $0x70] sm:$0xff]   ;;  %v3370_v44 = vld [vmem:[%s3749_s11 + $0x68] sm:$0xff]   ;;  %1273 = vperm.xlu1 %3365, %v1195_v51   ;;  %1263 = vperm.xlu0 %3364, %v1193_v52   ;;  %v770_v14 = vunpack.c.l.s8.bf16 %v752_v8  ;;  %v772_v24 = vunpack.c.h.s8.bf16 %v752_v8 }
  0xf5   : > { %v3367_v41 = vld [vmem:[%s3749_s11 + $0x38] sm:$0xff]   ;;  %2998 = vmatprep.subr.bf16.mxu0 %v3366_v40  ;;  %3254 = vmatprep.subr.bf16.mxu1 %v3366_v40  ;;  %v3369_v43 = vld [vmem:[%s3749_s11 + $0x30] sm:$0xff]   ;;  %v3371_v45 = vld [vmem:[%s3749_s11 + $0x28] sm:$0xff]  }
  0xf6   : > { %2999 = vmatpush3.bf16.msra.mxu0 %v3367_v41  ;;  %3262 = vmatpush3.bf16.msra.mxu1 %v3367_v41  ;;  %v3372_v46 = vld [vmem:[%s3749_s11 + $0x60] sm:$0xff]   ;;  %v3374_v48 = vld [vmem:[%s3749_s11 + $0x58] sm:$0xff]   ;;  %v3376_v50 = vld [vmem:[%s3749_s11 + $0x50] sm:$0xff]  }
  0xf7   : > { %3000 = vmatprep.subr.bf16.mxu0 %v3368_v42  ;;  %3255 = vmatprep.subr.bf16.mxu1 %v3368_v42  ;;  %v3373_v47 = vld [vmem:[%s3749_s11 + $0x20] sm:$0xff]   ;;  %v3375_v49 = vld [vmem:[%s3749_s11 + $0x18] sm:$0xff]   ;;  %v3377_v53 = vld [vmem:[%s3749_s11 + $0x10] sm:$0xff]  }
  0xf8   : > { %v3378_v56 = vld [vmem:[%s3749_s11 + $0x48] sm:$0xff]   ;;  %1283 = vperm.xlu1 %3365, %v1197_v54   ;;  %1278 = vperm.xlu0 %3364, %v1196_v55   ;;  %v3380_v60 = vld [vmem:[%s3749_s11 + $0x40] sm:$0xff]   ;;  %v760_v9 = vld [vmem:[#allocation4 + $0x58] sm:$0xff] }
  0xf9   : > { %v3379_v57 = vld [vmem:[%s3749_s11 + $0x8] sm:$0xff]   ;;  %v3381_v63 = vld [vmem:[%s3749_s11] sm:$0xff]   ;;  %v786_v15 = vunpack.c.l.s8.bf16 %v760_v9  ;;  %v1207_v16 = vld [vmem:[%s4118_s2 + $0x78] sm:$0xff]  ;;  %v788_v25 = vunpack.c.h.s8.bf16 %v760_v9 }
  0xfa   : > { %3001 = vmatpush3.bf16.msra.mxu0 %v3369_v43  ;;  %3263 = vmatpush3.bf16.msra.mxu1 %v3369_v43  ;;  %v1204_v11 = vld [vmem:[%s4118_s2 + $0x60] sm:$0xff]  ;;  %v1206_v17 = vld [vmem:[%s4118_s2 + $0x70] sm:$0xff]  ;;  %v1209_v20 = vld [vmem:[%s4118_s2 + $0x88] sm:$0xff] }
  0xfb   : > { %3002 = vmatprep.subr.bf16.mxu0 %v3370_v44  ;;  %3256 = vmatprep.subr.bf16.mxu1 %v3370_v44  ;;  %v751_v18 = vld [vmem:[#allocation4 + $0x10] sm:$0xff]  ;;  %v1208_v21 = vld [vmem:[%s4118_s2 + $0x80] sm:$0xff]  ;;  %v1211_v26 = vld [vmem:[%s4118_s2 + $0x98] sm:$0xff] }
  0xfc   : > { %1293 = vperm.xlu1 %3365, %v1199_v58   ;;  %1288 = vperm.xlu0 %3364, %v1198_v59   ;;  %v759_v19 = vld [vmem:[#allocation4 + $0x50] sm:$0xff]  ;;  %v769_v22 = vunpack.c.l.s8.bf16 %v751_v18  ;;  %v754_v28 = vld [vmem:[#allocation4 + $0x28] sm:$0xff]  ;;  %v1212_v31 = vld [vmem:[%s4118_s2 + $0xa0] sm:$0xff]  ;;  %v771_v32 = vunpack.c.h.s8.bf16 %v751_v18 }
  0xfd   : > { %v785_v23 = vunpack.c.l.s8.bf16 %v759_v19  ;;  %v1210_v27 = vld [vmem:[%s4118_s2 + $0x90] sm:$0xff]  ;;  %v762_v29 = vld [vmem:[#allocation4 + $0x68] sm:$0xff]  ;;  %v787_v33 = vunpack.c.h.s8.bf16 %v759_v19  ;;  %v774_v34 = vunpack.c.l.s8.bf16 %v754_v28  ;;  %v1215_v36 = vld [vmem:[%s4118_s2 + $0xb8] sm:$0xff]  ;;  %v776_v44 = vunpack.c.h.s8.bf16 %v754_v28 }
  0xfe   : > { %3003 = vmatpush3.bf16.msra.mxu0 %v3371_v45  ;;  %3264 = vmatpush3.bf16.msra.mxu1 %v3371_v45  ;;  %v1213_v30 = vld [vmem:[%s4118_s2 + $0xa8] sm:$0xff]  ;;  %v790_v35 = vunpack.c.l.s8.bf16 %v762_v29  ;;  %v1214_v37 = vld [vmem:[%s4118_s2 + $0xb0] sm:$0xff]  ;;  %v753_v38 = vld [vmem:[#allocation4 + $0x20] sm:$0xff]  ;;  %v792_v45 = vunpack.c.h.s8.bf16 %v762_v29 }
  0xff   : > { %3004 = vmatprep.subr.bf16.mxu0 %v3372_v46  ;;  %3257 = vmatprep.subr.bf16.mxu1 %v3372_v46  ;;  %v761_v39 = vld [vmem:[#allocation4 + $0x60] sm:$0xff]  ;;  %v1217_v40 = vld [vmem:[%s4118_s2 + $0xc8] sm:$0xff]  ;;  %v773_v42 = vunpack.c.l.s8.bf16 %v753_v38  ;;  %v1219_v46 = vld [vmem:[%s4118_s2 + $0xd8] sm:$0xff]  ;;  %v775_v52 = vunpack.c.h.s8.bf16 %v753_v38 }
 0x100   : > { %1303 = vperm.xlu1 %3365, %v1201_v0   ;;  %1298 = vperm.xlu0 %3364, %v1200_v1   ;;  %v1216_v41 = vld [vmem:[%s4118_s2 + $0xc0] sm:$0xff]  ;;  %v789_v43 = vunpack.c.l.s8.bf16 %v761_v39  ;;  %v755_v58 = vld [vmem:[#allocation4 + $0x30] sm:$0xff] }
 0x101   : > { %v1220_v51 = vld [vmem:[%s4118_s2 + $0xe0] sm:$0xff]  ;;  %v763_v59 = vld [vmem:[#allocation4 + $0x70] sm:$0xff]  ;;  %v779_v0 = vunpack.c.h.s8.bf16 %v755_v58 }
 0x102   : > { %3005 = vmatpush3.bf16.msra.mxu0 %v3373_v47  ;;  %3265 = vmatpush3.bf16.msra.mxu1 %v3373_v47  ;;  %v1218_v47 = vld [vmem:[%s4118_s2 + $0xd0] sm:$0xff]  ;;  %v793_v61 = vunpack.c.l.s8.bf16 %v763_v59  ;;  %v795_v1 = vunpack.c.h.s8.bf16 %v763_v59 }
 0x103   : > { %3006 = vmatprep.subr.bf16.mxu0 %v3374_v48  ;;  %3258 = vmatprep.subr.bf16.mxu1 %v3374_v48  ;;  %v756_v48 = vld [vmem:[#allocation4 + $0x38] sm:$0xff] }
 0x104   : > { %1313 = vperm.xlu1 %3365, %v1203_v6   ;;  %1308 = vperm.xlu0 %3364, %v1202_v7   ;;  %v778_v54 = vunpack.c.l.s8.bf16 %v756_v48  ;;  %v780_v62 = vunpack.c.h.s8.bf16 %v756_v48 }
 0x106   : > { %3007 = vmatpush3.bf16.msra.mxu0 %v3375_v49  ;;  %3266 = vmatpush3.bf16.msra.mxu1 %v3375_v49  ;;  %v764_v49 = vld [vmem:[#allocation4 + $0x78] sm:$0xff] }
 0x107   : > { %3008 = vmatprep.subr.bf16.mxu0 %v3376_v50  ;;  %3259 = vmatprep.subr.bf16.mxu1 %v3376_v50  ;;  %v1221_v50 = vld [vmem:[%s4118_s2 + $0xe8] sm:$0xff]  ;;  %v794_v55 = vunpack.c.l.s8.bf16 %v764_v49 }
 0x108   : > { %1323 = vperm.xlu1 %3365, %v1205_v10   ;;  %1318 = vperm.xlu0 %3364, %v1204_v11  }
 0x10a   : > { %3009 = vmatpush3.bf16.msra.mxu0 %v3377_v53  ;;  %3267 = vmatpush3.bf16.msra.mxu1 %v3377_v53  ;;  %v791_v53 = vunpack.c.h.s8.bf16 %v761_v39 }
 0x10b   : > { %3010 = vmatprep.subr.bf16.mxu0 %v3378_v56  ;;  %3260 = vmatprep.subr.bf16.mxu1 %v3378_v56  ;;  %v1223_v56 = vld [vmem:[%s4118_s2 + $0xf8] sm:$0xff] }
 0x10c   : > { %1333 = vperm.xlu1 %3365, %v1207_v16   ;;  %1328 = vperm.xlu0 %3364, %v1206_v17  }
 0x10e   : > { %3011 = vmatpush3.bf16.msra.mxu0 %v3379_v57  ;;  %3268 = vmatpush3.bf16.msra.mxu1 %v3379_v57  ;;  %v1222_v57 = vld [vmem:[%s4118_s2 + $0xf0] sm:$0xff] }
 0x10f   : > { %3012 = vmatprep.subr.bf16.mxu0 %v3380_v60  ;;  %3261 = vmatprep.subr.bf16.mxu1 %v3380_v60  ;;  %v777_v60 = vunpack.c.l.s8.bf16 %v755_v58 }
 0x110   : > { %1343 = vperm.xlu1 %3365, %v1209_v20   ;;  %1338 = vperm.xlu0 %3364, %v1208_v21  }
 0x112   : > { %3013 = vmatpush3.bf16.msra.mxu0 %v3381_v63  ;;  %3269 = vmatpush3.bf16.msra.mxu1 %v3381_v63  ;;  %v796_v63 = vunpack.c.h.s8.bf16 %v764_v49 }
 0x114   : > { %1353 = vperm.xlu1 %3365, %v1211_v26   ;;  %1348 = vperm.xlu0 %3364, %v1210_v27  }
 0x115   : > { %996 = vmatmul.mubr.bf16.vlgmr.msra.gmra.mxu0 %v765_v2  ;;  %1060 = vmatmul.mubr.bf16.vlgmr.msra.gmra.mxu1 %v781_v3 }
 0x116   : > { %1003 = vmatprep.mubr.bf16.mxu0 %v768_v4  ;;  %1067 = vmatprep.mubr.bf16.mxu1 %v784_v5 }
 0x118   : > { %1363 = vperm.xlu1 %3365, %v1213_v30   ;;  %1358 = vperm.xlu0 %3364, %v1212_v31  }
 0x11c   : > { %1373 = vperm.xlu1 %3365, %v1215_v36   ;;  %1368 = vperm.xlu0 %3364, %v1214_v37  }
 0x11d   : > { %1004 = vmatmul.mubr.bf16.gmra.mxu0 %v767_v12  ;;  %1068 = vmatmul.mubr.bf16.gmra.mxu1 %v783_v13 }
 0x11e   : > { %1011 = vmatprep.mubr.bf16.mxu0 %v770_v14  ;;  %1075 = vmatprep.mubr.bf16.mxu1 %v786_v15 }
 0x120   : > { %1383 = vperm.xlu1 %3365, %v1217_v40   ;;  %1378 = vperm.xlu0 %3364, %v1216_v41  }
 0x124   : > { %1393 = vperm.xlu1 %3365, %v1219_v46   ;;  %1388 = vperm.xlu0 %3364, %v1218_v47  }
 0x125   : > { %1012 = vmatmul.mubr.bf16.gmra.mxu0 %v769_v22  ;;  %1076 = vmatmul.mubr.bf16.gmra.mxu1 %v785_v23 }
 0x126   : > { %1019 = vmatprep.mubr.bf16.mxu0 %v772_v24  ;;  %1083 = vmatprep.mubr.bf16.mxu1 %v788_v25 }
 0x128   : > { %1403 = vperm.xlu1 %3365, %v1221_v50   ;;  %1398 = vperm.xlu0 %3364, %v1220_v51  }
 0x12c   : > { %1413 = vperm.xlu1 %3365, %v1223_v56   ;;  %1408 = vperm.xlu0 %3364, %v1222_v57  }
 0x12d   : > { %1020 = vmatmul.mubr.bf16.gmra.mxu0 %v771_v32  ;;  %1084 = vmatmul.mubr.bf16.gmra.mxu1 %v787_v33 }
 0x12e   : > { %1027 = vmatprep.mubr.bf16.mxu0 %v774_v34  ;;  %1091 = vmatprep.mubr.bf16.mxu1 %v790_v35 }
 0x135   : > { %1028 = vmatmul.mubr.bf16.gmra.mxu0 %v773_v42  ;;  %1092 = vmatmul.mubr.bf16.gmra.mxu1 %v789_v43 }
 0x136   : > { %1035 = vmatprep.mubr.bf16.mxu0 %v776_v44  ;;  %1099 = vmatprep.mubr.bf16.mxu1 %v792_v45 }
 0x13d   : > { %1036 = vmatmul.mubr.bf16.gmra.mxu0 %v775_v52  ;;  %1100 = vmatmul.mubr.bf16.gmra.mxu1 %v791_v53 }
 0x13e   : > { %1043 = vmatprep.mubr.bf16.mxu0 %v778_v54  ;;  %1107 = vmatprep.mubr.bf16.mxu1 %v794_v55 }
 0x145   : > { %1044 = vmatmul.mubr.bf16.gmra.mxu0 %v777_v60  ;;  %1108 = vmatmul.mubr.bf16.gmra.mxu1 %v793_v61 }
 0x146   : > { %1051 = vmatprep.mubr.bf16.mxu0 %v780_v62  ;;  %1115 = vmatprep.mubr.bf16.mxu1 %v796_v63 }
 0x14d   : > { %1052 = vmatmul.mubr.bf16.gmra.mxu0 %v779_v0  ;;  %1116 = vmatmul.mubr.bf16.gmra.mxu1 %v795_v1 }
 0x16b   : > { %v3859_v2 = vpop.permute.xlu1 %1268  ;;  %v1259_v3 = vpop.permute.xlu0 %1258 }
 0x16f   : > { %v3861_v4 = vpop.permute.xlu1 %1273  ;;  %v1264_v5 = vpop.permute.xlu0 %1263 }
 0x173   : > { %v3863_v6 = vpop.permute.xlu1 %1283  ;;  %v3865_v7 = vpop.permute.xlu0 %1278 }
 0x177   : > { %v3867_v8 = vpop.permute.xlu1 %1293  ;;  %v3869_v9 = vpop.permute.xlu0 %1288 }
 0x17b   : > { %v3871_v10 = vpop.permute.xlu1 %1303  ;;  %v3873_v11 = vpop.permute.xlu0 %1298 }
 0x17f   : > { %v3875_v12 = vpop.permute.xlu1 %1313  ;;  %v3877_v13 = vpop.permute.xlu0 %1308 }
 0x183   : > { %v3879_v14 = vpop.permute.xlu1 %1323  ;;  %v3881_v15 = vpop.permute.xlu0 %1318 }
 0x187   : > { %v3883_v18 = vpop.permute.xlu1 %1333  ;;  %v3885_v19 = vpop.permute.xlu0 %1328 }
 0x18b   : > { %v1344_v28 = vpop.permute.xlu1 %1343  ;;  %v1339_v29 = vpop.permute.xlu0 %1338 }
 0x18f   : > { %v1354_v60 = vpop.permute.xlu1 %1353  ;;  %v1349_v61 = vpop.permute.xlu0 %1348 }
 0x1d5   : > { %v3014_v16 = vpop.f32.mrf.mxu0  ;;  %v3062_v17 = vpop.f32.mrf.mxu1 }
 0x1d7   : > { %v3015_v20 = vpop.f32.mrf.mxu0  ;;  %v3063_v21 = vpop.f32.mrf.mxu1 }
 0x1d8   : > { %v3016_v24 = vadd.f32 %v3015_v20, %v3014_v16  ;;  %v3064_v25 = vadd.f32 %v3063_v21, %v3062_v17 }
 0x1d9   : > { %v3017_v22 = vpop.f32.mrf.mxu0  ;;  %v3065_v23 = vpop.f32.mrf.mxu1 }
 0x1da   : > { %v1416_v34 = vmul.f32 %v3016_v24, %v1259_v3  ;;  %v1432_v35 = vmul.f32 %v3064_v25, %v1339_v29 }
 0x1db   : > { %v3018_v26 = vpop.f32.mrf.mxu0  ;;  %v3066_v27 = vpop.f32.mrf.mxu1 }
 0x1dc   : > { %v3019_v30 = vadd.f32 %v3018_v26, %v3017_v22  ;;  %v3067_v31 = vadd.f32 %v3066_v27, %v3065_v23 }
 0x1dd   : > { %v3020_v32 = vpop.f32.mrf.mxu0  ;;  %v3068_v33 = vpop.f32.mrf.mxu1 }
 0x1de   : > { %v1417_v36 = vmul.f32 %v3019_v30, %v1264_v5  ;;  %v1433_v37 = vmul.f32 %v3067_v31, %v1344_v28 }
 0x1df   : > { %v3021_v38 = vpop.f32.mrf.mxu0  ;;  %v3069_v39 = vpop.f32.mrf.mxu1 }
 0x1e0   : > { %v3888_v40 = vpack.c.bf16 %v1417_v36, %v1416_v34  ;;  %v3890_v41 = vpack.c.bf16 %v1433_v37, %v1432_v35  ;;  %v3022_v48 = vadd.f32 %v3021_v38, %v3020_v32  ;;  %v3070_v49 = vadd.f32 %v3069_v39, %v3068_v33  ;;  %v1364_v32 = vpop.permute.xlu1 %1363  ;;  %v1359_v33 = vpop.permute.xlu0 %1358 }
 0x1e1   : > { %v3023_v42 = vpop.f32.mrf.mxu0  ;;  %v3071_v43 = vpop.f32.mrf.mxu1 }
 0x1e2   : > { %v1464_v44 = vunpack.c.l.bf16 %v3888_v40  ;;  %v1465_v45 = vunpack.c.h.bf16 %v3888_v40  ;;  %v1480_v46 = vunpack.c.l.bf16 %v3890_v41  ;;  %v1481_v47 = vunpack.c.h.bf16 %v3890_v41 }
 0x1e3   : > { %v3024_v50 = vpop.f32.mrf.mxu0  ;;  %v3072_v51 = vpop.f32.mrf.mxu1  ;;  %v1418_v0 = vmul.f32 %v3022_v48, %v3859_v2  ;;  %v1434_v1 = vmul.f32 %v3070_v49, %v1349_v61 }
 0x1e4   : > { %v1496_v52 = vmul.f32 %v1464_v44, %v1259_v3  ;;  %v1497_v53 = vmul.f32 %v1465_v45, %v1264_v5  ;;  %v1512_v54 = vmul.f32 %v1480_v46, %v1339_v29  ;;  %v1513_v55 = vmul.f32 %v1481_v47, %v1344_v28 }
 0x1e5   : > { %v3025_v56 = vadd.f32 %v3024_v50, %v3023_v42  ;;  %v3073_v57 = vadd.f32 %v3072_v51, %v3071_v43  ;;  %v3026_v58 = vpop.f32.mrf.mxu0  ;;  %v3074_v59 = vpop.f32.mrf.mxu1 }
 0x1e6   : > { %v2876_v62 = vpack.c.bf16 %v1497_v53, %v1496_v52  ;;  %v2916_v63 = vpack.c.bf16 %v1513_v55, %v1512_v54 }
 0x1e7   : > { %v1419_v16 = vmul.f32 %v3025_v56, %v3861_v4  ;;  %v1435_v17 = vmul.f32 %v3073_v57, %v1354_v60  ;;  %v3027_v20 = vpop.f32.mrf.mxu0  ;;  %v3075_v21 = vpop.f32.mrf.mxu1 }
 0x1e8   : > { %2877 = vst [vmem:[%s3898_s23] sm:$0xff] %v2876_v62   ;;  %2990 = vst [vmem:[%s3898_s23 + $0x40] sm:$0xff] %v2916_v63   ;;  %v3028_v24 = vadd.f32 %v3027_v20, %v3026_v58  ;;  %v3076_v25 = vadd.f32 %v3075_v21, %v3074_v59 }
 0x1e9   : > { %v3902_v3 = vpack.c.bf16 %v1419_v16, %v1418_v0  ;;  %v3904_v5 = vpack.c.bf16 %v1435_v17, %v1434_v1  ;;  %v3029_v22 = vpop.f32.mrf.mxu0  ;;  %v3077_v23 = vpop.f32.mrf.mxu1 }
 0x1ea   : > { %v1420_v44 = vmul.f32 %v3028_v24, %v3865_v7  ;;  %v1436_v45 = vmul.f32 %v3076_v25, %v1359_v33 }
 0x1eb   : > { %v1466_v26 = vunpack.c.l.bf16 %v3902_v3  ;;  %v1467_v27 = vunpack.c.h.bf16 %v3902_v3  ;;  %v1482_v28 = vunpack.c.l.bf16 %v3904_v5  ;;  %v1483_v29 = vunpack.c.h.bf16 %v3904_v5  ;;  %v3030_v30 = vpop.f32.mrf.mxu0  ;;  %v3078_v31 = vpop.f32.mrf.mxu1 }
 0x1ec   : > { %v3031_v34 = vadd.f32 %v3030_v30, %v3029_v22  ;;  %v3079_v35 = vadd.f32 %v3078_v31, %v3077_v23  ;;  %v1374_v22 = vpop.permute.xlu1 %1373  ;;  %v1369_v23 = vpop.permute.xlu0 %1368 }
 0x1ed   : > { %v1498_v36 = vmul.f32 %v1466_v26, %v3859_v2  ;;  %v1499_v37 = vmul.f32 %v1467_v27, %v3861_v4  ;;  %v1514_v38 = vmul.f32 %v1482_v28, %v1349_v61  ;;  %v1515_v39 = vmul.f32 %v1483_v29, %v1354_v60  ;;  %v3032_v42 = vpop.f32.mrf.mxu0  ;;  %v3080_v43 = vpop.f32.mrf.mxu1 }
 0x1ee   : > { %v1421_v46 = vmul.f32 %v3031_v34, %v3863_v6  ;;  %v1437_v47 = vmul.f32 %v3079_v35, %v1364_v32 }
 0x1ef   : > { %v2881_v48 = vpack.c.bf16 %v1499_v37, %v1498_v36  ;;  %v2921_v49 = vpack.c.bf16 %v1515_v39, %v1514_v38  ;;  %v3033_v50 = vpop.f32.mrf.mxu0  ;;  %v3081_v51 = vpop.f32.mrf.mxu1 }
 0x1f0   : > { %v3914_v52 = vpack.c.bf16 %v1421_v46, %v1420_v44  ;;  %v3916_v2 = vpack.c.bf16 %v1437_v47, %v1436_v45  ;;  %v3034_v58 = vadd.f32 %v3033_v50, %v3032_v42  ;;  %v3082_v59 = vadd.f32 %v3081_v51, %v3080_v43  ;;  %v1384_v44 = vpop.permute.xlu1 %1383  ;;  %v1379_v45 = vpop.permute.xlu0 %1378 }
 0x1f1   : > { %2983 = vst [vmem:[%s3898_s23 + $0x8] sm:$0xff] %v2881_v48   ;;  %2991 = vst [vmem:[%s3898_s23 + $0x48] sm:$0xff] %v2921_v49   ;;  %v3035_v4 = vpop.f32.mrf.mxu0  ;;  %v3083_v53 = vpop.f32.mrf.mxu1 }
 0x1f2   : > { %v1468_v54 = vunpack.c.l.bf16 %v3914_v52  ;;  %v1469_v55 = vunpack.c.h.bf16 %v3914_v52  ;;  %v1484_v56 = vunpack.c.l.bf16 %v3916_v2  ;;  %v1485_v57 = vunpack.c.h.bf16 %v3916_v2 }
 0x1f3   : > { %v3036_v60 = vpop.f32.mrf.mxu0  ;;  %v3084_v61 = vpop.f32.mrf.mxu1  ;;  %v1422_v26 = vmul.f32 %v3034_v58, %v3869_v9  ;;  %v1438_v27 = vmul.f32 %v3082_v59, %v1369_v23 }
 0x1f4   : > { %v1500_v62 = vmul.f32 %v1468_v54, %v3865_v7  ;;  %v1501_v63 = vmul.f32 %v1469_v55, %v3863_v6  ;;  %v1516_v0 = vmul.f32 %v1484_v56, %v1359_v33  ;;  %v1517_v1 = vmul.f32 %v1485_v57, %v1364_v32 }
 0x1f5   : > { %v3037_v16 = vadd.f32 %v3036_v60, %v3035_v4  ;;  %v3085_v17 = vadd.f32 %v3084_v61, %v3083_v53  ;;  %v3038_v20 = vpop.f32.mrf.mxu0  ;;  %v3086_v21 = vpop.f32.mrf.mxu1 }
 0x1f6   : > { %v2886_v24 = vpack.c.bf16 %v1501_v63, %v1500_v62  ;;  %v2926_v25 = vpack.c.bf16 %v1517_v1, %v1516_v0 }
 0x1f7   : > { %v1423_v28 = vmul.f32 %v3037_v16, %v3867_v8  ;;  %v1439_v7 = vmul.f32 %v3085_v17, %v1374_v22  ;;  %v3039_v29 = vpop.f32.mrf.mxu0  ;;  %v3087_v6 = vpop.f32.mrf.mxu1 }
 0x1f8   : > { %2984 = vst [vmem:[%s3898_s23 + $0x10] sm:$0xff] %v2886_v24   ;;  %2992 = vst [vmem:[%s3898_s23 + $0x50] sm:$0xff] %v2926_v25   ;;  %v3040_v34 = vadd.f32 %v3039_v29, %v3038_v20  ;;  %v3088_v35 = vadd.f32 %v3087_v6, %v3086_v21 }
 0x1f9   : > { %v3930_v30 = vpack.c.bf16 %v1423_v28, %v1422_v26  ;;  %v3932_v31 = vpack.c.bf16 %v1439_v7, %v1438_v27  ;;  %v3041_v32 = vpop.f32.mrf.mxu0  ;;  %v3089_v33 = vpop.f32.mrf.mxu1 }
 0x1fa   : > { %v1424_v54 = vmul.f32 %v3040_v34, %v3873_v11  ;;  %v1440_v55 = vmul.f32 %v3088_v35, %v1379_v45 }
 0x1fb   : > { %v1470_v36 = vunpack.c.l.bf16 %v3930_v30  ;;  %v1471_v37 = vunpack.c.h.bf16 %v3930_v30  ;;  %v1486_v38 = vunpack.c.l.bf16 %v3932_v31  ;;  %v1487_v39 = vunpack.c.h.bf16 %v3932_v31  ;;  %v3042_v42 = vpop.f32.mrf.mxu0  ;;  %v3090_v43 = vpop.f32.mrf.mxu1 }
 0x1fc   : > { %v3043_v46 = vadd.f32 %v3042_v42, %v3041_v32  ;;  %v3091_v47 = vadd.f32 %v3090_v43, %v3089_v33  ;;  %v1394_v32 = vpop.permute.xlu1 %1393  ;;  %v1389_v33 = vpop.permute.xlu0 %1388 }
 0x1fd   : > { %v1502_v48 = vmul.f32 %v1470_v36, %v3869_v9  ;;  %v1503_v49 = vmul.f32 %v1471_v37, %v3867_v8  ;;  %v1518_v50 = vmul.f32 %v1486_v38, %v1369_v23  ;;  %v1519_v51 = vmul.f32 %v1487_v39, %v1374_v22  ;;  %v3044_v4 = vpop.f32.mrf.mxu0  ;;  %v3092_v53 = vpop.f32.mrf.mxu1 }
 0x1fe   : > { %v1425_v56 = vmul.f32 %v3043_v46, %v3871_v10  ;;  %v1441_v57 = vmul.f32 %v3091_v47, %v1384_v44 }
 0x1ff   : > { %v2891_v58 = vpack.c.bf16 %v1503_v49, %v1502_v48  ;;  %v2931_v59 = vpack.c.bf16 %v1519_v51, %v1518_v50  ;;  %v3045_v60 = vpop.f32.mrf.mxu0  ;;  %v3093_v61 = vpop.f32.mrf.mxu1 }
 0x200   : > { %v3942_v62 = vpack.c.bf16 %v1425_v56, %v1424_v54  ;;  %v3944_v9 = vpack.c.bf16 %v1441_v57, %v1440_v55  ;;  %v3046_v20 = vadd.f32 %v3045_v60, %v3044_v4  ;;  %v3094_v21 = vadd.f32 %v3093_v61, %v3092_v53  ;;  %v1404_v54 = vpop.permute.xlu1 %1403  ;;  %v1399_v55 = vpop.permute.xlu0 %1398 }
 0x201   : > { %2985 = vst [vmem:[%s3898_s23 + $0x18] sm:$0xff] %v2891_v58   ;;  %2993 = vst [vmem:[%s3898_s23 + $0x58] sm:$0xff] %v2931_v59   ;;  %v3047_v8 = vpop.f32.mrf.mxu0  ;;  %v3095_v63 = vpop.f32.mrf.mxu1 }
 0x202   : > { %v1472_v0 = vunpack.c.l.bf16 %v3942_v62  ;;  %v1473_v1 = vunpack.c.h.bf16 %v3942_v62  ;;  %v1488_v16 = vunpack.c.l.bf16 %v3944_v9  ;;  %v1489_v17 = vunpack.c.h.bf16 %v3944_v9 }
 0x203   : > { %v3048_v22 = vpop.f32.mrf.mxu0  ;;  %v3096_v23 = vpop.f32.mrf.mxu1  ;;  %v1426_v36 = vmul.f32 %v3046_v20, %v3877_v13  ;;  %v1442_v37 = vmul.f32 %v3094_v21, %v1389_v33 }
 0x204   : > { %v1504_v24 = vmul.f32 %v1472_v0, %v3873_v11  ;;  %v1505_v25 = vmul.f32 %v1473_v1, %v3871_v10  ;;  %v1520_v26 = vmul.f32 %v1488_v16, %v1379_v45  ;;  %v1521_v27 = vmul.f32 %v1489_v17, %v1384_v44 }
 0x205   : > { %v3049_v28 = vadd.f32 %v3048_v22, %v3047_v8  ;;  %v3097_v7 = vadd.f32 %v3096_v23, %v3095_v63  ;;  %v3050_v29 = vpop.f32.mrf.mxu0  ;;  %v3098_v6 = vpop.f32.mrf.mxu1 }
 0x206   : > { %v2896_v34 = vpack.c.bf16 %v1505_v25, %v1504_v24  ;;  %v2936_v35 = vpack.c.bf16 %v1521_v27, %v1520_v26 }
 0x207   : > { %v1427_v38 = vmul.f32 %v3049_v28, %v3875_v12  ;;  %v1443_v11 = vmul.f32 %v3097_v7, %v1394_v32  ;;  %v3051_v39 = vpop.f32.mrf.mxu0  ;;  %v3099_v10 = vpop.f32.mrf.mxu1 }
 0x208   : > { %2986 = vst [vmem:[%s3898_s23 + $0x20] sm:$0xff] %v2896_v34   ;;  %2994 = vst [vmem:[%s3898_s23 + $0x60] sm:$0xff] %v2936_v35   ;;  %v3052_v46 = vadd.f32 %v3051_v39, %v3050_v29  ;;  %v3100_v47 = vadd.f32 %v3099_v10, %v3098_v6  ;;  %v1414_v39 = vpop.permute.xlu1 %1413  ;;  %v1409_v10 = vpop.permute.xlu0 %1408 }
 0x209   : > { %v3958_v42 = vpack.c.bf16 %v1427_v38, %v1426_v36  ;;  %v3960_v43 = vpack.c.bf16 %v1443_v11, %v1442_v37  ;;  %v3053_v44 = vpop.f32.mrf.mxu0  ;;  %v3101_v45 = vpop.f32.mrf.mxu1 }
 0x20a   : > { %v1428_v0 = vmul.f32 %v3052_v46, %v3881_v15  ;;  %v1444_v1 = vmul.f32 %v3100_v47, %v1399_v55 }
 0x20b   : > { %v1474_v48 = vunpack.c.l.bf16 %v3958_v42  ;;  %v1475_v49 = vunpack.c.h.bf16 %v3958_v42  ;;  %v1490_v50 = vunpack.c.l.bf16 %v3960_v43  ;;  %v1491_v51 = vunpack.c.h.bf16 %v3960_v43  ;;  %v3054_v4 = vpop.f32.mrf.mxu0  ;;  %v3102_v53 = vpop.f32.mrf.mxu1 }
 0x20c   : > { %v3055_v56 = vadd.f32 %v3054_v4, %v3053_v44  ;;  %v3103_v57 = vadd.f32 %v3102_v53, %v3101_v45 }
 0x20d   : > { %v1506_v58 = vmul.f32 %v1474_v48, %v3877_v13  ;;  %v1507_v59 = vmul.f32 %v1475_v49, %v3875_v12  ;;  %v1522_v60 = vmul.f32 %v1490_v50, %v1389_v33  ;;  %v1523_v61 = vmul.f32 %v1491_v51, %v1394_v32  ;;  %v3056_v8 = vpop.f32.mrf.mxu0  ;;  %v3104_v63 = vpop.f32.mrf.mxu1 }
 0x20e   : > { %v1429_v16 = vmul.f32 %v3055_v56, %v3879_v14  ;;  %v1445_v17 = vmul.f32 %v3103_v57, %v1404_v54 }
 0x20f   : > { %v2901_v20 = vpack.c.bf16 %v1507_v59, %v1506_v58  ;;  %v2941_v21 = vpack.c.bf16 %v1523_v61, %v1522_v60  ;;  %v3057_v22 = vpop.f32.mrf.mxu0  ;;  %v3105_v23 = vpop.f32.mrf.mxu1 }
 0x210   : > { %v3970_v24 = vpack.c.bf16 %v1429_v16, %v1428_v0  ;;  %v3972_v13 = vpack.c.bf16 %v1445_v17, %v1444_v1  ;;  %v3058_v29 = vadd.f32 %v3057_v22, %v3056_v8  ;;  %v3106_v6 = vadd.f32 %v3105_v23, %v3104_v63 }
 0x211   : > { %2987 = vst [vmem:[%s3898_s23 + $0x28] sm:$0xff] %v2901_v20   ;;  %2995 = vst [vmem:[%s3898_s23 + $0x68] sm:$0xff] %v2941_v21   ;;  %v3059_v12 = vpop.f32.mrf.mxu0  ;;  %v3107_v25 = vpop.f32.mrf.mxu1 }
 0x212   : > { %v1476_v26 = vunpack.c.l.bf16 %v3970_v24  ;;  %v1477_v27 = vunpack.c.h.bf16 %v3970_v24  ;;  %v1492_v28 = vunpack.c.l.bf16 %v3972_v13  ;;  %v1493_v7 = vunpack.c.h.bf16 %v3972_v13 }
 0x213   : > { %v3060_v32 = vpop.f32.mrf.mxu0  ;;  %v3108_v33 = vpop.f32.mrf.mxu1  ;;  %v1430_v46 = vmul.f32 %v3058_v29, %v3885_v19  ;;  %v1446_v47 = vmul.f32 %v3106_v6, %v1409_v10 }
 0x214   : > { %v1508_v34 = vmul.f32 %v1476_v26, %v3881_v15  ;;  %v1509_v35 = vmul.f32 %v1477_v27, %v3879_v14  ;;  %v1524_v36 = vmul.f32 %v1492_v28, %v1399_v55  ;;  %v1525_v37 = vmul.f32 %v1493_v7, %v1404_v54 }
 0x215   : > { %v3061_v38 = vadd.f32 %v3060_v32, %v3059_v12  ;;  %v3109_v11 = vadd.f32 %v3108_v33, %v3107_v25 }
 0x216   : > { %v2906_v44 = vpack.c.bf16 %v1509_v35, %v1508_v34  ;;  %v2946_v45 = vpack.c.bf16 %v1525_v37, %v1524_v36 }
 0x217   : > { %v1431_v48 = vmul.f32 %v3061_v38, %v3883_v18  ;;  %v1447_v49 = vmul.f32 %v3109_v11, %v1414_v39 }
 0x218   : > { %2988 = vst [vmem:[%s3898_s23 + $0x30] sm:$0xff] %v2906_v44   ;;  %2996 = vst [vmem:[%s3898_s23 + $0x70] sm:$0xff] %v2946_v45  }
 0x219   : > { %v3986_v15 = vpack.c.bf16 %v1431_v48, %v1430_v46  ;;  %v3988_v14 = vpack.c.bf16 %v1447_v49, %v1446_v47 }
 0x21b   : > { %v1478_v50 = vunpack.c.l.bf16 %v3986_v15  ;;  %v1479_v51 = vunpack.c.h.bf16 %v3986_v15  ;;  %v1494_v4 = vunpack.c.l.bf16 %v3988_v14  ;;  %v1495_v53 = vunpack.c.h.bf16 %v3988_v14 }
 0x21d   : > { %v1510_v54 = vmul.f32 %v1478_v50, %v3885_v19  ;;  %v1511_v55 = vmul.f32 %v1479_v51, %v3883_v18  ;;  %v1526_v56 = vmul.f32 %v1494_v4, %v1409_v10  ;;  %v1527_v57 = vmul.f32 %v1495_v53, %v1414_v39  ;;  %1697 = sbr.rel (%p2606_p4) target bundleno = 805 (0x325), region = 64 }
 0x21f   : > { %v2911_v58 = vpack.c.bf16 %v1511_v55, %v1510_v54  ;;  %v2951_v59 = vpack.c.bf16 %v1527_v57, %v1526_v56 }
 0x221   : > { %2989 = vst [vmem:[%s3898_s23 + $0x38] sm:$0xff] %v2911_v58   ;;  %2997 = vst [vmem:[%s3898_s23 + $0x78] sm:$0xff] %v2951_v59  }
 0x222   : > { %v3382_v60 = vld [vmem:[%s4119_s3 + $0x38] sm:$0xff]   ;;  %v3383_v61 = vld [vmem:[%s4119_s3 + $0x30] sm:$0xff]   ;;  %v3384_v18 = vld [vmem:[%s4119_s3 + $0x28] sm:$0xff]  }
 0x223   : > { %3158 = vmatprep.subr.bf16.mxu0 %v3382_v60  ;;  %3270 = vmatprep.subr.bf16.mxu1 %v3382_v60  ;;  %v3385_v19 = vld [vmem:[%s4119_s3 + $0x20] sm:$0xff]   ;;  %v3386_v0 = vld [vmem:[%s4119_s3 + $0x18] sm:$0xff]   ;;  %v3387_v1 = vld [vmem:[%s4119_s3 + $0x10] sm:$0xff]  }
 0x224   : > { %3159 = vmatpush3.bf16.msra.mxu0 %v3382_v60  ;;  %3278 = vmatpush3.bf16.msra.mxu1 %v3382_v60  ;;  %v3390_v8 = vld [vmem:[#allocation7] sm:$0xff]   ;;  %v3388_v16 = vld [vmem:[%s4119_s3 + $0x8] sm:$0xff]   ;;  %v3394_v22 = vld [vmem:[#allocation7 + $0x10] sm:$0xff]  }
 0x225   : > { %3160 = vmatprep.subr.bf16.mxu0 %v3383_v61  ;;  %3271 = vmatprep.subr.bf16.mxu1 %v3383_v61  ;;  %v3391_v63 = vld [vmem:[#allocation7 + $0x40] sm:$0xff]   ;;  %v3392_v20 = vld [vmem:[#allocation7 + $0x8] sm:$0xff]   ;;  %v3395_v23 = vld [vmem:[#allocation7 + $0x50] sm:$0xff]  }
 0x226   : > { %3174 = vmatprep.mubr.bf16.mxu0 %v3390_v8  ;;  %3190 = vmatprep.mubr.bf16.mxu1 %v3391_v63  ;;  %v3389_v17 = vld [vmem:[%s4119_s3] sm:$0xff]   ;;  %v3393_v21 = vld [vmem:[#allocation7 + $0x48] sm:$0xff]   ;;  %v3396_v12 = vld [vmem:[#allocation7 + $0x18] sm:$0xff]  }
 0x227   : > { %v3397_v25 = vld [vmem:[#allocation7 + $0x58] sm:$0xff]   ;;  %v3398_v26 = vld [vmem:[#allocation7 + $0x20] sm:$0xff]   ;;  %v3400_v28 = vld [vmem:[#allocation7 + $0x28] sm:$0xff]  }
 0x228   : > { %3161 = vmatpush3.bf16.msra.mxu0 %v3383_v61  ;;  %3279 = vmatpush3.bf16.msra.mxu1 %v3383_v61  ;;  %v3399_v27 = vld [vmem:[#allocation7 + $0x60] sm:$0xff]   ;;  %v3401_v7 = vld [vmem:[#allocation7 + $0x68] sm:$0xff]   ;;  %v3402_v29 = vld [vmem:[#allocation7 + $0x30] sm:$0xff]  }
 0x229   : > { %3162 = vmatprep.subr.bf16.mxu0 %v3384_v18  ;;  %3272 = vmatprep.subr.bf16.mxu1 %v3384_v18  ;;  %v3403_v6 = vld [vmem:[#allocation7 + $0x70] sm:$0xff]   ;;  %v3404_v32 = vld [vmem:[#allocation7 + $0x38] sm:$0xff]   ;;  %v4026_v34 = vld [vmem:[%s4120_s4] ss:$0 sm:$0xff] }
 0x22a   : > { %v3405_v33 = vld [vmem:[#allocation7 + $0x78] sm:$0xff]  }
 0x22c   : > { %3163 = vmatpush3.bf16.msra.mxu0 %v3384_v18  ;;  %3280 = vmatpush3.bf16.msra.mxu1 %v3384_v18 }
 0x22d   : > { %3164 = vmatprep.subr.bf16.mxu0 %v3385_v19  ;;  %3273 = vmatprep.subr.bf16.mxu1 %v3385_v19 }
 0x230   : > { %3165 = vmatpush3.bf16.msra.mxu0 %v3385_v19  ;;  %3281 = vmatpush3.bf16.msra.mxu1 %v3385_v19 }
 0x231   : > { %3166 = vmatprep.subr.bf16.mxu0 %v3386_v0  ;;  %3274 = vmatprep.subr.bf16.mxu1 %v3386_v0 }
 0x234   : > { %3167 = vmatpush3.bf16.msra.mxu0 %v3386_v0  ;;  %3282 = vmatpush3.bf16.msra.mxu1 %v3386_v0 }
 0x235   : > { %3168 = vmatprep.subr.bf16.mxu0 %v3387_v1  ;;  %3275 = vmatprep.subr.bf16.mxu1 %v3387_v1 }
 0x238   : > { %3169 = vmatpush3.bf16.msra.mxu0 %v3387_v1  ;;  %3283 = vmatpush3.bf16.msra.mxu1 %v3387_v1 }
 0x239   : > { %3170 = vmatprep.subr.bf16.mxu0 %v3388_v16  ;;  %3276 = vmatprep.subr.bf16.mxu1 %v3388_v16 }
 0x23c   : > { %3171 = vmatpush3.bf16.msra.mxu0 %v3388_v16  ;;  %3284 = vmatpush3.bf16.msra.mxu1 %v3388_v16 }
 0x23d   : > { %3172 = vmatprep.subr.bf16.mxu0 %v3389_v17  ;;  %3277 = vmatprep.subr.bf16.mxu1 %v3389_v17 }
 0x240   : > { %3173 = vmatpush3.bf16.msra.mxu0 %v3389_v17  ;;  %3285 = vmatpush3.bf16.msra.mxu1 %v3389_v17 }
 0x243   : > { %3175 = vmatmul.mubr.bf16.vlgmr.msra.gmra.mxu0 %v3392_v20  ;;  %3191 = vmatmul.mubr.bf16.vlgmr.msra.gmra.mxu1 %v3393_v21 }
 0x244   : > { %3178 = vmatprep.mubr.bf16.mxu0 %v3394_v22  ;;  %3194 = vmatprep.mubr.bf16.mxu1 %v3395_v23 }
 0x24b   : > { %3179 = vmatmul.mubr.bf16.gmra.mxu0 %v3396_v12  ;;  %3195 = vmatmul.mubr.bf16.gmra.mxu1 %v3397_v25 }
 0x24c   : > { %3182 = vmatprep.mubr.bf16.mxu0 %v3398_v26  ;;  %3198 = vmatprep.mubr.bf16.mxu1 %v3399_v27 }
 0x253   : > { %3183 = vmatmul.mubr.bf16.gmra.mxu0 %v3400_v28  ;;  %3199 = vmatmul.mubr.bf16.gmra.mxu1 %v3401_v7 }
 0x254   : > { %3186 = vmatprep.mubr.bf16.mxu0 %v3402_v29  ;;  %3202 = vmatprep.mubr.bf16.mxu1 %v3403_v6 }
 0x25b   : > { %3187 = vmatmul.mubr.bf16.gmra.mxu0 %v3404_v32  ;;  %3203 = vmatmul.mubr.bf16.gmra.mxu1 %v3405_v33 }
 0x303   : > { %v3176_v35 = vpop.f32.mrf.mxu0  ;;  %v3192_v36 = vpop.f32.mrf.mxu1 }
 0x304   : > { %v1942_v37 = vadd.f32 %v3176_v35, %v4026_v34  ;;  %v2006_v38 = vadd.f32 %v3192_v36, %v4026_v34 }
 0x305   : > { %v1933_v11 = vpop.f32.mrf.mxu0  ;;  %v1997_v39 = vpop.f32.mrf.mxu1 }
 0x306   : > { %2063 = vst [vmem:[#allocation9 + $0x10] sm:$0xff] %v1942_v37  ;;  %2079 = vst [vmem:[#allocation9 + $0x90] sm:$0xff] %v2006_v38  ;;  %v1934_v10 = vadd.f32 %v4026_v34, %v1933_v11  ;;  %v1998_v44 = vadd.f32 %v4026_v34, %v1997_v39 }
 0x307   : > { %v3177_v45 = vpop.f32.mrf.mxu0  ;;  %v3193_v46 = vpop.f32.mrf.mxu1 }
 0x308   : > { %2061 = vst [vmem:[#allocation9] sm:$0xff] %v1934_v10  ;;  %2077 = vst [vmem:[#allocation9 + $0x80] sm:$0xff] %v1998_v44  ;;  %v1945_v47 = vadd.f32 %v3177_v45, %v4026_v34  ;;  %v2009_v48 = vadd.f32 %v3193_v46, %v4026_v34 }
 0x309   : > { %v1936_v49 = vpop.f32.mrf.mxu0  ;;  %v2000_v50 = vpop.f32.mrf.mxu1 }
 0x30a   : > { %2064 = vst [vmem:[#allocation9 + $0x18] sm:$0xff] %v1945_v47  ;;  %2080 = vst [vmem:[#allocation9 + $0x98] sm:$0xff] %v2009_v48  ;;  %v1937_v51 = vadd.f32 %v4026_v34, %v1936_v49  ;;  %v2001_v4 = vadd.f32 %v4026_v34, %v2000_v50 }
 0x30b   : > { %v3180_v53 = vpop.f32.mrf.mxu0  ;;  %v3196_v54 = vpop.f32.mrf.mxu1 }
 0x30c   : > { %2062 = vst [vmem:[#allocation9 + $0x8] sm:$0xff] %v1937_v51  ;;  %2078 = vst [vmem:[#allocation9 + $0x88] sm:$0xff] %v2001_v4  ;;  %v1958_v55 = vadd.f32 %v3180_v53, %v4026_v34  ;;  %v2022_v56 = vadd.f32 %v3196_v54, %v4026_v34 }
 0x30d   : > { %v1949_v57 = vpop.f32.mrf.mxu0  ;;  %v2013_v58 = vpop.f32.mrf.mxu1 }
 0x30e   : > { %2067 = vst [vmem:[#allocation9 + $0x30] sm:$0xff] %v1958_v55  ;;  %2083 = vst [vmem:[#allocation9 + $0xb0] sm:$0xff] %v2022_v56  ;;  %v1950_v59 = vadd.f32 %v4026_v34, %v1949_v57  ;;  %v2014_v60 = vadd.f32 %v4026_v34, %v2013_v58 }
 0x30f   : > { %v3181_v61 = vpop.f32.mrf.mxu0  ;;  %v3197_v18 = vpop.f32.mrf.mxu1 }
 0x310   : > { %2065 = vst [vmem:[#allocation9 + $0x20] sm:$0xff] %v1950_v59  ;;  %2081 = vst [vmem:[#allocation9 + $0xa0] sm:$0xff] %v2014_v60  ;;  %v1961_v19 = vadd.f32 %v3181_v61, %v4026_v34  ;;  %v2025_v8 = vadd.f32 %v3197_v18, %v4026_v34 }
 0x311   : > { %v1952_v63 = vpop.f32.mrf.mxu0  ;;  %v2016_v0 = vpop.f32.mrf.mxu1 }
 0x312   : > { %2068 = vst [vmem:[#allocation9 + $0x38] sm:$0xff] %v1961_v19  ;;  %2084 = vst [vmem:[#allocation9 + $0xb8] sm:$0xff] %v2025_v8  ;;  %v1953_v1 = vadd.f32 %v4026_v34, %v1952_v63  ;;  %v2017_v16 = vadd.f32 %v4026_v34, %v2016_v0 }
 0x313   : > { %v3184_v17 = vpop.f32.mrf.mxu0  ;;  %v3200_v20 = vpop.f32.mrf.mxu1 }
 0x314   : > { %2066 = vst [vmem:[#allocation9 + $0x28] sm:$0xff] %v1953_v1  ;;  %2082 = vst [vmem:[#allocation9 + $0xa8] sm:$0xff] %v2017_v16  ;;  %v1974_v21 = vadd.f32 %v3184_v17, %v4026_v34  ;;  %v2038_v22 = vadd.f32 %v3200_v20, %v4026_v34 }
 0x315   : > { %v1965_v23 = vpop.f32.mrf.mxu0  ;;  %v2029_v12 = vpop.f32.mrf.mxu1 }
 0x316   : > { %2071 = vst [vmem:[#allocation9 + $0x50] sm:$0xff] %v1974_v21  ;;  %2087 = vst [vmem:[#allocation9 + $0xd0] sm:$0xff] %v2038_v22  ;;  %v1966_v25 = vadd.f32 %v4026_v34, %v1965_v23  ;;  %v2030_v26 = vadd.f32 %v4026_v34, %v2029_v12 }
 0x317   : > { %v3185_v27 = vpop.f32.mrf.mxu0  ;;  %v3201_v28 = vpop.f32.mrf.mxu1 }
 0x318   : > { %2069 = vst [vmem:[#allocation9 + $0x40] sm:$0xff] %v1966_v25  ;;  %2085 = vst [vmem:[#allocation9 + $0xc0] sm:$0xff] %v2030_v26  ;;  %v1977_v7 = vadd.f32 %v3185_v27, %v4026_v34  ;;  %v2041_v29 = vadd.f32 %v3201_v28, %v4026_v34 }
 0x319   : > { %v1968_v6 = vpop.f32.mrf.mxu0  ;;  %v2032_v32 = vpop.f32.mrf.mxu1 }
 0x31a   : > { %2072 = vst [vmem:[#allocation9 + $0x58] sm:$0xff] %v1977_v7  ;;  %2088 = vst [vmem:[#allocation9 + $0xd8] sm:$0xff] %v2041_v29  ;;  %v1969_v33 = vadd.f32 %v4026_v34, %v1968_v6  ;;  %v2033_v35 = vadd.f32 %v4026_v34, %v2032_v32 }
 0x31b   : > { %v3188_v36 = vpop.f32.mrf.mxu0  ;;  %v3204_v37 = vpop.f32.mrf.mxu1 }
 0x31c   : > { %2070 = vst [vmem:[#allocation9 + $0x48] sm:$0xff] %v1969_v33  ;;  %2086 = vst [vmem:[#allocation9 + $0xc8] sm:$0xff] %v2033_v35  ;;  %v1990_v38 = vadd.f32 %v3188_v36, %v4026_v34  ;;  %v2054_v11 = vadd.f32 %v3204_v37, %v4026_v34 }
 0x31d   : > { %v1981_v39 = vpop.f32.mrf.mxu0  ;;  %v2045_v10 = vpop.f32.mrf.mxu1 }
 0x31e   : > { %2075 = vst [vmem:[#allocation9 + $0x70] sm:$0xff] %v1990_v38  ;;  %2091 = vst [vmem:[#allocation9 + $0xf0] sm:$0xff] %v2054_v11  ;;  %v1982_v44 = vadd.f32 %v4026_v34, %v1981_v39  ;;  %v2046_v45 = vadd.f32 %v4026_v34, %v2045_v10 }
 0x31f   : > { %v3189_v46 = vpop.f32.mrf.mxu0  ;;  %v3205_v47 = vpop.f32.mrf.mxu1 }
 0x320   : > { %2073 = vst [vmem:[#allocation9 + $0x60] sm:$0xff] %v1982_v44  ;;  %2089 = vst [vmem:[#allocation9 + $0xe0] sm:$0xff] %v2046_v45  ;;  %v1993_v48 = vadd.f32 %v3189_v46, %v4026_v34  ;;  %v2057_v49 = vadd.f32 %v3205_v47, %v4026_v34 }
 0x321   : > { %v1984_v50 = vpop.f32.mrf.mxu0  ;;  %v2048_v51 = vpop.f32.mrf.mxu1 }
 0x322   : > { %2076 = vst [vmem:[#allocation9 + $0x78] sm:$0xff] %v1993_v48  ;;  %2092 = vst [vmem:[#allocation9 + $0xf8] sm:$0xff] %v2057_v49  ;;  %v1985_v4 = vadd.f32 %v4026_v34, %v1984_v50  ;;  %v2049_v53 = vadd.f32 %v4026_v34, %v2048_v51 }
 0x324   : > { %2074 = vst [vmem:[#allocation9 + $0x68] sm:$0xff] %v1985_v4  ;;  %2090 = vst [vmem:[#allocation9 + $0xe8] sm:$0xff] %v2049_v53 }
 0x325 PF: > { %s2632_s16 = sshll.u32 %s3516_s18, 6  ;;  %3222 = vmatprep.mubr.bf16.mxu0 %v3888_v40  ;;  %3238 = vmatprep.mubr.bf16.mxu1 %v3890_v41  ;;  %v2097_v60 = vld [vmem:[#allocation9 + $0x18] sm:$0xff]  ;;  %v2095_v18 = vld [vmem:[#allocation9 + $0x8] sm:$0xff]  ;;  %v2100_v1 = vld [vmem:[#allocation9 + $0x30] sm:$0xff]  ;;  %s3534_s18 = smov [#allocation9]  }
 0x326   : > { %s4066_s25 = scalar_lea.vmem %s4119_s3, %s2632_s16  ;;  %v2116_v16 = vld [vmem:[#allocation9 + $0xb0] sm:$0xff]  ;;  %v2098_v23 = vld [vmem:[#allocation9 + $0x20] sm:$0xff]  ;;  %v2101_v7 = vld [vmem:[#allocation9 + $0x38] sm:$0xff]  ;;  %s2425_s26 = sshll.u32 %s3534_s18, 4  ;;  %s2426_s26 = int_to_ptr.vmem [resolvable:$true] %s2425_s26 }
 0x327   : > { %v3406_v54 = vld [vmem:[%s4066_s25 + $0x78] sm:$0xff]   ;;  %v3407_v34 = vld [vmem:[%s4066_s25 + $0x70] sm:$0xff]   ;;  %v3408_v40 = vld [vmem:[%s4066_s25 + $0x68] sm:$0xff]   ;;  %p4092_p7 = scmp.eq.s32.totalorder %s2512_s21, 1  ;;  %s3466_s24 = scalar_lea.vmem %s2426_s26, 4096 }
 0x328   : > { %3206 = vmatprep.subr.bf16.mxu0 %v3406_v54  ;;  %3286 = vmatprep.subr.bf16.mxu1 %v3406_v54  ;;  %v3409_v41 = vld [vmem:[%s4066_s25 + $0x60] sm:$0xff]   ;;  %v3410_v55 = vld [vmem:[%s4066_s25 + $0x58] sm:$0xff]   ;;  %v3411_v56 = vld [vmem:[%s4066_s25 + $0x50] sm:$0xff]   ;;  %p3467_p12 = scmp.ne.s32.totalorder %s2426_s26, %s3466_s24  ;;  %p3473_p1 = scmp.lt.s32.totalorder %s2426_s26, %s2426_s26 }
 0x329   : > { %3207 = vmatpush3.bf16.msra.mxu0 %v3406_v54  ;;  %3294 = vmatpush3.bf16.msra.mxu1 %v3406_v54  ;;  %v3412_v57 = vld [vmem:[%s4066_s25 + $0x48] sm:$0xff]   ;;  %v3413_v58 = vld [vmem:[%s4066_s25 + $0x40] sm:$0xff]   ;;  %v2117_v29 = vld [vmem:[#allocation9 + $0xb8] sm:$0xff]  ;;  %p3474_p2 = scmp.lt.s32.totalorder %s3466_s24, %s3466_s24 }
 0x32a   : > { %3208 = vmatprep.subr.bf16.mxu0 %v3407_v34  ;;  %3287 = vmatprep.subr.bf16.mxu1 %v3407_v34  ;;  %v2114_v12 = vld [vmem:[#allocation9 + $0xa0] sm:$0xff]  ;;  %v2099_v36 = vld [vmem:[#allocation9 + $0x28] sm:$0xff]  ;;  %v2104_v44 = vld [vmem:[#allocation9 + $0x50] sm:$0xff]  ;;  %p3468_p13 = pnand %p3467_p12, %p4092_p7 }
 0x32b   : > { %v2115_v37 = vld [vmem:[#allocation9 + $0xa8] sm:$0xff]  ;;  %v2120_v45 = vld [vmem:[#allocation9 + $0xd0] sm:$0xff]  ;;  %v2102_v50 = vld [vmem:[#allocation9 + $0x40] sm:$0xff]  ;;  %p3475_p5 = por %p3474_p2, %p3473_p1 }
 0x32c   : > { %v2118_v51 = vld [vmem:[#allocation9 + $0xc0] sm:$0xff]  ;;  %p3469_p0 = pneg %p3468_p13 }
 0x32d   : > { %3209 = vmatpush3.bf16.msra.mxu0 %v3407_v34  ;;  %3295 = vmatpush3.bf16.msra.mxu1 %v3407_v34 }
 0x32e   : > { %3210 = vmatprep.subr.bf16.mxu0 %v3408_v40  ;;  %3288 = vmatprep.subr.bf16.mxu1 %v3408_v40  ;;  %p3476_p8 = pnand %p3475_p5, %p3469_p0 }
 0x331   : > { %3211 = vmatpush3.bf16.msra.mxu0 %v3408_v40  ;;  %3296 = vmatpush3.bf16.msra.mxu1 %v3408_v40  ;;  %v2105_v40 = vld [vmem:[#allocation9 + $0x58] sm:$0xff] }
 0x332   : > { %3212 = vmatprep.subr.bf16.mxu0 %v3409_v41  ;;  %3289 = vmatprep.subr.bf16.mxu1 %v3409_v41 }
 0x335   : > { %3213 = vmatpush3.bf16.msra.mxu0 %v3409_v41  ;;  %3297 = vmatpush3.bf16.msra.mxu1 %v3409_v41  ;;  %v2121_v41 = vld [vmem:[#allocation9 + $0xd8] sm:$0xff] }
 0x336   : > { %3214 = vmatprep.subr.bf16.mxu0 %v3410_v55  ;;  %3290 = vmatprep.subr.bf16.mxu1 %v3410_v55 }
 0x339   : > { %3215 = vmatpush3.bf16.msra.mxu0 %v3410_v55  ;;  %3298 = vmatpush3.bf16.msra.mxu1 %v3410_v55 }
 0x33a   : > { %3216 = vmatprep.subr.bf16.mxu0 %v3411_v56  ;;  %3291 = vmatprep.subr.bf16.mxu1 %v3411_v56 }
 0x33d   : > { %3217 = vmatpush3.bf16.msra.mxu0 %v3411_v56  ;;  %3299 = vmatpush3.bf16.msra.mxu1 %v3411_v56 }
 0x33e   : > { %3218 = vmatprep.subr.bf16.mxu0 %v3412_v57  ;;  %3292 = vmatprep.subr.bf16.mxu1 %v3412_v57 }
 0x341   : > { %3219 = vmatpush3.bf16.msra.mxu0 %v3412_v57  ;;  %3300 = vmatpush3.bf16.msra.mxu1 %v3412_v57 }
 0x342   : > { %3220 = vmatprep.subr.bf16.mxu0 %v3413_v58  ;;  %3293 = vmatprep.subr.bf16.mxu1 %v3413_v58 }
 0x345   : > { %3221 = vmatpush3.bf16.msra.mxu0 %v3413_v58  ;;  %3301 = vmatpush3.bf16.msra.mxu1 %v3413_v58 }
 0x348   : > { %3223 = vmatmul.mubr.bf16.vlgmr.msra.gmra.mxu0 %v3902_v3  ;;  %3239 = vmatmul.mubr.bf16.vlgmr.msra.gmra.mxu1 %v3904_v5  ;;  %v2096_v3 = vld [vmem:[#allocation9 + $0x10] sm:$0xff] }
 0x349   : > { %3226 = vmatprep.mubr.bf16.mxu0 %v3914_v52  ;;  %3242 = vmatprep.mubr.bf16.mxu1 %v3916_v2  ;;  %v2112_v5 = vld [vmem:[#allocation9 + $0x90] sm:$0xff] }
 0x350   : > { %3227 = vmatmul.mubr.bf16.gmra.mxu0 %v3930_v30  ;;  %3243 = vmatmul.mubr.bf16.gmra.mxu1 %v3932_v31  ;;  %v2094_v30 = vld [vmem:[#allocation9] sm:$0xff] }
 0x351   : > { %3230 = vmatprep.mubr.bf16.mxu0 %v3942_v62  ;;  %3246 = vmatprep.mubr.bf16.mxu1 %v3944_v9  ;;  %v2110_v31 = vld [vmem:[#allocation9 + $0x80] sm:$0xff] }
 0x358   : > { %3231 = vmatmul.mubr.bf16.gmra.mxu0 %v3958_v42  ;;  %3247 = vmatmul.mubr.bf16.gmra.mxu1 %v3960_v43  ;;  %v2113_v43 = vld [vmem:[#allocation9 + $0x98] sm:$0xff] }
 0x359   : > { %3234 = vmatprep.mubr.bf16.mxu0 %v3970_v24  ;;  %3250 = vmatprep.mubr.bf16.mxu1 %v3972_v13 }
 0x360   : > { %3235 = vmatmul.mubr.bf16.gmra.mxu0 %v3986_v15  ;;  %3251 = vmatmul.mubr.bf16.gmra.mxu1 %v3988_v14  ;;  %v2111_v14 = vld [vmem:[#allocation9 + $0x88] sm:$0xff] }
 0x408   : > { %v3224_v52 = vpop.f32.mrf.mxu0  ;;  %v3240_v2 = vpop.f32.mrf.mxu1 }
 0x409   : > { %v2357_v62 = vadd.f32 %v3224_v52, %v2096_v3  ;;  %v2373_v9 = vadd.f32 %v3240_v2, %v2112_v5  ;;  %v2103_v3 = vld [vmem:[#allocation9 + $0x48] sm:$0xff] }
 0x40a   : > { %v2228_v59 = vpop.f32.mrf.mxu0  ;;  %v2292_v42 = vpop.f32.mrf.mxu1  ;;  %v2119_v5 = vld [vmem:[#allocation9 + $0xc8] sm:$0xff] }
 0x40b   : > { %2389 = vst [vmem:[#allocation9 + $0x10] sm:$0xff] %v2357_v62  ;;  %2405 = vst [vmem:[#allocation9 + $0x90] sm:$0xff] %v2373_v9  ;;  %v2355_v24 = vadd.f32 %v2228_v59, %v2094_v30  ;;  %v2371_v13 = vadd.f32 %v2292_v42, %v2110_v31  ;;  %v2108_v62 = vld [vmem:[#allocation9 + $0x70] sm:$0xff] }
 0x40c   : > { %v3225_v61 = vpop.f32.mrf.mxu0  ;;  %v3241_v15 = vpop.f32.mrf.mxu1  ;;  %v2124_v9 = vld [vmem:[#allocation9 + $0xf0] sm:$0xff] }
 0x40d   : > { %2387 = vst [vmem:[#allocation9] sm:$0xff] %v2355_v24  ;;  %2403 = vst [vmem:[#allocation9 + $0x80] sm:$0xff] %v2371_v13  ;;  %v2358_v19 = vadd.f32 %v3225_v61, %v2097_v60  ;;  %v2374_v8 = vadd.f32 %v3241_v15, %v2113_v43  ;;  %v2106_v24 = vld [vmem:[#allocation9 + $0x60] sm:$0xff] }
 0x40e   : > { %v2231_v63 = vpop.f32.mrf.mxu0  ;;  %v2295_v0 = vpop.f32.mrf.mxu1  ;;  %v2122_v13 = vld [vmem:[#allocation9 + $0xe0] sm:$0xff] }
 0x40f   : > { %2390 = vst [vmem:[#allocation9 + $0x18] sm:$0xff] %v2358_v19  ;;  %2406 = vst [vmem:[#allocation9 + $0x98] sm:$0xff] %v2374_v8  ;;  %v2356_v17 = vadd.f32 %v2231_v63, %v2095_v18  ;;  %v2372_v20 = vadd.f32 %v2295_v0, %v2111_v14  ;;  %v2109_v19 = vld [vmem:[#allocation9 + $0x78] sm:$0xff] }
 0x410   : > { %v3228_v21 = vpop.f32.mrf.mxu0  ;;  %v3244_v22 = vpop.f32.mrf.mxu1  ;;  %v2125_v8 = vld [vmem:[#allocation9 + $0xf8] sm:$0xff] }
 0x411   : > { %2388 = vst [vmem:[#allocation9 + $0x8] sm:$0xff] %v2356_v17  ;;  %2404 = vst [vmem:[#allocation9 + $0x88] sm:$0xff] %v2372_v20  ;;  %v2361_v25 = vadd.f32 %v3228_v21, %v2100_v1  ;;  %v2377_v26 = vadd.f32 %v3244_v22, %v2116_v16  ;;  %v2107_v17 = vld [vmem:[#allocation9 + $0x68] sm:$0xff] }
 0x412   : > { %v2244_v27 = vpop.f32.mrf.mxu0  ;;  %v2308_v28 = vpop.f32.mrf.mxu1  ;;  %v2123_v20 = vld [vmem:[#allocation9 + $0xe8] sm:$0xff] }
 0x413   : > { %2393 = vst [vmem:[#allocation9 + $0x30] sm:$0xff] %v2361_v25  ;;  %2409 = vst [vmem:[#allocation9 + $0xb0] sm:$0xff] %v2377_v26  ;;  %v2359_v6 = vadd.f32 %v2244_v27, %v2098_v23  ;;  %v2375_v32 = vadd.f32 %v2308_v28, %v2114_v12 }
 0x414   : > { %v3229_v33 = vpop.f32.mrf.mxu0  ;;  %v3245_v35 = vpop.f32.mrf.mxu1 }
 0x415   : > { %2391 = vst [vmem:[#allocation9 + $0x20] sm:$0xff] %v2359_v6  ;;  %2407 = vst [vmem:[#allocation9 + $0xa0] sm:$0xff] %v2375_v32  ;;  %v2362_v38 = vadd.f32 %v3229_v33, %v2101_v7  ;;  %v2378_v11 = vadd.f32 %v3245_v35, %v2117_v29 }
 0x416   : > { %v2247_v39 = vpop.f32.mrf.mxu0  ;;  %v2311_v10 = vpop.f32.mrf.mxu1 }
 0x417   : > { %2394 = vst [vmem:[#allocation9 + $0x38] sm:$0xff] %v2362_v38  ;;  %2410 = vst [vmem:[#allocation9 + $0xb8] sm:$0xff] %v2378_v11  ;;  %v2360_v46 = vadd.f32 %v2247_v39, %v2099_v36  ;;  %v2376_v47 = vadd.f32 %v2311_v10, %v2115_v37 }
 0x418   : > { %v3232_v48 = vpop.f32.mrf.mxu0  ;;  %v3248_v49 = vpop.f32.mrf.mxu1 }
 0x419   : > { %2392 = vst [vmem:[#allocation9 + $0x28] sm:$0xff] %v2360_v46  ;;  %2408 = vst [vmem:[#allocation9 + $0xa8] sm:$0xff] %v2376_v47  ;;  %v2365_v4 = vadd.f32 %v3232_v48, %v2104_v44  ;;  %v2381_v53 = vadd.f32 %v3248_v49, %v2120_v45 }
 0x41a   : > { %v2260_v54 = vpop.f32.mrf.mxu0  ;;  %v2324_v34 = vpop.f32.mrf.mxu1 }
 0x41b   : > { %2397 = vst [vmem:[#allocation9 + $0x50] sm:$0xff] %v2365_v4  ;;  %2413 = vst [vmem:[#allocation9 + $0xd0] sm:$0xff] %v2381_v53  ;;  %v2363_v55 = vadd.f32 %v2260_v54, %v2102_v50  ;;  %v2379_v56 = vadd.f32 %v2324_v34, %v2118_v51 }
 0x41c   : > { %v3233_v57 = vpop.f32.mrf.mxu0  ;;  %v3249_v58 = vpop.f32.mrf.mxu1 }
 0x41d   : > { %2395 = vst [vmem:[#allocation9 + $0x40] sm:$0xff] %v2363_v55  ;;  %2411 = vst [vmem:[#allocation9 + $0xc0] sm:$0xff] %v2379_v56  ;;  %v2366_v52 = vadd.f32 %v3233_v57, %v2105_v40  ;;  %v2382_v2 = vadd.f32 %v3249_v58, %v2121_v41 }
 0x41e   : > { %v2263_v30 = vpop.f32.mrf.mxu0  ;;  %v2327_v31 = vpop.f32.mrf.mxu1 }
 0x41f   : > { %2398 = vst [vmem:[#allocation9 + $0x58] sm:$0xff] %v2366_v52  ;;  %2414 = vst [vmem:[#allocation9 + $0xd8] sm:$0xff] %v2382_v2  ;;  %v2364_v59 = vadd.f32 %v2263_v30, %v2103_v3  ;;  %v2380_v42 = vadd.f32 %v2327_v31, %v2119_v5 }
 0x420   : > { %v3236_v60 = vpop.f32.mrf.mxu0  ;;  %v3252_v43 = vpop.f32.mrf.mxu1 }
 0x421   : > { %2396 = vst [vmem:[#allocation9 + $0x48] sm:$0xff] %v2364_v59  ;;  %2412 = vst [vmem:[#allocation9 + $0xc8] sm:$0xff] %v2380_v42  ;;  %v2369_v61 = vadd.f32 %v3236_v60, %v2108_v62  ;;  %v2385_v15 = vadd.f32 %v3252_v43, %v2124_v9 }
 0x422   : > { %v2276_v18 = vpop.f32.mrf.mxu0  ;;  %v2340_v14 = vpop.f32.mrf.mxu1 }
 0x423   : > { %2401 = vst [vmem:[#allocation9 + $0x70] sm:$0xff] %v2369_v61  ;;  %2417 = vst [vmem:[#allocation9 + $0xf0] sm:$0xff] %v2385_v15  ;;  %v2367_v63 = vadd.f32 %v2276_v18, %v2106_v24  ;;  %v2383_v0 = vadd.f32 %v2340_v14, %v2122_v13 }
 0x424   : > { %v3237_v1 = vpop.f32.mrf.mxu0  ;;  %v3253_v16 = vpop.f32.mrf.mxu1 }
 0x425   : > { %2399 = vst [vmem:[#allocation9 + $0x60] sm:$0xff] %v2367_v63  ;;  %2415 = vst [vmem:[#allocation9 + $0xe0] sm:$0xff] %v2383_v0  ;;  %v2370_v21 = vadd.f32 %v3237_v1, %v2109_v19  ;;  %v2386_v22 = vadd.f32 %v3253_v16, %v2125_v8 }
 0x426   : > { %v2279_v23 = vpop.f32.mrf.mxu0  ;;  %v2343_v12 = vpop.f32.mrf.mxu1 }
 0x427   : > { %2402 = vst [vmem:[#allocation9 + $0x78] sm:$0xff] %v2370_v21  ;;  %2418 = vst [vmem:[#allocation9 + $0xf8] sm:$0xff] %v2386_v22  ;;  %v2368_v25 = vadd.f32 %v2279_v23, %v2107_v17  ;;  %v2384_v26 = vadd.f32 %v2343_v12, %v2123_v20 }
 0x429   : > { %2400 = vst [vmem:[#allocation9 + $0x68] sm:$0xff] %v2368_v25  ;;  %2416 = vst [vmem:[#allocation9 + $0xe8] sm:$0xff] %v2384_v26 }
 0x42a   : > { %3479 = shalt.err (!%p3476_p8)
}
 0x42b   : > { %s3535_s21 = smov 128   ;;  %s3536_s28 = smov 8  }
 0x42c   : > { %3311 = dma.vmem_to_hbm [thread:$0]  (%p4092_p7), %s2426_s26, 4096, %s4121_s5, [#allocation6], %s3535_s21, %s3535_s21, %s3536_s28  }
 0x42d   : > { %3511 = dma.done.wait (%p4092_p7), [#allocation6], 4096  }
 0x42e   : > { %3513 = vsyncadd (%p4092_p7), [#allocation6], 4294963200 }
 0x42f PF: > { %s18_s20 = sadd.s32 1, %s3524_s20   ;;  %s4126_s18 = smov %s3520_s19 }
 0x430   : > { %p15_p9 = scmp.ge.s32.totalorder %s18_s20, 4   ;;  %s4127_s19 = smov %s4129_s22 }
 0x432   :  { %17 = sbr.rel (!%p15_p9) target bundleno = 4 (0x4), region = 97 }
 0x437   :  { %2441 = vsyncpa [#allocation5], 1 }
 0x438   :  { %2443 = vsyncpa [#allocation5 + $0x1], 1 }
 0x439   :  { %2444 = vsyncpa [#allocation8], 1 }
 0x43a   :  { %2445 = vsyncpa [#allocation6], 1 }
 0x43b   :  { %2447 = vsyncpa [#allocation6 + $0x1], 1 }

// kernel: tpu_custom_call.1
= control target key start
LH: loop header
LB: loop body
LE: loop exit
PB: predicated region body
PF: predicated region fallthrough
CT: control target
= control target key end

     0   :  { %10 = vsyncpa [#allocation5], 0  ;;  %s4116_s0 = inlined_call_operand.hbm [shape: s8[256,256], index: 0, kind: input, shape index: {}]   ;;  %s4117_s1 = inlined_call_operand.hbm [shape: bf16[256,128], index: 1, kind: input, shape index: {}]   ;;  %s4118_s2 = inlined_call_operand.vmem [shape: f32[256,1], index: 2, kind: input, shape index: {}]   ;;  %s4119_s3 = inlined_call_operand.vmem [shape: bf16[3,128,128], index: 3, kind: input, shape index: {}]   ;;  %s4120_s4 = inlined_call_operand.vmem [shape: f32[1,128], index: 4, kind: input, shape index: {}]   ;;  %s4121_s5 = inlined_call_operand.hbm [shape: f32[256,128], index: 5, kind: output, shape index: {}]  }
   0x1   :  { %11 = vsyncpa [#allocation8], 0 }
   0x2   :  { %12 = vsyncpa [#allocation6], 0  ;;  %s3567_s18 = smov 0   ;;  %s3569_s19 = smov 0  }
   0x3   :  { %s3571_s20 = smov 0  }
   0x4 LB: > { %s2512_s21 = sadd.s32 4294967295, %s3524_s20   ;;  %s37_s22 = sadd.s32 1, %s3520_s19  ;;  %s3524_s20 = sphi %s3571_s20, %s18_s20   ;;  %s3520_s19 = sphi %s3569_s19, %s4127_s19   ;;  %s3516_s18 = sphi %s3567_s18, %s4126_s18  }
   0x5   : > { %p39_p0 = scmp.ge.s32.totalorder %s37_s22, 2  ;;  %p2513_p1 = scmp.ge.s32.totalorder %s3524_s20, 1 }
   0x6   : > { %p168_p2 = scmp.lt.s32.totalorder %s3524_s20, 3  ;;  %p3594_p4 = scmp.eq.s32.totalorder %s2512_s21, 0 }
   0x7   : > { %s4129_s22 = smov (%p39_p0, %s37_s22), 0  ;;  %s3526_s25 = smov [#allocation4]  }
   0x8   : > { %p3588_p3 = pnand %p2513_p1, %p168_p2  ;;  %s180_s26 = sshll.u32 %s3526_s25, 4  ;;  %s181_s26 = int_to_ptr.vmem [resolvable:$true] %s180_s26 }
   0x9   : > { %s3527_s28 = smov [#allocation7]   ;;  %s3425_s30 = scalar_lea.vmem %s181_s26, 2048 }
   0xa   : > { %p3314_p5 = pneg %p3588_p3  ;;  %s193_s29 = sshll.u32 %s3527_s28, 4  ;;  %s194_s29 = int_to_ptr.vmem [resolvable:$true] %s193_s29 }
   0xb   : > { %p3426_p8 = scmp.ne.s32.totalorder %s181_s26, %s3425_s30  ;;  %p3433_p11 = scmp.lt.s32.totalorder %s181_s26, %s181_s26 }
   0xc   : > { %p3602_p6 = pnand %p3594_p4, %p3314_p5  ;;  %p3434_p12 = scmp.lt.s32.totalorder %s3425_s30, %s3425_s30 }
   0xe   : > { %p3416_p7 = pneg %p3602_p6  ;;  %p3435_p13 = por %p3434_p12, %p3433_p11 }
  0x10   : > { %p3428_p9 = pnand %p3426_p8, %p3416_p7 }
  0x12   : > { %p3429_p10 = pneg %p3428_p9 }
  0x14   : > { %p3436_p0 = pnand %p3435_p13, %p3429_p10 }
  0x16   : > { %3439 = shalt.err (!%p3436_p0)
}
  0x17   : > { %s3528_s6 = smov 256   ;;  %s3529_s7 = smov 16  }
  0x18   : > { %3317 = dma.hbm_to_vmem [thread:$0]  (!%p3602_p6), %s4116_s0, 2048, %s181_s26, [#allocation5], %s3528_s6, %s3528_s6, %s3529_s7  }
  0x19   : > { %s3451_s10 = scalar_lea.vmem %s194_s29, 2048  ;;  %p3459_p8 = scmp.lt.s32.totalorder %s194_s29, %s194_s29 }
  0x1a   : > { %p3452_p1 = scmp.ne.s32.totalorder %s194_s29, %s3451_s10  ;;  %p3460_p9 = scmp.lt.s32.totalorder %s3451_s10, %s3451_s10 }
  0x1c   : > { %p3454_p2 = pnand %p3452_p1, %p3416_p7  ;;  %p3461_p11 = por %p3460_p9, %p3459_p8 }
  0x1e   : > { %p3455_p5 = pneg %p3454_p2 }
  0x20   : > { %p3462_p10 = pnand %p3461_p11, %p3455_p5 }
  0x22   : > { %3465 = shalt.err (!%p3462_p10)
}
  0x23   : > { %s3530_s11 = smov 64   ;;  %s3531_s12 = smov 4  }
  0x24   : > { %3320 = dma.hbm_to_vmem [thread:$0]  (!%p3602_p6), %s4117_s1, 2048, %s194_s29, [#allocation8], %s3530_s11, %s3530_s11, %s3531_s12  }
  0x25   : > { %218 = sbr.rel (%p3588_p3) target bundleno = 1071 (0x42f), region = 40 }
  0x2a   : > { %3503 = dma.done.wait (%p3594_p4), [#allocation5], 2048  }
  0x2b   : > { %3505 = vsyncadd (%p3594_p4), [#allocation5], 4294965248 }
  0x2c   : > { %3507 = dma.done.wait (%p3594_p4), [#allocation8], 2048  }
  0x2d   : > { %3509 = vsyncadd (%p3594_p4), [#allocation8], 4294965248  ;;  %p241_p6 = scmp.lt.s32.totalorder %s3516_s18, 0  ;;  %s242_s15 = ssub.s32 0, %s3516_s18 }
  0x2e   : > { %s2519_s16 = smin.u32 %s3516_s18, %s242_s15  ;;  %p247_p3 = scmp.eq.s32.totalorder %s3516_s18, 0 }
  0x2f   : > { %s244_s17 = sand.u32 1, %s2519_s16   ;;  %v322_v0 = vld [vmem:[%s4118_s2 + $0x10] sm:$0xff] (%p247_p3)  ;;  %v320_v1 = vld [vmem:[%s4118_s2] sm:$0xff] (%p247_p3)  ;;  %v3532_v2 = vmov (%p247_p3), 0   ;;  %v323_v3 = vld [vmem:[%s4118_s2 + $0x18] sm:$0xff] (%p247_p3) }
  0x30   : > { %s245_s23 = ssub.s32 0, %s244_s17  ;;  %255 = sbr.rel (!%p247_p3) target bundleno = 238 (0xee), region = 52  ;;  %3363 = vset.pattern.permute.xlu1 (%p247_p3), %v3532_v2  ;;  %3362 = vset.pattern.permute.xlu0 (%p247_p3), %v3532_v2  ;;  %v321_v4 = vld [vmem:[%s4118_s2 + $0x8] sm:$0xff] (%p247_p3)  ;;  %v324_v6 = vld [vmem:[%s4118_s2 + $0x20] sm:$0xff] (%p247_p3)  ;;  %v327_v7 = vld [vmem:[%s4118_s2 + $0x38] sm:$0xff] (%p247_p3) }
  0x31   : > { %s4131_s23 = smov (!%p241_p6, %s245_s23), %s244_s17  ;;  %364 = vperm.xlu1 (%p247_p3), %3363, %v322_v0   ;;  %354 = vperm.xlu0 (%p247_p3), %3362, %v320_v1   ;;  %v325_v5 = vld [vmem:[%s4118_s2 + $0x28] sm:$0xff] (%p247_p3)  ;;  %v326_v8 = vld [vmem:[%s4118_s2 + $0x30] sm:$0xff] (%p247_p3)  ;;  %v328_v10 = vld [vmem:[%s4118_s2 + $0x40] sm:$0xff] (%p247_p3) }
  0x32   : > { %v329_v9 = vld [vmem:[%s4118_s2 + $0x48] sm:$0xff] (%p247_p3)  ;;  %v331_v11 = vld [vmem:[%s4118_s2 + $0x58] sm:$0xff] (%p247_p3)  ;;  %v330_v12 = vld [vmem:[%s4118_s2 + $0x50] sm:$0xff] (%p247_p3) }
  0x33   : > { %v333_v13 = vld [vmem:[%s4118_s2 + $0x68] sm:$0xff] (%p247_p3)  ;;  %v332_v14 = vld [vmem:[%s4118_s2 + $0x60] sm:$0xff] (%p247_p3)  ;;  %v335_v15 = vld [vmem:[%s4118_s2 + $0x78] sm:$0xff] (%p247_p3) }
  0x34   : > { %v334_v16 = vld [vmem:[%s4118_s2 + $0x70] sm:$0xff] (%p247_p3)  ;;  %v337_v17 = vld [vmem:[%s4118_s2 + $0x88] sm:$0xff] (%p247_p3)  ;;  %v336_v18 = vld [vmem:[%s4118_s2 + $0x80] sm:$0xff] (%p247_p3) }
  0x35   : > { %369 = vperm.xlu1 %3363, %v323_v3   ;;  %359 = vperm.xlu0 %3362, %v321_v4   ;;  %v339_v19 = vld [vmem:[%s4118_s2 + $0x98] sm:$0xff]  ;;  %v338_v20 = vld [vmem:[%s4118_s2 + $0x90] sm:$0xff]  ;;  %v341_v21 = vld [vmem:[%s4118_s2 + $0xa8] sm:$0xff] }
  0x36   : > { %v340_v22 = vld [vmem:[%s4118_s2 + $0xa0] sm:$0xff]  ;;  %v343_v23 = vld [vmem:[%s4118_s2 + $0xb8] sm:$0xff]  ;;  %v342_v24 = vld [vmem:[%s4118_s2 + $0xb0] sm:$0xff] }
  0x37   : > { %v345_v25 = vld [vmem:[%s4118_s2 + $0xc8] sm:$0xff]  ;;  %v344_v26 = vld [vmem:[%s4118_s2 + $0xc0] sm:$0xff]  ;;  %v347_v27 = vld [vmem:[%s4118_s2 + $0xd8] sm:$0xff] }
  0x38   : > { %v346_v28 = vld [vmem:[%s4118_s2 + $0xd0] sm:$0xff]  ;;  %v349_v29 = vld [vmem:[%s4118_s2 + $0xe8] sm:$0xff]  ;;  %v348_v30 = vld [vmem:[%s4118_s2 + $0xe0] sm:$0xff] }
  0x39   : > { %379 = vperm.xlu1 %3363, %v325_v5   ;;  %374 = vperm.xlu0 %3362, %v324_v6   ;;  %v351_v31 = vld [vmem:[%s4118_s2 + $0xf8] sm:$0xff]  ;;  %v350_v32 = vld [vmem:[%s4118_s2 + $0xf0] sm:$0xff]  ;;  %v2953_v33 = vld [vmem:[#allocation7 + $0x8] sm:$0xff]  }
  0x3a   : > { %v2730_v34 = vld [vmem:[#allocation7] sm:$0xff]   ;;  %v2735_v37 = vunpack.c.l.bf16 %v2953_v33  ;;  %v2736_v39 = vunpack.c.h.bf16 %v2953_v33  ;;  %v2954_v41 = vld [vmem:[#allocation7 + $0x10] sm:$0xff]   ;;  %v2955_v50 = vld [vmem:[#allocation7 + $0x18] sm:$0xff]  }
  0x3b   : > { %v2731_v38 = vunpack.c.l.bf16 %v2730_v34  ;;  %v2732_v40 = vunpack.c.h.bf16 %v2730_v34  ;;  %v2740_v44 = vunpack.c.h.bf16 %v2954_v41  ;;  %v2739_v45 = vunpack.c.l.bf16 %v2954_v41  ;;  %v2956_v59 = vld [vmem:[#allocation7 + $0x20] sm:$0xff]   ;;  %v2957_v3 = vld [vmem:[#allocation7 + $0x28] sm:$0xff]  }
  0x3c   : > { %v2744_v57 = vunpack.c.h.bf16 %v2955_v50  ;;  %v2743_v58 = vunpack.c.l.bf16 %v2955_v50  ;;  %v2748_v1 = vunpack.c.h.bf16 %v2956_v59  ;;  %v2747_v2 = vunpack.c.l.bf16 %v2956_v59  ;;  %v2964_v59 = vld [vmem:[#allocation7 + $0x60] sm:$0xff]  }
  0x3d   : > { %389 = vperm.xlu1 %3363, %v327_v7   ;;  %384 = vperm.xlu0 %3362, %v326_v8  }
  0x41   : > { %399 = vperm.xlu1 %3363, %v329_v9   ;;  %394 = vperm.xlu0 %3362, %v328_v10   ;;  %v2752_v9 = vunpack.c.h.bf16 %v2957_v3  ;;  %v2751_v10 = vunpack.c.l.bf16 %v2957_v3  ;;  %v2965_v3 = vld [vmem:[#allocation7 + $0x68] sm:$0xff]  }
  0x45   : > { %409 = vperm.xlu1 %3363, %v331_v11   ;;  %404 = vperm.xlu0 %3362, %v330_v12   ;;  %v2958_v11 = vld [vmem:[#allocation7 + $0x30] sm:$0xff]  }
  0x49   : > { %419 = vperm.xlu1 %3363, %v333_v13   ;;  %414 = vperm.xlu0 %3362, %v332_v14  }
  0x4d   : > { %429 = vperm.xlu1 %3363, %v335_v15   ;;  %424 = vperm.xlu0 %3362, %v334_v16  }
  0x51   : > { %439 = vperm.xlu1 %3363, %v337_v17   ;;  %434 = vperm.xlu0 %3362, %v336_v18   ;;  %v2756_v17 = vunpack.c.h.bf16 %v2958_v11  ;;  %v2755_v18 = vunpack.c.l.bf16 %v2958_v11  ;;  %v2966_v11 = vld [vmem:[#allocation7 + $0x70] sm:$0xff]  }
  0x55   : > { %449 = vperm.xlu1 %3363, %v339_v19   ;;  %444 = vperm.xlu0 %3362, %v338_v20   ;;  %v2959_v19 = vld [vmem:[#allocation7 + $0x38] sm:$0xff]  }
  0x59   : > { %459 = vperm.xlu1 %3363, %v341_v21   ;;  %454 = vperm.xlu0 %3362, %v340_v22  }
  0x5d   : > { %469 = vperm.xlu1 %3363, %v343_v23   ;;  %464 = vperm.xlu0 %3362, %v342_v24  }
  0x61   : > { %479 = vperm.xlu1 %3363, %v345_v25   ;;  %474 = vperm.xlu0 %3362, %v344_v26   ;;  %v2760_v25 = vunpack.c.h.bf16 %v2959_v19  ;;  %v2759_v26 = vunpack.c.l.bf16 %v2959_v19  ;;  %v2967_v19 = vld [vmem:[#allocation7 + $0x78] sm:$0xff]  }
  0x65   : > { %489 = vperm.xlu1 %3363, %v347_v27   ;;  %484 = vperm.xlu0 %3362, %v346_v28   ;;  %v2960_v27 = vld [vmem:[#allocation7 + $0x40] sm:$0xff]  }
  0x66   : > { %v2764_v33 = vunpack.c.h.bf16 %v2960_v27  ;;  %v2763_v34 = vunpack.c.l.bf16 %v2960_v27 }
  0x69   : > { %499 = vperm.xlu1 %3363, %v349_v29   ;;  %494 = vperm.xlu0 %3362, %v348_v30  }
  0x6d   : > { %509 = vperm.xlu1 %3363, %v351_v31   ;;  %504 = vperm.xlu0 %3362, %v350_v32  }
  0xac   : > { %v365_v35 = vpop.permute.xlu1 %364  ;;  %v355_v36 = vpop.permute.xlu0 %354 }
  0xad   : > { %v514_v46 = vmul.f32 %v2735_v37, %v365_v35  ;;  %v512_v47 = vmul.f32 %v2731_v38, %v355_v36  ;;  %v2961_v35 = vld [vmem:[#allocation7 + $0x48] sm:$0xff]  }
  0xae   : > { %v2768_v41 = vunpack.c.h.bf16 %v2961_v35 }
  0xb0   : > { %v370_v42 = vpop.permute.xlu1 %369  ;;  %v360_v43 = vpop.permute.xlu0 %359 }
  0xb1   : > { %v515_v48 = vmul.f32 %v2736_v39, %v370_v42  ;;  %v513_v49 = vmul.f32 %v2732_v40, %v360_v43  ;;  %v2767_v42 = vunpack.c.l.bf16 %v2961_v35  ;;  %v2962_v43 = vld [vmem:[#allocation7 + $0x50] sm:$0xff]  }
  0xb2   : > { %v2771_v50 = vunpack.c.l.bf16 %v2962_v43 }
  0xb3   : > { %v2801_v51 = vpack.c.bf16 %v515_v48, %v514_v46  ;;  %v2796_v52 = vpack.c.bf16 %v513_v49, %v512_v47  ;;  %v2772_v49 = vunpack.c.h.bf16 %v2962_v43 }
  0xb4   : > { %v380_v53 = vpop.permute.xlu1 %379  ;;  %v375_v54 = vpop.permute.xlu0 %374 }
  0xb5   : > { %2968 = vst [vmem:[#allocation2 + $0x8] sm:$0xff] %v2801_v51   ;;  %2797 = vst [vmem:[#allocation2] sm:$0xff] %v2796_v52   ;;  %v517_v55 = vmul.f32 %v2740_v44, %v380_v53  ;;  %v516_v56 = vmul.f32 %v2739_v45, %v375_v54  ;;  %v2963_v51 = vld [vmem:[#allocation7 + $0x58] sm:$0xff]  }
  0xb7   : > { %v2806_v60 = vpack.c.bf16 %v517_v55, %v516_v56 }
  0xb8   : > { %v390_v61 = vpop.permute.xlu1 %389  ;;  %v385_v62 = vpop.permute.xlu0 %384 }
  0xb9   : > { %2969 = vst [vmem:[#allocation2 + $0x10] sm:$0xff] %v2806_v60   ;;  %v519_v63 = vmul.f32 %v2744_v57, %v390_v61  ;;  %v518_v0 = vmul.f32 %v2743_v58, %v385_v62  ;;  %v2776_v57 = vunpack.c.h.bf16 %v2963_v51  ;;  %v2775_v58 = vunpack.c.l.bf16 %v2963_v51 }
  0xbb   : > { %v2811_v4 = vpack.c.bf16 %v519_v63, %v518_v0 }
  0xbc   : > { %v400_v5 = vpop.permute.xlu1 %399  ;;  %v395_v6 = vpop.permute.xlu0 %394 }
  0xbd   : > { %2970 = vst [vmem:[#allocation2 + $0x18] sm:$0xff] %v2811_v4   ;;  %v521_v7 = vmul.f32 %v2748_v1, %v400_v5  ;;  %v520_v8 = vmul.f32 %v2747_v2, %v395_v6  ;;  %v2780_v1 = vunpack.c.h.bf16 %v2964_v59  ;;  %v2779_v2 = vunpack.c.l.bf16 %v2964_v59 }
  0xbf   : > { %v2816_v12 = vpack.c.bf16 %v521_v7, %v520_v8 }
  0xc0   : > { %v410_v13 = vpop.permute.xlu1 %409  ;;  %v405_v14 = vpop.permute.xlu0 %404 }
  0xc1   : > { %2971 = vst [vmem:[#allocation2 + $0x20] sm:$0xff] %v2816_v12   ;;  %v523_v15 = vmul.f32 %v2752_v9, %v410_v13  ;;  %v522_v16 = vmul.f32 %v2751_v10, %v405_v14  ;;  %v2784_v9 = vunpack.c.h.bf16 %v2965_v3  ;;  %v2783_v10 = vunpack.c.l.bf16 %v2965_v3 }
  0xc3   : > { %v2821_v20 = vpack.c.bf16 %v523_v15, %v522_v16 }
  0xc4   : > { %v420_v21 = vpop.permute.xlu1 %419  ;;  %v415_v22 = vpop.permute.xlu0 %414 }
  0xc5   : > { %2972 = vst [vmem:[#allocation2 + $0x28] sm:$0xff] %v2821_v20   ;;  %v525_v23 = vmul.f32 %v2756_v17, %v420_v21  ;;  %v524_v24 = vmul.f32 %v2755_v18, %v415_v22  ;;  %v2788_v17 = vunpack.c.h.bf16 %v2966_v11  ;;  %v2787_v18 = vunpack.c.l.bf16 %v2966_v11 }
  0xc7   : > { %v2826_v28 = vpack.c.bf16 %v525_v23, %v524_v24 }
  0xc8   : > { %v430_v29 = vpop.permute.xlu1 %429  ;;  %v425_v30 = vpop.permute.xlu0 %424 }
  0xc9   : > { %2973 = vst [vmem:[#allocation2 + $0x30] sm:$0xff] %v2826_v28   ;;  %v527_v31 = vmul.f32 %v2760_v25, %v430_v29  ;;  %v526_v32 = vmul.f32 %v2759_v26, %v425_v30  ;;  %v2792_v25 = vunpack.c.h.bf16 %v2967_v19  ;;  %v2791_v26 = vunpack.c.l.bf16 %v2967_v19 }
  0xcb   : > { %v2831_v36 = vpack.c.bf16 %v527_v31, %v526_v32 }
  0xcc   : > { %v440_v37 = vpop.permute.xlu1 %439  ;;  %v435_v38 = vpop.permute.xlu0 %434 }
  0xcd   : > { %2974 = vst [vmem:[#allocation2 + $0x38] sm:$0xff] %v2831_v36   ;;  %v529_v39 = vmul.f32 %v2764_v33, %v440_v37  ;;  %v528_v40 = vmul.f32 %v2763_v34, %v435_v38 }
  0xcf   : > { %v2836_v44 = vpack.c.bf16 %v529_v39, %v528_v40 }
  0xd0   : > { %v450_v45 = vpop.permute.xlu1 %449  ;;  %v445_v46 = vpop.permute.xlu0 %444 }
  0xd1   : > { %2975 = vst [vmem:[#allocation2 + $0x40] sm:$0xff] %v2836_v44   ;;  %v531_v47 = vmul.f32 %v2768_v41, %v450_v45  ;;  %v530_v48 = vmul.f32 %v2767_v42, %v445_v46 }
  0xd3   : > { %v2841_v52 = vpack.c.bf16 %v531_v47, %v530_v48 }
  0xd4   : > { %v460_v53 = vpop.permute.xlu1 %459  ;;  %v455_v54 = vpop.permute.xlu0 %454 }
  0xd5   : > { %2976 = vst [vmem:[#allocation2 + $0x48] sm:$0xff] %v2841_v52   ;;  %v533_v55 = vmul.f32 %v2772_v49, %v460_v53  ;;  %v532_v56 = vmul.f32 %v2771_v50, %v455_v54 }
  0xd7   : > { %v2846_v60 = vpack.c.bf16 %v533_v55, %v532_v56 }
  0xd8   : > { %v470_v61 = vpop.permute.xlu1 %469  ;;  %v465_v62 = vpop.permute.xlu0 %464 }
  0xd9   : > { %2977 = vst [vmem:[#allocation2 + $0x50] sm:$0xff] %v2846_v60   ;;  %v535_v63 = vmul.f32 %v2776_v57, %v470_v61  ;;  %v534_v0 = vmul.f32 %v2775_v58, %v465_v62 }
  0xdb   : > { %v2851_v4 = vpack.c.bf16 %v535_v63, %v534_v0 }
  0xdc   : > { %v480_v5 = vpop.permute.xlu1 %479  ;;  %v475_v6 = vpop.permute.xlu0 %474 }
  0xdd   : > { %2978 = vst [vmem:[#allocation2 + $0x58] sm:$0xff] %v2851_v4   ;;  %v537_v7 = vmul.f32 %v2780_v1, %v480_v5  ;;  %v536_v8 = vmul.f32 %v2779_v2, %v475_v6 }
  0xdf   : > { %v2856_v12 = vpack.c.bf16 %v537_v7, %v536_v8 }
  0xe0   : > { %v490_v13 = vpop.permute.xlu1 %489  ;;  %v485_v14 = vpop.permute.xlu0 %484 }
  0xe1   : > { %2979 = vst [vmem:[#allocation2 + $0x60] sm:$0xff] %v2856_v12   ;;  %v539_v15 = vmul.f32 %v2784_v9, %v490_v13  ;;  %v538_v16 = vmul.f32 %v2783_v10, %v485_v14 }
  0xe3   : > { %v2861_v20 = vpack.c.bf16 %v539_v15, %v538_v16 }
  0xe4   : > { %v500_v21 = vpop.permute.xlu1 %499  ;;  %v495_v22 = vpop.permute.xlu0 %494 }
  0xe5   : > { %2980 = vst [vmem:[#allocation2 + $0x68] sm:$0xff] %v2861_v20   ;;  %v541_v23 = vmul.f32 %v2788_v17, %v500_v21  ;;  %v540_v24 = vmul.f32 %v2787_v18, %v495_v22 }
  0xe7   : > { %v2866_v27 = vpack.c.bf16 %v541_v23, %v540_v24 }
  0xe8   : > { %v510_v28 = vpop.permute.xlu1 %509  ;;  %v505_v29 = vpop.permute.xlu0 %504 }
  0xe9   : > { %2981 = vst [vmem:[#allocation2 + $0x70] sm:$0xff] %v2866_v27   ;;  %v543_v30 = vmul.f32 %v2792_v25, %v510_v28  ;;  %v542_v31 = vmul.f32 %v2791_v26, %v505_v29 }
  0xeb   : > { %v2871_v32 = vpack.c.bf16 %v543_v30, %v542_v31 }
  0xed   : > { %2982 = vst [vmem:[#allocation2 + $0x78] sm:$0xff] %v2871_v32  }
  0xee PF: > { %s2695_s6 = sshll.u32 %s4131_s23, 7  ;;  %v3737_v33 = vld [vmem:[#allocation4 + $0x8] sm:$0xff]  ;;  %v3533_v37 = vmov 0   ;;  %v1194_v38 = vld [vmem:[%s4118_s2 + $0x10] sm:$0xff]  ;;  %v1192_v39 = vld [vmem:[%s4118_s2] sm:$0xff]  ;;  %s1544_s15 = ssub.s32 1, %s4131_s23 }
  0xef   : > { %v3739_v34 = vld [vmem:[#allocation4 + $0x48] sm:$0xff]  ;;  %v766_v35 = vunpack.c.l.s8.bf16 %v3737_v33  ;;  %3365 = vset.pattern.permute.xlu1 %v3533_v37  ;;  %3364 = vset.pattern.permute.xlu0 %v3533_v37  ;;  %s3749_s11 = scalar_lea.vmem [#allocation2], %s2695_s6  ;;  %v1195_v51 = vld [vmem:[%s4118_s2 + $0x18] sm:$0xff]  ;;  %v1196_v55 = vld [vmem:[%s4118_s2 + $0x20] sm:$0xff]  ;;  %v768_v4 = vunpack.c.h.s8.bf16 %v3737_v33  ;;  %s2728_s16 = sshll.u32 %s1544_s15, 7 }
  0xf0   : > { %v782_v36 = vunpack.c.l.s8.bf16 %v3739_v34  ;;  %1268 = vperm.xlu1 %3365, %v1194_v38   ;;  %1258 = vperm.xlu0 %3364, %v1192_v39   ;;  %v1193_v52 = vld [vmem:[%s4118_s2 + $0x8] sm:$0xff]  ;;  %v1199_v58 = vld [vmem:[%s4118_s2 + $0x38] sm:$0xff]  ;;  %v1198_v59 = vld [vmem:[%s4118_s2 + $0x30] sm:$0xff]  ;;  %v784_v5 = vunpack.c.h.s8.bf16 %v3739_v34  ;;  %s3898_s23 = scalar_lea.vmem [#allocation2], %s2728_s16  ;;  %p2606_p4 = scmp.ne.s32.totalorder %s3516_s18, 0 }
  0xf1   : > { %995 = vmatprep.mubr.bf16.mxu0 %v766_v35  ;;  %v1197_v54 = vld [vmem:[%s4118_s2 + $0x28] sm:$0xff]  ;;  %v749_v61 = vld [vmem:[#allocation4] sm:$0xff]  ;;  %v1203_v6 = vld [vmem:[%s4118_s2 + $0x58] sm:$0xff] }
  0xf2   : > { %1059 = vmatprep.mubr.bf16.mxu1 %v782_v36  ;;  %v757_v62 = vld [vmem:[#allocation4 + $0x40] sm:$0xff]  ;;  %v1201_v0 = vld [vmem:[%s4118_s2 + $0x48] sm:$0xff]  ;;  %v765_v2 = vunpack.c.l.s8.bf16 %v749_v61  ;;  %v1202_v7 = vld [vmem:[%s4118_s2 + $0x50] sm:$0xff]  ;;  %v767_v12 = vunpack.c.h.s8.bf16 %v749_v61 }
  0xf3   : > { %v1200_v1 = vld [vmem:[%s4118_s2 + $0x40] sm:$0xff]  ;;  %v781_v3 = vunpack.c.l.s8.bf16 %v757_v62  ;;  %v752_v8 = vld [vmem:[#allocation4 + $0x18] sm:$0xff]  ;;  %v1205_v10 = vld [vmem:[%s4118_s2 + $0x68] sm:$0xff]  ;;  %v783_v13 = vunpack.c.h.s8.bf16 %v757_v62 }
  0xf4   : > { %v3366_v40 = vld [vmem:[%s3749_s11 + $0x78] sm:$0xff]   ;;  %v3368_v42 = vld [vmem:[%s3749_s11 + $0x70] sm:$0xff]   ;;  %v3370_v44 = vld [vmem:[%s3749_s11 + $0x68] sm:$0xff]   ;;  %1273 = vperm.xlu1 %3365, %v1195_v51   ;;  %1263 = vperm.xlu0 %3364, %v1193_v52   ;;  %v770_v14 = vunpack.c.l.s8.bf16 %v752_v8  ;;  %v772_v24 = vunpack.c.h.s8.bf16 %v752_v8 }
  0xf5   : > { %v3367_v41 = vld [vmem:[%s3749_s11 + $0x38] sm:$0xff]   ;;  %2998 = vmatprep.subr.bf16.mxu0 %v3366_v40  ;;  %3254 = vmatprep.subr.bf16.mxu1 %v3366_v40  ;;  %v3369_v43 = vld [vmem:[%s3749_s11 + $0x30] sm:$0xff]   ;;  %v3371_v45 = vld [vmem:[%s3749_s11 + $0x28] sm:$0xff]  }
  0xf6   : > { %2999 = vmatpush3.bf16.msra.mxu0 %v3367_v41  ;;  %3262 = vmatpush3.bf16.msra.mxu1 %v3367_v41  ;;  %v3372_v46 = vld [vmem:[%s3749_s11 + $0x60] sm:$0xff]   ;;  %v3374_v48 = vld [vmem:[%s3749_s11 + $0x58] sm:$0xff]   ;;  %v3376_v50 = vld [vmem:[%s3749_s11 + $0x50] sm:$0xff]  }
  0xf7   : > { %3000 = vmatprep.subr.bf16.mxu0 %v3368_v42  ;;  %3255 = vmatprep.subr.bf16.mxu1 %v3368_v42  ;;  %v3373_v47 = vld [vmem:[%s3749_s11 + $0x20] sm:$0xff]   ;;  %v3375_v49 = vld [vmem:[%s3749_s11 + $0x18] sm:$0xff]   ;;  %v3377_v53 = vld [vmem:[%s3749_s11 + $0x10] sm:$0xff]  }
  0xf8   : > { %v3378_v56 = vld [vmem:[%s3749_s11 + $0x48] sm:$0xff]   ;;  %1283 = vperm.xlu1 %3365, %v1197_v54   ;;  %1278 = vperm.xlu0 %3364, %v1196_v55   ;;  %v3380_v60 = vld [vmem:[%s3749_s11 + $0x40] sm:$0xff]   ;;  %v760_v9 = vld [vmem:[#allocation4 + $0x58] sm:$0xff] }
  0xf9   : > { %v3379_v57 = vld [vmem:[%s3749_s11 + $0x8] sm:$0xff]   ;;  %v3381_v63 = vld [vmem:[%s3749_s11] sm:$0xff]   ;;  %v786_v15 = vunpack.c.l.s8.bf16 %v760_v9  ;;  %v1207_v16 = vld [vmem:[%s4118_s2 + $0x78] sm:$0xff]  ;;  %v788_v25 = vunpack.c.h.s8.bf16 %v760_v9 }
  0xfa   : > { %3001 = vmatpush3.bf16.msra.mxu0 %v3369_v43  ;;  %3263 = vmatpush3.bf16.msra.mxu1 %v3369_v43  ;;  %v1204_v11 = vld [vmem:[%s4118_s2 + $0x60] sm:$0xff]  ;;  %v1206_v17 = vld [vmem:[%s4118_s2 + $0x70] sm:$0xff]  ;;  %v1209_v20 = vld [vmem:[%s4118_s2 + $0x88] sm:$0xff] }
  0xfb   : > { %3002 = vmatprep.subr.bf16.mxu0 %v3370_v44  ;;  %3256 = vmatprep.subr.bf16.mxu1 %v3370_v44  ;;  %v751_v18 = vld [vmem:[#allocation4 + $0x10] sm:$0xff]  ;;  %v1208_v21 = vld [vmem:[%s4118_s2 + $0x80] sm:$0xff]  ;;  %v1211_v26 = vld [vmem:[%s4118_s2 + $0x98] sm:$0xff] }
  0xfc   : > { %1293 = vperm.xlu1 %3365, %v1199_v58   ;;  %1288 = vperm.xlu0 %3364, %v1198_v59   ;;  %v759_v19 = vld [vmem:[#allocation4 + $0x50] sm:$0xff]  ;;  %v769_v22 = vunpack.c.l.s8.bf16 %v751_v18  ;;  %v754_v28 = vld [vmem:[#allocation4 + $0x28] sm:$0xff]  ;;  %v1212_v31 = vld [vmem:[%s4118_s2 + $0xa0] sm:$0xff]  ;;  %v771_v32 = vunpack.c.h.s8.bf16 %v751_v18 }
  0xfd   : > { %v785_v23 = vunpack.c.l.s8.bf16 %v759_v19  ;;  %v1210_v27 = vld [vmem:[%s4118_s2 + $0x90] sm:$0xff]  ;;  %v762_v29 = vld [vmem:[#allocation4 + $0x68] sm:$0xff]  ;;  %v787_v33 = vunpack.c.h.s8.bf16 %v759_v19  ;;  %v774_v34 = vunpack.c.l.s8.bf16 %v754_v28  ;;  %v1215_v36 = vld [vmem:[%s4118_s2 + $0xb8] sm:$0xff]  ;;  %v776_v44 = vunpack.c.h.s8.bf16 %v754_v28 }
  0xfe   : > { %3003 = vmatpush3.bf16.msra.mxu0 %v3371_v45  ;;  %3264 = vmatpush3.bf16.msra.mxu1 %v3371_v45  ;;  %v1213_v30 = vld [vmem:[%s4118_s2 + $0xa8] sm:$0xff]  ;;  %v790_v35 = vunpack.c.l.s8.bf16 %v762_v29  ;;  %v1214_v37 = vld [vmem:[%s4118_s2 + $0xb0] sm:$0xff]  ;;  %v753_v38 = vld [vmem:[#allocation4 + $0x20] sm:$0xff]  ;;  %v792_v45 = vunpack.c.h.s8.bf16 %v762_v29 }
  0xff   : > { %3004 = vmatprep.subr.bf16.mxu0 %v3372_v46  ;;  %3257 = vmatprep.subr.bf16.mxu1 %v3372_v46  ;;  %v761_v39 = vld [vmem:[#allocation4 + $0x60] sm:$0xff]  ;;  %v1217_v40 = vld [vmem:[%s4118_s2 + $0xc8] sm:$0xff]  ;;  %v773_v42 = vunpack.c.l.s8.bf16 %v753_v38  ;;  %v1219_v46 = vld [vmem:[%s4118_s2 + $0xd8] sm:$0xff]  ;;  %v775_v52 = vunpack.c.h.s8.bf16 %v753_v38 }
 0x100   : > { %1303 = vperm.xlu1 %3365, %v1201_v0   ;;  %1298 = vperm.xlu0 %3364, %v1200_v1   ;;  %v1216_v41 = vld [vmem:[%s4118_s2 + $0xc0] sm:$0xff]  ;;  %v789_v43 = vunpack.c.l.s8.bf16 %v761_v39  ;;  %v755_v58 = vld [vmem:[#allocation4 + $0x30] sm:$0xff] }
 0x101   : > { %v1220_v51 = vld [vmem:[%s4118_s2 + $0xe0] sm:$0xff]  ;;  %v763_v59 = vld [vmem:[#allocation4 + $0x70] sm:$0xff]  ;;  %v779_v0 = vunpack.c.h.s8.bf16 %v755_v58 }
 0x102   : > { %3005 = vmatpush3.bf16.msra.mxu0 %v3373_v47  ;;  %3265 = vmatpush3.bf16.msra.mxu1 %v3373_v47  ;;  %v1218_v47 = vld [vmem:[%s4118_s2 + $0xd0] sm:$0xff]  ;;  %v793_v61 = vunpack.c.l.s8.bf16 %v763_v59  ;;  %v795_v1 = vunpack.c.h.s8.bf16 %v763_v59 }
 0x103   : > { %3006 = vmatprep.subr.bf16.mxu0 %v3374_v48  ;;  %3258 = vmatprep.subr.bf16.mxu1 %v3374_v48  ;;  %v756_v48 = vld [vmem:[#allocation4 + $0x38] sm:$0xff] }
 0x104   : > { %1313 = vperm.xlu1 %3365, %v1203_v6   ;;  %1308 = vperm.xlu0 %3364, %v1202_v7   ;;  %v778_v54 = vunpack.c.l.s8.bf16 %v756_v48  ;;  %v780_v62 = vunpack.c.h.s8.bf16 %v756_v48 }
 0x106   : > { %3007 = vmatpush3.bf16.msra.mxu0 %v3375_v49  ;;  %3266 = vmatpush3.bf16.msra.mxu1 %v3375_v49  ;;  %v764_v49 = vld [vmem:[#allocation4 + $0x78] sm:$0xff] }
 0x107   : > { %3008 = vmatprep.subr.bf16.mxu0 %v3376_v50  ;;  %3259 = vmatprep.subr.bf16.mxu1 %v3376_v50  ;;  %v1221_v50 = vld [vmem:[%s4118_s2 + $0xe8] sm:$0xff]  ;;  %v794_v55 = vunpack.c.l.s8.bf16 %v764_v49 }
 0x108   : > { %1323 = vperm.xlu1 %3365, %v1205_v10   ;;  %1318 = vperm.xlu0 %3364, %v1204_v11  }
 0x10a   : > { %3009 = vmatpush3.bf16.msra.mxu0 %v3377_v53  ;;  %3267 = vmatpush3.bf16.msra.mxu1 %v3377_v53  ;;  %v791_v53 = vunpack.c.h.s8.bf16 %v761_v39 }
 0x10b   : > { %3010 = vmatprep.subr.bf16.mxu0 %v3378_v56  ;;  %3260 = vmatprep.subr.bf16.mxu1 %v3378_v56  ;;  %v1223_v56 = vld [vmem:[%s4118_s2 + $0xf8] sm:$0xff] }
 0x10c   : > { %1333 = vperm.xlu1 %3365, %v1207_v16   ;;  %1328 = vperm.xlu0 %3364, %v1206_v17  }
 0x10e   : > { %3011 = vmatpush3.bf16.msra.mxu0 %v3379_v57  ;;  %3268 = vmatpush3.bf16.msra.mxu1 %v3379_v57  ;;  %v1222_v57 = vld [vmem:[%s4118_s2 + $0xf0] sm:$0xff] }
 0x10f   : > { %3012 = vmatprep.subr.bf16.mxu0 %v3380_v60  ;;  %3261 = vmatprep.subr.bf16.mxu1 %v3380_v60  ;;  %v777_v60 = vunpack.c.l.s8.bf16 %v755_v58 }
 0x110   : > { %1343 = vperm.xlu1 %3365, %v1209_v20   ;;  %1338 = vperm.xlu0 %3364, %v1208_v21  }
 0x112   : > { %3013 = vmatpush3.bf16.msra.mxu0 %v3381_v63  ;;  %3269 = vmatpush3.bf16.msra.mxu1 %v3381_v63  ;;  %v796_v63 = vunpack.c.h.s8.bf16 %v764_v49 }
 0x114   : > { %1353 = vperm.xlu1 %3365, %v1211_v26   ;;  %1348 = vperm.xlu0 %3364, %v1210_v27  }
 0x115   : > { %996 = vmatmul.mubr.bf16.vlgmr.msra.gmra.mxu0 %v765_v2  ;;  %1060 = vmatmul.mubr.bf16.vlgmr.msra.gmra.mxu1 %v781_v3 }
 0x116   : > { %1003 = vmatprep.mubr.bf16.mxu0 %v768_v4  ;;  %1067 = vmatprep.mubr.bf16.mxu1 %v784_v5 }
 0x118   : > { %1363 = vperm.xlu1 %3365, %v1213_v30   ;;  %1358 = vperm.xlu0 %3364, %v1212_v31  }
 0x11c   : > { %1373 = vperm.xlu1 %3365, %v1215_v36   ;;  %1368 = vperm.xlu0 %3364, %v1214_v37  }
 0x11d   : > { %1004 = vmatmul.mubr.bf16.gmra.mxu0 %v767_v12  ;;  %1068 = vmatmul.mubr.bf16.gmra.mxu1 %v783_v13 }
 0x11e   : > { %1011 = vmatprep.mubr.bf16.mxu0 %v770_v14  ;;  %1075 = vmatprep.mubr.bf16.mxu1 %v786_v15 }
 0x120   : > { %1383 = vperm.xlu1 %3365, %v1217_v40   ;;  %1378 = vperm.xlu0 %3364, %v1216_v41  }
 0x124   : > { %1393 = vperm.xlu1 %3365, %v1219_v46   ;;  %1388 = vperm.xlu0 %3364, %v1218_v47  }
 0x125   : > { %1012 = vmatmul.mubr.bf16.gmra.mxu0 %v769_v22  ;;  %1076 = vmatmul.mubr.bf16.gmra.mxu1 %v785_v23 }
 0x126   : > { %1019 = vmatprep.mubr.bf16.mxu0 %v772_v24  ;;  %1083 = vmatprep.mubr.bf16.mxu1 %v788_v25 }
 0x128   : > { %1403 = vperm.xlu1 %3365, %v1221_v50   ;;  %1398 = vperm.xlu0 %3364, %v1220_v51  }
 0x12c   : > { %1413 = vperm.xlu1 %3365, %v1223_v56   ;;  %1408 = vperm.xlu0 %3364, %v1222_v57  }
 0x12d   : > { %1020 = vmatmul.mubr.bf16.gmra.mxu0 %v771_v32  ;;  %1084 = vmatmul.mubr.bf16.gmra.mxu1 %v787_v33 }
 0x12e   : > { %1027 = vmatprep.mubr.bf16.mxu0 %v774_v34  ;;  %1091 = vmatprep.mubr.bf16.mxu1 %v790_v35 }
 0x135   : > { %1028 = vmatmul.mubr.bf16.gmra.mxu0 %v773_v42  ;;  %1092 = vmatmul.mubr.bf16.gmra.mxu1 %v789_v43 }
 0x136   : > { %1035 = vmatprep.mubr.bf16.mxu0 %v776_v44  ;;  %1099 = vmatprep.mubr.bf16.mxu1 %v792_v45 }
 0x13d   : > { %1036 = vmatmul.mubr.bf16.gmra.mxu0 %v775_v52  ;;  %1100 = vmatmul.mubr.bf16.gmra.mxu1 %v791_v53 }
 0x13e   : > { %1043 = vmatprep.mubr.bf16.mxu0 %v778_v54  ;;  %1107 = vmatprep.mubr.bf16.mxu1 %v794_v55 }
 0x145   : > { %1044 = vmatmul.mubr.bf16.gmra.mxu0 %v777_v60  ;;  %1108 = vmatmul.mubr.bf16.gmra.mxu1 %v793_v61 }
 0x146   : > { %1051 = vmatprep.mubr.bf16.mxu0 %v780_v62  ;;  %1115 = vmatprep.mubr.bf16.mxu1 %v796_v63 }
 0x14d   : > { %1052 = vmatmul.mubr.bf16.gmra.mxu0 %v779_v0  ;;  %1116 = vmatmul.mubr.bf16.gmra.mxu1 %v795_v1 }
 0x16b   : > { %v3859_v2 = vpop.permute.xlu1 %1268  ;;  %v1259_v3 = vpop.permute.xlu0 %1258 }
 0x16f   : > { %v3861_v4 = vpop.permute.xlu1 %1273  ;;  %v1264_v5 = vpop.permute.xlu0 %1263 }
 0x173   : > { %v3863_v6 = vpop.permute.xlu1 %1283  ;;  %v3865_v7 = vpop.permute.xlu0 %1278 }
 0x177   : > { %v3867_v8 = vpop.permute.xlu1 %1293  ;;  %v3869_v9 = vpop.permute.xlu0 %1288 }
 0x17b   : > { %v3871_v10 = vpop.permute.xlu1 %1303  ;;  %v3873_v11 = vpop.permute.xlu0 %1298 }
 0x17f   : > { %v3875_v12 = vpop.permute.xlu1 %1313  ;;  %v3877_v13 = vpop.permute.xlu0 %1308 }
 0x183   : > { %v3879_v14 = vpop.permute.xlu1 %1323  ;;  %v3881_v15 = vpop.permute.xlu0 %1318 }
 0x187   : > { %v3883_v18 = vpop.permute.xlu1 %1333  ;;  %v3885_v19 = vpop.permute.xlu0 %1328 }
 0x18b   : > { %v1344_v28 = vpop.permute.xlu1 %1343  ;;  %v1339_v29 = vpop.permute.xlu0 %1338 }
 0x18f   : > { %v1354_v60 = vpop.permute.xlu1 %1353  ;;  %v1349_v61 = vpop.permute.xlu0 %1348 }
 0x1d5   : > { %v3014_v16 = vpop.f32.mrf.mxu0  ;;  %v3062_v17 = vpop.f32.mrf.mxu1 }
 0x1d7   : > { %v3015_v20 = vpop.f32.mrf.mxu0  ;;  %v3063_v21 = vpop.f32.mrf.mxu1 }
 0x1d8   : > { %v3016_v24 = vadd.f32 %v3015_v20, %v3014_v16  ;;  %v3064_v25 = vadd.f32 %v3063_v21, %v3062_v17 }
 0x1d9   : > { %v3017_v22 = vpop.f32.mrf.mxu0  ;;  %v3065_v23 = vpop.f32.mrf.mxu1 }
 0x1da   : > { %v1416_v34 = vmul.f32 %v3016_v24, %v1259_v3  ;;  %v1432_v35 = vmul.f32 %v3064_v25, %v1339_v29 }
 0x1db   : > { %v3018_v26 = vpop.f32.mrf.mxu0  ;;  %v3066_v27 = vpop.f32.mrf.mxu1 }
 0x1dc   : > { %v3019_v30 = vadd.f32 %v3018_v26, %v3017_v22  ;;  %v3067_v31 = vadd.f32 %v3066_v27, %v3065_v23 }
 0x1dd   : > { %v3020_v32 = vpop.f32.mrf.mxu0  ;;  %v3068_v33 = vpop.f32.mrf.mxu1 }
 0x1de   : > { %v1417_v36 = vmul.f32 %v3019_v30, %v1264_v5  ;;  %v1433_v37 = vmul.f32 %v3067_v31, %v1344_v28 }
 0x1df   : > { %v3021_v38 = vpop.f32.mrf.mxu0  ;;  %v3069_v39 = vpop.f32.mrf.mxu1 }
 0x1e0   : > { %v3888_v40 = vpack.c.bf16 %v1417_v36, %v1416_v34  ;;  %v3890_v41 = vpack.c.bf16 %v1433_v37, %v1432_v35  ;;  %v3022_v48 = vadd.f32 %v3021_v38, %v3020_v32  ;;  %v3070_v49 = vadd.f32 %v3069_v39, %v3068_v33  ;;  %v1364_v32 = vpop.permute.xlu1 %1363  ;;  %v1359_v33 = vpop.permute.xlu0 %1358 }
 0x1e1   : > { %v3023_v42 = vpop.f32.mrf.mxu0  ;;  %v3071_v43 = vpop.f32.mrf.mxu1 }
 0x1e2   : > { %v1464_v44 = vunpack.c.l.bf16 %v3888_v40  ;;  %v1465_v45 = vunpack.c.h.bf16 %v3888_v40  ;;  %v1480_v46 = vunpack.c.l.bf16 %v3890_v41  ;;  %v1481_v47 = vunpack.c.h.bf16 %v3890_v41 }
 0x1e3   : > { %v3024_v50 = vpop.f32.mrf.mxu0  ;;  %v3072_v51 = vpop.f32.mrf.mxu1  ;;  %v1418_v0 = vmul.f32 %v3022_v48, %v3859_v2  ;;  %v1434_v1 = vmul.f32 %v3070_v49, %v1349_v61 }
 0x1e4   : > { %v1496_v52 = vmul.f32 %v1464_v44, %v1259_v3  ;;  %v1497_v53 = vmul.f32 %v1465_v45, %v1264_v5  ;;  %v1512_v54 = vmul.f32 %v1480_v46, %v1339_v29  ;;  %v1513_v55 = vmul.f32 %v1481_v47, %v1344_v28 }
 0x1e5   : > { %v3025_v56 = vadd.f32 %v3024_v50, %v3023_v42  ;;  %v3073_v57 = vadd.f32 %v3072_v51, %v3071_v43  ;;  %v3026_v58 = vpop.f32.mrf.mxu0  ;;  %v3074_v59 = vpop.f32.mrf.mxu1 }
 0x1e6   : > { %v2876_v62 = vpack.c.bf16 %v1497_v53, %v1496_v52  ;;  %v2916_v63 = vpack.c.bf16 %v1513_v55, %v1512_v54 }
 0x1e7   : > { %v1419_v16 = vmul.f32 %v3025_v56, %v3861_v4  ;;  %v1435_v17 = vmul.f32 %v3073_v57, %v1354_v60  ;;  %v3027_v20 = vpop.f32.mrf.mxu0  ;;  %v3075_v21 = vpop.f32.mrf.mxu1 }
 0x1e8   : > { %2877 = vst [vmem:[%s3898_s23] sm:$0xff] %v2876_v62   ;;  %2990 = vst [vmem:[%s3898_s23 + $0x40] sm:$0xff] %v2916_v63   ;;  %v3028_v24 = vadd.f32 %v3027_v20, %v3026_v58  ;;  %v3076_v25 = vadd.f32 %v3075_v21, %v3074_v59 }
 0x1e9   : > { %v3902_v3 = vpack.c.bf16 %v1419_v16, %v1418_v0  ;;  %v3904_v5 = vpack.c.bf16 %v1435_v17, %v1434_v1  ;;  %v3029_v22 = vpop.f32.mrf.mxu0  ;;  %v3077_v23 = vpop.f32.mrf.mxu1 }
 0x1ea   : > { %v1420_v44 = vmul.f32 %v3028_v24, %v3865_v7  ;;  %v1436_v45 = vmul.f32 %v3076_v25, %v1359_v33 }
 0x1eb   : > { %v1466_v26 = vunpack.c.l.bf16 %v3902_v3  ;;  %v1467_v27 = vunpack.c.h.bf16 %v3902_v3  ;;  %v1482_v28 = vunpack.c.l.bf16 %v3904_v5  ;;  %v1483_v29 = vunpack.c.h.bf16 %v3904_v5  ;;  %v3030_v30 = vpop.f32.mrf.mxu0  ;;  %v3078_v31 = vpop.f32.mrf.mxu1 }
 0x1ec   : > { %v3031_v34 = vadd.f32 %v3030_v30, %v3029_v22  ;;  %v3079_v35 = vadd.f32 %v3078_v31, %v3077_v23  ;;  %v1374_v22 = vpop.permute.xlu1 %1373  ;;  %v1369_v23 = vpop.permute.xlu0 %1368 }
 0x1ed   : > { %v1498_v36 = vmul.f32 %v1466_v26, %v3859_v2  ;;  %v1499_v37 = vmul.f32 %v1467_v27, %v3861_v4  ;;  %v1514_v38 = vmul.f32 %v1482_v28, %v1349_v61  ;;  %v1515_v39 = vmul.f32 %v1483_v29, %v1354_v60  ;;  %v3032_v42 = vpop.f32.mrf.mxu0  ;;  %v3080_v43 = vpop.f32.mrf.mxu1 }
 0x1ee   : > { %v1421_v46 = vmul.f32 %v3031_v34, %v3863_v6  ;;  %v1437_v47 = vmul.f32 %v3079_v35, %v1364_v32 }
 0x1ef   : > { %v2881_v48 = vpack.c.bf16 %v1499_v37, %v1498_v36  ;;  %v2921_v49 = vpack.c.bf16 %v1515_v39, %v1514_v38  ;;  %v3033_v50 = vpop.f32.mrf.mxu0  ;;  %v3081_v51 = vpop.f32.mrf.mxu1 }
 0x1f0   : > { %v3914_v52 = vpack.c.bf16 %v1421_v46, %v1420_v44  ;;  %v3916_v2 = vpack.c.bf16 %v1437_v47, %v1436_v45  ;;  %v3034_v58 = vadd.f32 %v3033_v50, %v3032_v42  ;;  %v3082_v59 = vadd.f32 %v3081_v51, %v3080_v43  ;;  %v1384_v44 = vpop.permute.xlu1 %1383  ;;  %v1379_v45 = vpop.permute.xlu0 %1378 }
 0x1f1   : > { %2983 = vst [vmem:[%s3898_s23 + $0x8] sm:$0xff] %v2881_v48   ;;  %2991 = vst [vmem:[%s3898_s23 + $0x48] sm:$0xff] %v2921_v49   ;;  %v3035_v4 = vpop.f32.mrf.mxu0  ;;  %v3083_v53 = vpop.f32.mrf.mxu1 }
 0x1f2   : > { %v1468_v54 = vunpack.c.l.bf16 %v3914_v52  ;;  %v1469_v55 = vunpack.c.h.bf16 %v3914_v52  ;;  %v1484_v56 = vunpack.c.l.bf16 %v3916_v2  ;;  %v1485_v57 = vunpack.c.h.bf16 %v3916_v2 }
 0x1f3   : > { %v3036_v60 = vpop.f32.mrf.mxu0  ;;  %v3084_v61 = vpop.f32.mrf.mxu1  ;;  %v1422_v26 = vmul.f32 %v3034_v58, %v3869_v9  ;;  %v1438_v27 = vmul.f32 %v3082_v59, %v1369_v23 }
 0x1f4   : > { %v1500_v62 = vmul.f32 %v1468_v54, %v3865_v7  ;;  %v1501_v63 = vmul.f32 %v1469_v55, %v3863_v6  ;;  %v1516_v0 = vmul.f32 %v1484_v56, %v1359_v33  ;;  %v1517_v1 = vmul.f32 %v1485_v57, %v1364_v32 }
 0x1f5   : > { %v3037_v16 = vadd.f32 %v3036_v60, %v3035_v4  ;;  %v3085_v17 = vadd.f32 %v3084_v61, %v3083_v53  ;;  %v3038_v20 = vpop.f32.mrf.mxu0  ;;  %v3086_v21 = vpop.f32.mrf.mxu1 }
 0x1f6   : > { %v2886_v24 = vpack.c.bf16 %v1501_v63, %v1500_v62  ;;  %v2926_v25 = vpack.c.bf16 %v1517_v1, %v1516_v0 }
 0x1f7   : > { %v1423_v28 = vmul.f32 %v3037_v16, %v3867_v8  ;;  %v1439_v7 = vmul.f32 %v3085_v17, %v1374_v22  ;;  %v3039_v29 = vpop.f32.mrf.mxu0  ;;  %v3087_v6 = vpop.f32.mrf.mxu1 }
 0x1f8   : > { %2984 = vst [vmem:[%s3898_s23 + $0x10] sm:$0xff] %v2886_v24   ;;  %2992 = vst [vmem:[%s3898_s23 + $0x50] sm:$0xff] %v2926_v25   ;;  %v3040_v34 = vadd.f32 %v3039_v29, %v3038_v20  ;;  %v3088_v35 = vadd.f32 %v3087_v6, %v3086_v21 }
 0x1f9   : > { %v3930_v30 = vpack.c.bf16 %v1423_v28, %v1422_v26  ;;  %v3932_v31 = vpack.c.bf16 %v1439_v7, %v1438_v27  ;;  %v3041_v32 = vpop.f32.mrf.mxu0  ;;  %v3089_v33 = vpop.f32.mrf.mxu1 }
 0x1fa   : > { %v1424_v54 = vmul.f32 %v3040_v34, %v3873_v11  ;;  %v1440_v55 = vmul.f32 %v3088_v35, %v1379_v45 }
 0x1fb   : > { %v1470_v36 = vunpack.c.l.bf16 %v3930_v30  ;;  %v1471_v37 = vunpack.c.h.bf16 %v3930_v30  ;;  %v1486_v38 = vunpack.c.l.bf16 %v3932_v31  ;;  %v1487_v39 = vunpack.c.h.bf16 %v3932_v31  ;;  %v3042_v42 = vpop.f32.mrf.mxu0  ;;  %v3090_v43 = vpop.f32.mrf.mxu1 }
 0x1fc   : > { %v3043_v46 = vadd.f32 %v3042_v42, %v3041_v32  ;;  %v3091_v47 = vadd.f32 %v3090_v43, %v3089_v33  ;;  %v1394_v32 = vpop.permute.xlu1 %1393  ;;  %v1389_v33 = vpop.permute.xlu0 %1388 }
 0x1fd   : > { %v1502_v48 = vmul.f32 %v1470_v36, %v3869_v9  ;;  %v1503_v49 = vmul.f32 %v1471_v37, %v3867_v8  ;;  %v1518_v50 = vmul.f32 %v1486_v38, %v1369_v23  ;;  %v1519_v51 = vmul.f32 %v1487_v39, %v1374_v22  ;;  %v3044_v4 = vpop.f32.mrf.mxu0  ;;  %v3092_v53 = vpop.f32.mrf.mxu1 }
 0x1fe   : > { %v1425_v56 = vmul.f32 %v3043_v46, %v3871_v10  ;;  %v1441_v57 = vmul.f32 %v3091_v47, %v1384_v44 }
 0x1ff   : > { %v2891_v58 = vpack.c.bf16 %v1503_v49, %v1502_v48  ;;  %v2931_v59 = vpack.c.bf16 %v1519_v51, %v1518_v50  ;;  %v3045_v60 = vpop.f32.mrf.mxu0  ;;  %v3093_v61 = vpop.f32.mrf.mxu1 }
 0x200   : > { %v3942_v62 = vpack.c.bf16 %v1425_v56, %v1424_v54  ;;  %v3944_v9 = vpack.c.bf16 %v1441_v57, %v1440_v55  ;;  %v3046_v20 = vadd.f32 %v3045_v60, %v3044_v4  ;;  %v3094_v21 = vadd.f32 %v3093_v61, %v3092_v53  ;;  %v1404_v54 = vpop.permute.xlu1 %1403  ;;  %v1399_v55 = vpop.permute.xlu0 %1398 }
 0x201   : > { %2985 = vst [vmem:[%s3898_s23 + $0x18] sm:$0xff] %v2891_v58   ;;  %2993 = vst [vmem:[%s3898_s23 + $0x58] sm:$0xff] %v2931_v59   ;;  %v3047_v8 = vpop.f32.mrf.mxu0  ;;  %v3095_v63 = vpop.f32.mrf.mxu1 }
 0x202   : > { %v1472_v0 = vunpack.c.l.bf16 %v3942_v62  ;;  %v1473_v1 = vunpack.c.h.bf16 %v3942_v62  ;;  %v1488_v16 = vunpack.c.l.bf16 %v3944_v9  ;;  %v1489_v17 = vunpack.c.h.bf16 %v3944_v9 }
 0x203   : > { %v3048_v22 = vpop.f32.mrf.mxu0  ;;  %v3096_v23 = vpop.f32.mrf.mxu1  ;;  %v1426_v36 = vmul.f32 %v3046_v20, %v3877_v13  ;;  %v1442_v37 = vmul.f32 %v3094_v21, %v1389_v33 }
 0x204   : > { %v1504_v24 = vmul.f32 %v1472_v0, %v3873_v11  ;;  %v1505_v25 = vmul.f32 %v1473_v1, %v3871_v10  ;;  %v1520_v26 = vmul.f32 %v1488_v16, %v1379_v45  ;;  %v1521_v27 = vmul.f32 %v1489_v17, %v1384_v44 }
 0x205   : > { %v3049_v28 = vadd.f32 %v3048_v22, %v3047_v8  ;;  %v3097_v7 = vadd.f32 %v3096_v23, %v3095_v63  ;;  %v3050_v29 = vpop.f32.mrf.mxu0  ;;  %v3098_v6 = vpop.f32.mrf.mxu1 }
 0x206   : > { %v2896_v34 = vpack.c.bf16 %v1505_v25, %v1504_v24  ;;  %v2936_v35 = vpack.c.bf16 %v1521_v27, %v1520_v26 }
 0x207   : > { %v1427_v38 = vmul.f32 %v3049_v28, %v3875_v12  ;;  %v1443_v11 = vmul.f32 %v3097_v7, %v1394_v32  ;;  %v3051_v39 = vpop.f32.mrf.mxu0  ;;  %v3099_v10 = vpop.f32.mrf.mxu1 }
 0x208   : > { %2986 = vst [vmem:[%s3898_s23 + $0x20] sm:$0xff] %v2896_v34   ;;  %2994 = vst [vmem:[%s3898_s23 + $0x60] sm:$0xff] %v2936_v35   ;;  %v3052_v46 = vadd.f32 %v3051_v39, %v3050_v29  ;;  %v3100_v47 = vadd.f32 %v3099_v10, %v3098_v6  ;;  %v1414_v39 = vpop.permute.xlu1 %1413  ;;  %v1409_v10 = vpop.permute.xlu0 %1408 }
 0x209   : > { %v3958_v42 = vpack.c.bf16 %v1427_v38, %v1426_v36  ;;  %v3960_v43 = vpack.c.bf16 %v1443_v11, %v1442_v37  ;;  %v3053_v44 = vpop.f32.mrf.mxu0  ;;  %v3101_v45 = vpop.f32.mrf.mxu1 }
 0x20a   : > { %v1428_v0 = vmul.f32 %v3052_v46, %v3881_v15  ;;  %v1444_v1 = vmul.f32 %v3100_v47, %v1399_v55 }
 0x20b   : > { %v1474_v48 = vunpack.c.l.bf16 %v3958_v42  ;;  %v1475_v49 = vunpack.c.h.bf16 %v3958_v42  ;;  %v1490_v50 = vunpack.c.l.bf16 %v3960_v43  ;;  %v1491_v51 = vunpack.c.h.bf16 %v3960_v43  ;;  %v3054_v4 = vpop.f32.mrf.mxu0  ;;  %v3102_v53 = vpop.f32.mrf.mxu1 }
 0x20c   : > { %v3055_v56 = vadd.f32 %v3054_v4, %v3053_v44  ;;  %v3103_v57 = vadd.f32 %v3102_v53, %v3101_v45 }
 0x20d   : > { %v1506_v58 = vmul.f32 %v1474_v48, %v3877_v13  ;;  %v1507_v59 = vmul.f32 %v1475_v49, %v3875_v12  ;;  %v1522_v60 = vmul.f32 %v1490_v50, %v1389_v33  ;;  %v1523_v61 = vmul.f32 %v1491_v51, %v1394_v32  ;;  %v3056_v8 = vpop.f32.mrf.mxu0  ;;  %v3104_v63 = vpop.f32.mrf.mxu1 }
 0x20e   : > { %v1429_v16 = vmul.f32 %v3055_v56, %v3879_v14  ;;  %v1445_v17 = vmul.f32 %v3103_v57, %v1404_v54 }
 0x20f   : > { %v2901_v20 = vpack.c.bf16 %v1507_v59, %v1506_v58  ;;  %v2941_v21 = vpack.c.bf16 %v1523_v61, %v1522_v60  ;;  %v3057_v22 = vpop.f32.mrf.mxu0  ;;  %v3105_v23 = vpop.f32.mrf.mxu1 }
 0x210   : > { %v3970_v24 = vpack.c.bf16 %v1429_v16, %v1428_v0  ;;  %v3972_v13 = vpack.c.bf16 %v1445_v17, %v1444_v1  ;;  %v3058_v29 = vadd.f32 %v3057_v22, %v3056_v8  ;;  %v3106_v6 = vadd.f32 %v3105_v23, %v3104_v63 }
 0x211   : > { %2987 = vst [vmem:[%s3898_s23 + $0x28] sm:$0xff] %v2901_v20   ;;  %2995 = vst [vmem:[%s3898_s23 + $0x68] sm:$0xff] %v2941_v21   ;;  %v3059_v12 = vpop.f32.mrf.mxu0  ;;  %v3107_v25 = vpop.f32.mrf.mxu1 }
 0x212   : > { %v1476_v26 = vunpack.c.l.bf16 %v3970_v24  ;;  %v1477_v27 = vunpack.c.h.bf16 %v3970_v24  ;;  %v1492_v28 = vunpack.c.l.bf16 %v3972_v13  ;;  %v1493_v7 = vunpack.c.h.bf16 %v3972_v13 }
 0x213   : > { %v3060_v32 = vpop.f32.mrf.mxu0  ;;  %v3108_v33 = vpop.f32.mrf.mxu1  ;;  %v1430_v46 = vmul.f32 %v3058_v29, %v3885_v19  ;;  %v1446_v47 = vmul.f32 %v3106_v6, %v1409_v10 }
 0x214   : > { %v1508_v34 = vmul.f32 %v1476_v26, %v3881_v15  ;;  %v1509_v35 = vmul.f32 %v1477_v27, %v3879_v14  ;;  %v1524_v36 = vmul.f32 %v1492_v28, %v1399_v55  ;;  %v1525_v37 = vmul.f32 %v1493_v7, %v1404_v54 }
 0x215   : > { %v3061_v38 = vadd.f32 %v3060_v32, %v3059_v12  ;;  %v3109_v11 = vadd.f32 %v3108_v33, %v3107_v25 }
 0x216   : > { %v2906_v44 = vpack.c.bf16 %v1509_v35, %v1508_v34  ;;  %v2946_v45 = vpack.c.bf16 %v1525_v37, %v1524_v36 }
 0x217   : > { %v1431_v48 = vmul.f32 %v3061_v38, %v3883_v18  ;;  %v1447_v49 = vmul.f32 %v3109_v11, %v1414_v39 }
 0x218   : > { %2988 = vst [vmem:[%s3898_s23 + $0x30] sm:$0xff] %v2906_v44   ;;  %2996 = vst [vmem:[%s3898_s23 + $0x70] sm:$0xff] %v2946_v45  }
 0x219   : > { %v3986_v15 = vpack.c.bf16 %v1431_v48, %v1430_v46  ;;  %v3988_v14 = vpack.c.bf16 %v1447_v49, %v1446_v47 }
 0x21b   : > { %v1478_v50 = vunpack.c.l.bf16 %v3986_v15  ;;  %v1479_v51 = vunpack.c.h.bf16 %v3986_v15  ;;  %v1494_v4 = vunpack.c.l.bf16 %v3988_v14  ;;  %v1495_v53 = vunpack.c.h.bf16 %v3988_v14 }
 0x21d   : > { %v1510_v54 = vmul.f32 %v1478_v50, %v3885_v19  ;;  %v1511_v55 = vmul.f32 %v1479_v51, %v3883_v18  ;;  %v1526_v56 = vmul.f32 %v1494_v4, %v1409_v10  ;;  %v1527_v57 = vmul.f32 %v1495_v53, %v1414_v39  ;;  %1697 = sbr.rel (%p2606_p4) target bundleno = 805 (0x325), region = 64 }
 0x21f   : > { %v2911_v58 = vpack.c.bf16 %v1511_v55, %v1510_v54  ;;  %v2951_v59 = vpack.c.bf16 %v1527_v57, %v1526_v56 }
 0x221   : > { %2989 = vst [vmem:[%s3898_s23 + $0x38] sm:$0xff] %v2911_v58   ;;  %2997 = vst [vmem:[%s3898_s23 + $0x78] sm:$0xff] %v2951_v59  }
 0x222   : > { %v3382_v60 = vld [vmem:[%s4119_s3 + $0x38] sm:$0xff]   ;;  %v3383_v61 = vld [vmem:[%s4119_s3 + $0x30] sm:$0xff]   ;;  %v3384_v18 = vld [vmem:[%s4119_s3 + $0x28] sm:$0xff]  }
 0x223   : > { %3158 = vmatprep.subr.bf16.mxu0 %v3382_v60  ;;  %3270 = vmatprep.subr.bf16.mxu1 %v3382_v60  ;;  %v3385_v19 = vld [vmem:[%s4119_s3 + $0x20] sm:$0xff]   ;;  %v3386_v0 = vld [vmem:[%s4119_s3 + $0x18] sm:$0xff]   ;;  %v3387_v1 = vld [vmem:[%s4119_s3 + $0x10] sm:$0xff]  }
 0x224   : > { %3159 = vmatpush3.bf16.msra.mxu0 %v3382_v60  ;;  %3278 = vmatpush3.bf16.msra.mxu1 %v3382_v60  ;;  %v3390_v8 = vld [vmem:[#allocation7] sm:$0xff]   ;;  %v3388_v16 = vld [vmem:[%s4119_s3 + $0x8] sm:$0xff]   ;;  %v3394_v22 = vld [vmem:[#allocation7 + $0x10] sm:$0xff]  }
 0x225   : > { %3160 = vmatprep.subr.bf16.mxu0 %v3383_v61  ;;  %3271 = vmatprep.subr.bf16.mxu1 %v3383_v61  ;;  %v3391_v63 = vld [vmem:[#allocation7 + $0x40] sm:$0xff]   ;;  %v3392_v20 = vld [vmem:[#allocation7 + $0x8] sm:$0xff]   ;;  %v3395_v23 = vld [vmem:[#allocation7 + $0x50] sm:$0xff]  }
 0x226   : > { %3174 = vmatprep.mubr.bf16.mxu0 %v3390_v8  ;;  %3190 = vmatprep.mubr.bf16.mxu1 %v3391_v63  ;;  %v3389_v17 = vld [vmem:[%s4119_s3] sm:$0xff]   ;;  %v3393_v21 = vld [vmem:[#allocation7 + $0x48] sm:$0xff]   ;;  %v3396_v12 = vld [vmem:[#allocation7 + $0x18] sm:$0xff]  }
 0x227   : > { %v3397_v25 = vld [vmem:[#allocation7 + $0x58] sm:$0xff]   ;;  %v3398_v26 = vld [vmem:[#allocation7 + $0x20] sm:$0xff]   ;;  %v3400_v28 = vld [vmem:[#allocation7 + $0x28] sm:$0xff]  }
 0x228   : > { %3161 = vmatpush3.bf16.msra.mxu0 %v3383_v61  ;;  %3279 = vmatpush3.bf16.msra.mxu1 %v3383_v61  ;;  %v3399_v27 = vld [vmem:[#allocation7 + $0x60] sm:$0xff]   ;;  %v3401_v7 = vld [vmem:[#allocation7 + $0x68] sm:$0xff]   ;;  %v3402_v29 = vld [vmem:[#allocation7 + $0x30] sm:$0xff]  }
 0x229   : > { %3162 = vmatprep.subr.bf16.mxu0 %v3384_v18  ;;  %3272 = vmatprep.subr.bf16.mxu1 %v3384_v18  ;;  %v3403_v6 = vld [vmem:[#allocation7 + $0x70] sm:$0xff]   ;;  %v3404_v32 = vld [vmem:[#allocation7 + $0x38] sm:$0xff]   ;;  %v4026_v34 = vld [vmem:[%s4120_s4] ss:$0 sm:$0xff] }
 0x22a   : > { %v3405_v33 = vld [vmem:[#allocation7 + $0x78] sm:$0xff]  }
 0x22c   : > { %3163 = vmatpush3.bf16.msra.mxu0 %v3384_v18  ;;  %3280 = vmatpush3.bf16.msra.mxu1 %v3384_v18 }
 0x22d   : > { %3164 = vmatprep.subr.bf16.mxu0 %v3385_v19  ;;  %3273 = vmatprep.subr.bf16.mxu1 %v3385_v19 }
 0x230   : > { %3165 = vmatpush3.bf16.msra.mxu0 %v3385_v19  ;;  %3281 = vmatpush3.bf16.msra.mxu1 %v3385_v19 }
 0x231   : > { %3166 = vmatprep.subr.bf16.mxu0 %v3386_v0  ;;  %3274 = vmatprep.subr.bf16.mxu1 %v3386_v0 }
 0x234   : > { %3167 = vmatpush3.bf16.msra.mxu0 %v3386_v0  ;;  %3282 = vmatpush3.bf16.msra.mxu1 %v3386_v0 }
 0x235   : > { %3168 = vmatprep.subr.bf16.mxu0 %v3387_v1  ;;  %3275 = vmatprep.subr.bf16.mxu1 %v3387_v1 }
 0x238   : > { %3169 = vmatpush3.bf16.msra.mxu0 %v3387_v1  ;;  %3283 = vmatpush3.bf16.msra.mxu1 %v3387_v1 }
 0x239   : > { %3170 = vmatprep.subr.bf16.mxu0 %v3388_v16  ;;  %3276 = vmatprep.subr.bf16.mxu1 %v3388_v16 }
 0x23c   : > { %3171 = vmatpush3.bf16.msra.mxu0 %v3388_v16  ;;  %3284 = vmatpush3.bf16.msra.mxu1 %v3388_v16 }
 0x23d   : > { %3172 = vmatprep.subr.bf16.mxu0 %v3389_v17  ;;  %3277 = vmatprep.subr.bf16.mxu1 %v3389_v17 }
 0x240   : > { %3173 = vmatpush3.bf16.msra.mxu0 %v3389_v17  ;;  %3285 = vmatpush3.bf16.msra.mxu1 %v3389_v17 }
 0x243   : > { %3175 = vmatmul.mubr.bf16.vlgmr.msra.gmra.mxu0 %v3392_v20  ;;  %3191 = vmatmul.mubr.bf16.vlgmr.msra.gmra.mxu1 %v3393_v21 }
 0x244   : > { %3178 = vmatprep.mubr.bf16.mxu0 %v3394_v22  ;;  %3194 = vmatprep.mubr.bf16.mxu1 %v3395_v23 }
 0x24b   : > { %3179 = vmatmul.mubr.bf16.gmra.mxu0 %v3396_v12  ;;  %3195 = vmatmul.mubr.bf16.gmra.mxu1 %v3397_v25 }
 0x24c   : > { %3182 = vmatprep.mubr.bf16.mxu0 %v3398_v26  ;;  %3198 = vmatprep.mubr.bf16.mxu1 %v3399_v27 }
 0x253   : > { %3183 = vmatmul.mubr.bf16.gmra.mxu0 %v3400_v28  ;;  %3199 = vmatmul.mubr.bf16.gmra.mxu1 %v3401_v7 }
 0x254   : > { %3186 = vmatprep.mubr.bf16.mxu0 %v3402_v29  ;;  %3202 = vmatprep.mubr.bf16.mxu1 %v3403_v6 }
 0x25b   : > { %3187 = vmatmul.mubr.bf16.gmra.mxu0 %v3404_v32  ;;  %3203 = vmatmul.mubr.bf16.gmra.mxu1 %v3405_v33 }
 0x303   : > { %v3176_v35 = vpop.f32.mrf.mxu0  ;;  %v3192_v36 = vpop.f32.mrf.mxu1 }
 0x304   : > { %v1942_v37 = vadd.f32 %v3176_v35, %v4026_v34  ;;  %v2006_v38 = vadd.f32 %v3192_v36, %v4026_v34 }
 0x305   : > { %v1933_v11 = vpop.f32.mrf.mxu0  ;;  %v1997_v39 = vpop.f32.mrf.mxu1 }
 0x306   : > { %2063 = vst [vmem:[#allocation9 + $0x10] sm:$0xff] %v1942_v37  ;;  %2079 = vst [vmem:[#allocation9 + $0x90] sm:$0xff] %v2006_v38  ;;  %v1934_v10 = vadd.f32 %v4026_v34, %v1933_v11  ;;  %v1998_v44 = vadd.f32 %v4026_v34, %v1997_v39 }
 0x307   : > { %v3177_v45 = vpop.f32.mrf.mxu0  ;;  %v3193_v46 = vpop.f32.mrf.mxu1 }
 0x308   : > { %2061 = vst [vmem:[#allocation9] sm:$0xff] %v1934_v10  ;;  %2077 = vst [vmem:[#allocation9 + $0x80] sm:$0xff] %v1998_v44  ;;  %v1945_v47 = vadd.f32 %v3177_v45, %v4026_v34  ;;  %v2009_v48 = vadd.f32 %v3193_v46, %v4026_v34 }
 0x309   : > { %v1936_v49 = vpop.f32.mrf.mxu0  ;;  %v2000_v50 = vpop.f32.mrf.mxu1 }
 0x30a   : > { %2064 = vst [vmem:[#allocation9 + $0x18] sm:$0xff] %v1945_v47  ;;  %2080 = vst [vmem:[#allocation9 + $0x98] sm:$0xff] %v2009_v48  ;;  %v1937_v51 = vadd.f32 %v4026_v34, %v1936_v49  ;;  %v2001_v4 = vadd.f32 %v4026_v34, %v2000_v50 }
 0x30b   : > { %v3180_v53 = vpop.f32.mrf.mxu0  ;;  %v3196_v54 = vpop.f32.mrf.mxu1 }
 0x30c   : > { %2062 = vst [vmem:[#allocation9 + $0x8] sm:$0xff] %v1937_v51  ;;  %2078 = vst [vmem:[#allocation9 + $0x88] sm:$0xff] %v2001_v4  ;;  %v1958_v55 = vadd.f32 %v3180_v53, %v4026_v34  ;;  %v2022_v56 = vadd.f32 %v3196_v54, %v4026_v34 }
 0x30d   : > { %v1949_v57 = vpop.f32.mrf.mxu0  ;;  %v2013_v58 = vpop.f32.mrf.mxu1 }
 0x30e   : > { %2067 = vst [vmem:[#allocation9 + $0x30] sm:$0xff] %v1958_v55  ;;  %2083 = vst [vmem:[#allocation9 + $0xb0] sm:$0xff] %v2022_v56  ;;  %v1950_v59 = vadd.f32 %v4026_v34, %v1949_v57  ;;  %v2014_v60 = vadd.f32 %v4026_v34, %v2013_v58 }
 0x30f   : > { %v3181_v61 = vpop.f32.mrf.mxu0  ;;  %v3197_v18 = vpop.f32.mrf.mxu1 }
 0x310   : > { %2065 = vst [vmem:[#allocation9 + $0x20] sm:$0xff] %v1950_v59  ;;  %2081 = vst [vmem:[#allocation9 + $0xa0] sm:$0xff] %v2014_v60  ;;  %v1961_v19 = vadd.f32 %v3181_v61, %v4026_v34  ;;  %v2025_v8 = vadd.f32 %v3197_v18, %v4026_v34 }
 0x311   : > { %v1952_v63 = vpop.f32.mrf.mxu0  ;;  %v2016_v0 = vpop.f32.mrf.mxu1 }
 0x312   : > { %2068 = vst [vmem:[#allocation9 + $0x38] sm:$0xff] %v1961_v19  ;;  %2084 = vst [vmem:[#allocation9 + $0xb8] sm:$0xff] %v2025_v8  ;;  %v1953_v1 = vadd.f32 %v4026_v34, %v1952_v63  ;;  %v2017_v16 = vadd.f32 %v4026_v34, %v2016_v0 }
 0x313   : > { %v3184_v17 = vpop.f32.mrf.mxu0  ;;  %v3200_v20 = vpop.f32.mrf.mxu1 }
 0x314   : > { %2066 = vst [vmem:[#allocation9 + $0x28] sm:$0xff] %v1953_v1  ;;  %2082 = vst [vmem:[#allocation9 + $0xa8] sm:$0xff] %v2017_v16  ;;  %v1974_v21 = vadd.f32 %v3184_v17, %v4026_v34  ;;  %v2038_v22 = vadd.f32 %v3200_v20, %v4026_v34 }
 0x315   : > { %v1965_v23 = vpop.f32.mrf.mxu0  ;;  %v2029_v12 = vpop.f32.mrf.mxu1 }
 0x316   : > { %2071 = vst [vmem:[#allocation9 + $0x50] sm:$0xff] %v1974_v21  ;;  %2087 = vst [vmem:[#allocation9 + $0xd0] sm:$0xff] %v2038_v22  ;;  %v1966_v25 = vadd.f32 %v4026_v34, %v1965_v23  ;;  %v2030_v26 = vadd.f32 %v4026_v34, %v2029_v12 }
 0x317   : > { %v3185_v27 = vpop.f32.mrf.mxu0  ;;  %v3201_v28 = vpop.f32.mrf.mxu1 }
 0x318   : > { %2069 = vst [vmem:[#allocation9 + $0x40] sm:$0xff] %v1966_v25  ;;  %2085 = vst [vmem:[#allocation9 + $0xc0] sm:$0xff] %v2030_v26  ;;  %v1977_v7 = vadd.f32 %v3185_v27, %v4026_v34  ;;  %v2041_v29 = vadd.f32 %v3201_v28, %v4026_v34 }
 0x319   : > { %v1968_v6 = vpop.f32.mrf.mxu0  ;;  %v2032_v32 = vpop.f32.mrf.mxu1 }
 0x31a   : > { %2072 = vst [vmem:[#allocation9 + $0x58] sm:$0xff] %v1977_v7  ;;  %2088 = vst [vmem:[#allocation9 + $0xd8] sm:$0xff] %v2041_v29  ;;  %v1969_v33 = vadd.f32 %v4026_v34, %v1968_v6  ;;  %v2033_v35 = vadd.f32 %v4026_v34, %v2032_v32 }
 0x31b   : > { %v3188_v36 = vpop.f32.mrf.mxu0  ;;  %v3204_v37 = vpop.f32.mrf.mxu1 }
 0x31c   : > { %2070 = vst [vmem:[#allocation9 + $0x48] sm:$0xff] %v1969_v33  ;;  %2086 = vst [vmem:[#allocation9 + $0xc8] sm:$0xff] %v2033_v35  ;;  %v1990_v38 = vadd.f32 %v3188_v36, %v4026_v34  ;;  %v2054_v11 = vadd.f32 %v3204_v37, %v4026_v34 }
 0x31d   : > { %v1981_v39 = vpop.f32.mrf.mxu0  ;;  %v2045_v10 = vpop.f32.mrf.mxu1 }
 0x31e   : > { %2075 = vst [vmem:[#allocation9 + $0x70] sm:$0xff] %v1990_v38  ;;  %2091 = vst [vmem:[#allocation9 + $0xf0] sm:$0xff] %v2054_v11  ;;  %v1982_v44 = vadd.f32 %v4026_v34, %v1981_v39  ;;  %v2046_v45 = vadd.f32 %v4026_v34, %v2045_v10 }
 0x31f   : > { %v3189_v46 = vpop.f32.mrf.mxu0  ;;  %v3205_v47 = vpop.f32.mrf.mxu1 }
 0x320   : > { %2073 = vst [vmem:[#allocation9 + $0x60] sm:$0xff] %v1982_v44  ;;  %2089 = vst [vmem:[#allocation9 + $0xe0] sm:$0xff] %v2046_v45  ;;  %v1993_v48 = vadd.f32 %v3189_v46, %v4026_v34  ;;  %v2057_v49 = vadd.f32 %v3205_v47, %v4026_v34 }
 0x321   : > { %v1984_v50 = vpop.f32.mrf.mxu0  ;;  %v2048_v51 = vpop.f32.mrf.mxu1 }
 0x322   : > { %2076 = vst [vmem:[#allocation9 + $0x78] sm:$0xff] %v1993_v48  ;;  %2092 = vst [vmem:[#allocation9 + $0xf8] sm:$0xff] %v2057_v49  ;;  %v1985_v4 = vadd.f32 %v4026_v34, %v1984_v50  ;;  %v2049_v53 = vadd.f32 %v4026_v34, %v2048_v51 }
 0x324   : > { %2074 = vst [vmem:[#allocation9 + $0x68] sm:$0xff] %v1985_v4  ;;  %2090 = vst [vmem:[#allocation9 + $0xe8] sm:$0xff] %v2049_v53 }
 0x325 PF: > { %s2632_s16 = sshll.u32 %s3516_s18, 6  ;;  %3222 = vmatprep.mubr.bf16.mxu0 %v3888_v40  ;;  %3238 = vmatprep.mubr.bf16.mxu1 %v3890_v41  ;;  %v2097_v60 = vld [vmem:[#allocation9 + $0x18] sm:$0xff]  ;;  %v2095_v18 = vld [vmem:[#allocation9 + $0x8] sm:$0xff]  ;;  %v2100_v1 = vld [vmem:[#allocation9 + $0x30] sm:$0xff]  ;;  %s3534_s18 = smov [#allocation9]  }
 0x326   : > { %s4066_s25 = scalar_lea.vmem %s4119_s3, %s2632_s16  ;;  %v2116_v16 = vld [vmem:[#allocation9 + $0xb0] sm:$0xff]  ;;  %v2098_v23 = vld [vmem:[#allocation9 + $0x20] sm:$0xff]  ;;  %v2101_v7 = vld [vmem:[#allocation9 + $0x38] sm:$0xff]  ;;  %s2425_s26 = sshll.u32 %s3534_s18, 4  ;;  %s2426_s26 = int_to_ptr.vmem [resolvable:$true] %s2425_s26 }
 0x327   : > { %v3406_v54 = vld [vmem:[%s4066_s25 + $0x78] sm:$0xff]   ;;  %v3407_v34 = vld [vmem:[%s4066_s25 + $0x70] sm:$0xff]   ;;  %v3408_v40 = vld [vmem:[%s4066_s25 + $0x68] sm:$0xff]   ;;  %p4092_p7 = scmp.eq.s32.totalorder %s2512_s21, 1  ;;  %s3466_s24 = scalar_lea.vmem %s2426_s26, 4096 }
 0x328   : > { %3206 = vmatprep.subr.bf16.mxu0 %v3406_v54  ;;  %3286 = vmatprep.subr.bf16.mxu1 %v3406_v54  ;;  %v3409_v41 = vld [vmem:[%s4066_s25 + $0x60] sm:$0xff]   ;;  %v3410_v55 = vld [vmem:[%s4066_s25 + $0x58] sm:$0xff]   ;;  %v3411_v56 = vld [vmem:[%s4066_s25 + $0x50] sm:$0xff]   ;;  %p3467_p12 = scmp.ne.s32.totalorder %s2426_s26, %s3466_s24  ;;  %p3473_p1 = scmp.lt.s32.totalorder %s2426_s26, %s2426_s26 }
 0x329   : > { %3207 = vmatpush3.bf16.msra.mxu0 %v3406_v54  ;;  %3294 = vmatpush3.bf16.msra.mxu1 %v3406_v54  ;;  %v3412_v57 = vld [vmem:[%s4066_s25 + $0x48] sm:$0xff]   ;;  %v3413_v58 = vld [vmem:[%s4066_s25 + $0x40] sm:$0xff]   ;;  %v2117_v29 = vld [vmem:[#allocation9 + $0xb8] sm:$0xff]  ;;  %p3474_p2 = scmp.lt.s32.totalorder %s3466_s24, %s3466_s24 }
 0x32a   : > { %3208 = vmatprep.subr.bf16.mxu0 %v3407_v34  ;;  %3287 = vmatprep.subr.bf16.mxu1 %v3407_v34  ;;  %v2114_v12 = vld [vmem:[#allocation9 + $0xa0] sm:$0xff]  ;;  %v2099_v36 = vld [vmem:[#allocation9 + $0x28] sm:$0xff]  ;;  %v2104_v44 = vld [vmem:[#allocation9 + $0x50] sm:$0xff]  ;;  %p3468_p13 = pnand %p3467_p12, %p4092_p7 }
 0x32b   : > { %v2115_v37 = vld [vmem:[#allocation9 + $0xa8] sm:$0xff]  ;;  %v2120_v45 = vld [vmem:[#allocation9 + $0xd0] sm:$0xff]  ;;  %v2102_v50 = vld [vmem:[#allocation9 + $0x40] sm:$0xff]  ;;  %p3475_p5 = por %p3474_p2, %p3473_p1 }
 0x32c   : > { %v2118_v51 = vld [vmem:[#allocation9 + $0xc0] sm:$0xff]  ;;  %p3469_p0 = pneg %p3468_p13 }
 0x32d   : > { %3209 = vmatpush3.bf16.msra.mxu0 %v3407_v34  ;;  %3295 = vmatpush3.bf16.msra.mxu1 %v3407_v34 }
 0x32e   : > { %3210 = vmatprep.subr.bf16.mxu0 %v3408_v40  ;;  %3288 = vmatprep.subr.bf16.mxu1 %v3408_v40  ;;  %p3476_p8 = pnand %p3475_p5, %p3469_p0 }
 0x331   : > { %3211 = vmatpush3.bf16.msra.mxu0 %v3408_v40  ;;  %3296 = vmatpush3.bf16.msra.mxu1 %v3408_v40  ;;  %v2105_v40 = vld [vmem:[#allocation9 + $0x58] sm:$0xff] }
 0x332   : > { %3212 = vmatprep.subr.bf16.mxu0 %v3409_v41  ;;  %3289 = vmatprep.subr.bf16.mxu1 %v3409_v41 }
 0x335   : > { %3213 = vmatpush3.bf16.msra.mxu0 %v3409_v41  ;;  %3297 = vmatpush3.bf16.msra.mxu1 %v3409_v41  ;;  %v2121_v41 = vld [vmem:[#allocation9 + $0xd8] sm:$0xff] }
 0x336   : > { %3214 = vmatprep.subr.bf16.mxu0 %v3410_v55  ;;  %3290 = vmatprep.subr.bf16.mxu1 %v3410_v55 }
 0x339   : > { %3215 = vmatpush3.bf16.msra.mxu0 %v3410_v55  ;;  %3298 = vmatpush3.bf16.msra.mxu1 %v3410_v55 }
 0x33a   : > { %3216 = vmatprep.subr.bf16.mxu0 %v3411_v56  ;;  %3291 = vmatprep.subr.bf16.mxu1 %v3411_v56 }
 0x33d   : > { %3217 = vmatpush3.bf16.msra.mxu0 %v3411_v56  ;;  %3299 = vmatpush3.bf16.msra.mxu1 %v3411_v56 }
 0x33e   : > { %3218 = vmatprep.subr.bf16.mxu0 %v3412_v57  ;;  %3292 = vmatprep.subr.bf16.mxu1 %v3412_v57 }
 0x341   : > { %3219 = vmatpush3.bf16.msra.mxu0 %v3412_v57  ;;  %3300 = vmatpush3.bf16.msra.mxu1 %v3412_v57 }
 0x342   : > { %3220 = vmatprep.subr.bf16.mxu0 %v3413_v58  ;;  %3293 = vmatprep.subr.bf16.mxu1 %v3413_v58 }
 0x345   : > { %3221 = vmatpush3.bf16.msra.mxu0 %v3413_v58  ;;  %3301 = vmatpush3.bf16.msra.mxu1 %v3413_v58 }
 0x348   : > { %3223 = vmatmul.mubr.bf16.vlgmr.msra.gmra.mxu0 %v3902_v3  ;;  %3239 = vmatmul.mubr.bf16.vlgmr.msra.gmra.mxu1 %v3904_v5  ;;  %v2096_v3 = vld [vmem:[#allocation9 + $0x10] sm:$0xff] }
 0x349   : > { %3226 = vmatprep.mubr.bf16.mxu0 %v3914_v52  ;;  %3242 = vmatprep.mubr.bf16.mxu1 %v3916_v2  ;;  %v2112_v5 = vld [vmem:[#allocation9 + $0x90] sm:$0xff] }
 0x350   : > { %3227 = vmatmul.mubr.bf16.gmra.mxu0 %v3930_v30  ;;  %3243 = vmatmul.mubr.bf16.gmra.mxu1 %v3932_v31  ;;  %v2094_v30 = vld [vmem:[#allocation9] sm:$0xff] }
 0x351   : > { %3230 = vmatprep.mubr.bf16.mxu0 %v3942_v62  ;;  %3246 = vmatprep.mubr.bf16.mxu1 %v3944_v9  ;;  %v2110_v31 = vld [vmem:[#allocation9 + $0x80] sm:$0xff] }
 0x358   : > { %3231 = vmatmul.mubr.bf16.gmra.mxu0 %v3958_v42  ;;  %3247 = vmatmul.mubr.bf16.gmra.mxu1 %v3960_v43  ;;  %v2113_v43 = vld [vmem:[#allocation9 + $0x98] sm:$0xff] }
 0x359   : > { %3234 = vmatprep.mubr.bf16.mxu0 %v3970_v24  ;;  %3250 = vmatprep.mubr.bf16.mxu1 %v3972_v13 }
 0x360   : > { %3235 = vmatmul.mubr.bf16.gmra.mxu0 %v3986_v15  ;;  %3251 = vmatmul.mubr.bf16.gmra.mxu1 %v3988_v14  ;;  %v2111_v14 = vld [vmem:[#allocation9 + $0x88] sm:$0xff] }
 0x408   : > { %v3224_v52 = vpop.f32.mrf.mxu0  ;;  %v3240_v2 = vpop.f32.mrf.mxu1 }
 0x409   : > { %v2357_v62 = vadd.f32 %v3224_v52, %v2096_v3  ;;  %v2373_v9 = vadd.f32 %v3240_v2, %v2112_v5  ;;  %v2103_v3 = vld [vmem:[#allocation9 + $0x48] sm:$0xff] }
 0x40a   : > { %v2228_v59 = vpop.f32.mrf.mxu0  ;;  %v2292_v42 = vpop.f32.mrf.mxu1  ;;  %v2119_v5 = vld [vmem:[#allocation9 + $0xc8] sm:$0xff] }
 0x40b   : > { %2389 = vst [vmem:[#allocation9 + $0x10] sm:$0xff] %v2357_v62  ;;  %2405 = vst [vmem:[#allocation9 + $0x90] sm:$0xff] %v2373_v9  ;;  %v2355_v24 = vadd.f32 %v2228_v59, %v2094_v30  ;;  %v2371_v13 = vadd.f32 %v2292_v42, %v2110_v31  ;;  %v2108_v62 = vld [vmem:[#allocation9 + $0x70] sm:$0xff] }
 0x40c   : > { %v3225_v61 = vpop.f32.mrf.mxu0  ;;  %v3241_v15 = vpop.f32.mrf.mxu1  ;;  %v2124_v9 = vld [vmem:[#allocation9 + $0xf0] sm:$0xff] }
 0x40d   : > { %2387 = vst [vmem:[#allocation9] sm:$0xff] %v2355_v24  ;;  %2403 = vst [vmem:[#allocation9 + $0x80] sm:$0xff] %v2371_v13  ;;  %v2358_v19 = vadd.f32 %v3225_v61, %v2097_v60  ;;  %v2374_v8 = vadd.f32 %v3241_v15, %v2113_v43  ;;  %v2106_v24 = vld [vmem:[#allocation9 + $0x60] sm:$0xff] }
 0x40e   : > { %v2231_v63 = vpop.f32.mrf.mxu0  ;;  %v2295_v0 = vpop.f32.mrf.mxu1  ;;  %v2122_v13 = vld [vmem:[#allocation9 + $0xe0] sm:$0xff] }
 0x40f   : > { %2390 = vst [vmem:[#allocation9 + $0x18] sm:$0xff] %v2358_v19  ;;  %2406 = vst [vmem:[#allocation9 + $0x98] sm:$0xff] %v2374_v8  ;;  %v2356_v17 = vadd.f32 %v2231_v63, %v2095_v18  ;;  %v2372_v20 = vadd.f32 %v2295_v0, %v2111_v14  ;;  %v2109_v19 = vld [vmem:[#allocation9 + $0x78] sm:$0xff] }
 0x410   : > { %v3228_v21 = vpop.f32.mrf.mxu0  ;;  %v3244_v22 = vpop.f32.mrf.mxu1  ;;  %v2125_v8 = vld [vmem:[#allocation9 + $0xf8] sm:$0xff] }
 0x411   : > { %2388 = vst [vmem:[#allocation9 + $0x8] sm:$0xff] %v2356_v17  ;;  %2404 = vst [vmem:[#allocation9 + $0x88] sm:$0xff] %v2372_v20  ;;  %v2361_v25 = vadd.f32 %v3228_v21, %v2100_v1  ;;  %v2377_v26 = vadd.f32 %v3244_v22, %v2116_v16  ;;  %v2107_v17 = vld [vmem:[#allocation9 + $0x68] sm:$0xff] }
 0x412   : > { %v2244_v27 = vpop.f32.mrf.mxu0  ;;  %v2308_v28 = vpop.f32.mrf.mxu1  ;;  %v2123_v20 = vld [vmem:[#allocation9 + $0xe8] sm:$0xff] }
 0x413   : > { %2393 = vst [vmem:[#allocation9 + $0x30] sm:$0xff] %v2361_v25  ;;  %2409 = vst [vmem:[#allocation9 + $0xb0] sm:$0xff] %v2377_v26  ;;  %v2359_v6 = vadd.f32 %v2244_v27, %v2098_v23  ;;  %v2375_v32 = vadd.f32 %v2308_v28, %v2114_v12 }
 0x414   : > { %v3229_v33 = vpop.f32.mrf.mxu0  ;;  %v3245_v35 = vpop.f32.mrf.mxu1 }
 0x415   : > { %2391 = vst [vmem:[#allocation9 + $0x20] sm:$0xff] %v2359_v6  ;;  %2407 = vst [vmem:[#allocation9 + $0xa0] sm:$0xff] %v2375_v32  ;;  %v2362_v38 = vadd.f32 %v3229_v33, %v2101_v7  ;;  %v2378_v11 = vadd.f32 %v3245_v35, %v2117_v29 }
 0x416   : > { %v2247_v39 = vpop.f32.mrf.mxu0  ;;  %v2311_v10 = vpop.f32.mrf.mxu1 }
 0x417   : > { %2394 = vst [vmem:[#allocation9 + $0x38] sm:$0xff] %v2362_v38  ;;  %2410 = vst [vmem:[#allocation9 + $0xb8] sm:$0xff] %v2378_v11  ;;  %v2360_v46 = vadd.f32 %v2247_v39, %v2099_v36  ;;  %v2376_v47 = vadd.f32 %v2311_v10, %v2115_v37 }
 0x418   : > { %v3232_v48 = vpop.f32.mrf.mxu0  ;;  %v3248_v49 = vpop.f32.mrf.mxu1 }
 0x419   : > { %2392 = vst [vmem:[#allocation9 + $0x28] sm:$0xff] %v2360_v46  ;;  %2408 = vst [vmem:[#allocation9 + $0xa8] sm:$0xff] %v2376_v47  ;;  %v2365_v4 = vadd.f32 %v3232_v48, %v2104_v44  ;;  %v2381_v53 = vadd.f32 %v3248_v49, %v2120_v45 }
 0x41a   : > { %v2260_v54 = vpop.f32.mrf.mxu0  ;;  %v2324_v34 = vpop.f32.mrf.mxu1 }
 0x41b   : > { %2397 = vst [vmem:[#allocation9 + $0x50] sm:$0xff] %v2365_v4  ;;  %2413 = vst [vmem:[#allocation9 + $0xd0] sm:$0xff] %v2381_v53  ;;  %v2363_v55 = vadd.f32 %v2260_v54, %v2102_v50  ;;  %v2379_v56 = vadd.f32 %v2324_v34, %v2118_v51 }
 0x41c   : > { %v3233_v57 = vpop.f32.mrf.mxu0  ;;  %v3249_v58 = vpop.f32.mrf.mxu1 }
 0x41d   : > { %2395 = vst [vmem:[#allocation9 + $0x40] sm:$0xff] %v2363_v55  ;;  %2411 = vst [vmem:[#allocation9 + $0xc0] sm:$0xff] %v2379_v56  ;;  %v2366_v52 = vadd.f32 %v3233_v57, %v2105_v40  ;;  %v2382_v2 = vadd.f32 %v3249_v58, %v2121_v41 }
 0x41e   : > { %v2263_v30 = vpop.f32.mrf.mxu0  ;;  %v2327_v31 = vpop.f32.mrf.mxu1 }
 0x41f   : > { %2398 = vst [vmem:[#allocation9 + $0x58] sm:$0xff] %v2366_v52  ;;  %2414 = vst [vmem:[#allocation9 + $0xd8] sm:$0xff] %v2382_v2  ;;  %v2364_v59 = vadd.f32 %v2263_v30, %v2103_v3  ;;  %v2380_v42 = vadd.f32 %v2327_v31, %v2119_v5 }
 0x420   : > { %v3236_v60 = vpop.f32.mrf.mxu0  ;;  %v3252_v43 = vpop.f32.mrf.mxu1 }
 0x421   : > { %2396 = vst [vmem:[#allocation9 + $0x48] sm:$0xff] %v2364_v59  ;;  %2412 = vst [vmem:[#allocation9 + $0xc8] sm:$0xff] %v2380_v42  ;;  %v2369_v61 = vadd.f32 %v3236_v60, %v2108_v62  ;;  %v2385_v15 = vadd.f32 %v3252_v43, %v2124_v9 }
 0x422   : > { %v2276_v18 = vpop.f32.mrf.mxu0  ;;  %v2340_v14 = vpop.f32.mrf.mxu1 }
 0x423   : > { %2401 = vst [vmem:[#allocation9 + $0x70] sm:$0xff] %v2369_v61  ;;  %2417 = vst [vmem:[#allocation9 + $0xf0] sm:$0xff] %v2385_v15  ;;  %v2367_v63 = vadd.f32 %v2276_v18, %v2106_v24  ;;  %v2383_v0 = vadd.f32 %v2340_v14, %v2122_v13 }
 0x424   : > { %v3237_v1 = vpop.f32.mrf.mxu0  ;;  %v3253_v16 = vpop.f32.mrf.mxu1 }
 0x425   : > { %2399 = vst [vmem:[#allocation9 + $0x60] sm:$0xff] %v2367_v63  ;;  %2415 = vst [vmem:[#allocation9 + $0xe0] sm:$0xff] %v2383_v0  ;;  %v2370_v21 = vadd.f32 %v3237_v1, %v2109_v19  ;;  %v2386_v22 = vadd.f32 %v3253_v16, %v2125_v8 }
 0x426   : > { %v2279_v23 = vpop.f32.mrf.mxu0  ;;  %v2343_v12 = vpop.f32.mrf.mxu1 }
 0x427   : > { %2402 = vst [vmem:[#allocation9 + $0x78] sm:$0xff] %v2370_v21  ;;  %2418 = vst [vmem:[#allocation9 + $0xf8] sm:$0xff] %v2386_v22  ;;  %v2368_v25 = vadd.f32 %v2279_v23, %v2107_v17  ;;  %v2384_v26 = vadd.f32 %v2343_v12, %v2123_v20 }
 0x429   : > { %2400 = vst [vmem:[#allocation9 + $0x68] sm:$0xff] %v2368_v25  ;;  %2416 = vst [vmem:[#allocation9 + $0xe8] sm:$0xff] %v2384_v26 }
 0x42a   : > { %3479 = shalt.err (!%p3476_p8)
}
 0x42b   : > { %s3535_s21 = smov 128   ;;  %s3536_s28 = smov 8  }
 0x42c   : > { %3311 = dma.vmem_to_hbm [thread:$0]  (%p4092_p7), %s2426_s26, 4096, %s4121_s5, [#allocation6], %s3535_s21, %s3535_s21, %s3536_s28  }
 0x42d   : > { %3511 = dma.done.wait (%p4092_p7), [#allocation6], 4096  }
 0x42e   : > { %3513 = vsyncadd (%p4092_p7), [#allocation6], 4294963200 }
 0x42f PF: > { %s18_s20 = sadd.s32 1, %s3524_s20   ;;  %s4126_s18 = smov %s3520_s19 }
 0x430   : > { %p15_p9 = scmp.ge.s32.totalorder %s18_s20, 4   ;;  %s4127_s19 = smov %s4129_s22 }
 0x432   :  { %17 = sbr.rel (!%p15_p9) target bundleno = 4 (0x4), region = 97 }
 0x437   :  { %2441 = vsyncpa [#allocation5], 1 }
 0x438   :  { %2443 = vsyncpa [#allocation5 + $0x1], 1 }
 0x439   :  { %2444 = vsyncpa [#allocation8], 1 }
 0x43a   :  { %2445 = vsyncpa [#allocation6], 1 }
 0x43b   :  { %2447 = vsyncpa [#allocation6 + $0x1], 1 }

</bundles_post_ra>
